<compile_context>
chip_gen: v7x
topology: tpu7x:2x2x1
jax: 0.10.0
libtpu: 0.0.40
codegen_flags: <defaults>
</compile_context>

<pallas_src>
import numpy as np
import jax
import jax.numpy as jnp
from jax import lax
from jax.experimental import pallas as pl
from jax.experimental.pallas import tpu as pltpu

BN_EPS = 1e-5
K1, K2 = 8, 16          # param['kernel1'], param['kernel2']
N = 2                   # batch size (baked into the fused kernel)


# --------------------------- in-kernel helpers -------------------------------

def _iota2(shape, dim):
    return lax.broadcasted_iota(jnp.int32, shape, dim)


def _row_pool_selectors(hp, h):
    """Even/odd row selectors of shape (N*h//2, N*hp).

    Output row r = n*(h//2) + yo picks padded-layout row n*hp + 2*yo (+1 for
    the odd selector).  h//2 is a power of two so // and % are shifts/masks.
    """
    hh = h // 2
    shp = (N * hh, N * hp)
    r = _iota2(shp, 0)
    p = _iota2(shp, 1)
    img = r >> (hh.bit_length() - 1)
    yo = r & (hh - 1)
    base = img * hp + 2 * yo
    sel_e = jnp.where(p == base, 1.0, 0.0)
    sel_o = jnp.where(p == base + 1, 1.0, 0.0)
    return sel_e, sel_o


def _channel_sum_mat(w, c):
    """(w*c, c): collapses the x-interleaved lane layout to per-channel sums."""
    p = _iota2((w * c, c), 0)
    q = _iota2((w * c, c), 1)
    return jnp.where((p & (c - 1)) == q, 1.0, 0.0)


def _channel_bcast_mat(w, c):
    """(c, w*c): broadcasts a per-channel row vector across the x groups."""
    p = _iota2((c, w * c), 0)
    q = _iota2((c, w * c), 1)
    return jnp.where(p == (q & (c - 1)), 1.0, 0.0)


def _bn_relu(pooled, gamma, beta, w, c):
    """Batch-stat BatchNorm + ReLU on a (rows, w*c) lane-interleaved tile."""
    gsum = _channel_sum_mat(w, c)
    gbc = _channel_bcast_mat(w, c)
    count = pooled.shape[0] * w                      # elements per channel
    s = jnp.dot(jnp.sum(pooled, axis=0, keepdims=True), gsum,
                preferred_element_type=jnp.float32)
    ss = jnp.dot(jnp.sum(pooled * pooled, axis=0, keepdims=True), gsum,
                 preferred_element_type=jnp.float32)
    mean = s * (1.0 / count)
    var = ss * (1.0 / count) - mean * mean           # one-pass biased variance
    scale = gamma * lax.rsqrt(var + BN_EPS)
    shift = beta - mean * scale
    scale_l = jnp.dot(scale, gbc, preferred_element_type=jnp.float32)
    shift_l = jnp.dot(shift, gbc, preferred_element_type=jnp.float32)
    return jnp.maximum(pooled * scale_l + shift_l, 0.0)


# ------------------------------ fused kernel ---------------------------------

def _net_kernel(x_ref, bb1_ref, bb2_ref, b3_ref, pp_ref, o_ref,
                ric0_ref, a1_ref, ric1_ref, a2_ref, ric2_ref):
    # zero the padded activation scratches -> implicit 'same' zero padding
    a1_ref[...] = jnp.zeros_like(a1_ref)
    a2_ref[...] = jnp.zeros_like(a2_ref)

    # ----- stage 1: conv1 5x5 (pad 2) + 2x2 maxpool + BN + ReLU -------------
    # row-band im2col: ric0[r, k*16 + j] = xpad[r + dy, dx + j], k = dy*5 + dx
    for k in range(25):
        dy, dx = k // 5, k % 5
        ric0_ref[:, k * 16:(k + 1) * 16] = x_ref[dy:dy + 40, dx:dx + 16]
    ric0 = ric0_ref[...]                                       # (40, 400)
    # bb1[b] folds the horizontal pool stride: b = column inside pool window
    c_even = jnp.dot(ric0, bb1_ref[0], preferred_element_type=jnp.float32)
    c_odd = jnp.dot(ric0, bb1_ref[1], preferred_element_type=jnp.float32)
    hmax = jnp.maximum(c_even, c_odd)                          # (40, 64)
    sel_e, sel_o = _row_pool_selectors(hp=20, h=16)            # (16, 40)
    p1 = jnp.maximum(
        jnp.dot(sel_e, hmax, preferred_element_type=jnp.float32),
        jnp.dot(sel_o, hmax, preferred_element_type=jnp.float32))  # (16, 64)
    h1 = _bn_relu(p1, pp_ref[0:1, 0:K1], pp_ref[1:2, 0:K1], w=8, c=K1)
    # write into zero-padded (pad=1) stage-2 input, layout (n*10 + y, x*8 + c)
    for n in range(N):
        a1_ref[n * 10 + 1:n * 10 + 9, 8:72] = h1[n * 8:(n + 1) * 8, :]

    # ----- stage 2: conv2 3x3 (pad 1) + 2x2 maxpool + BN + ReLU -------------
    for k in range(9):
        dy, dx = k // 3, k % 3
        ric1_ref[:, k * 64:(k + 1) * 64] = a1_ref[dy:dy + 20, dx * 8:dx * 8 + 64]
    ric1 = ric1_ref[...]                                       # (20, 576)
    c_even = jnp.dot(ric1, bb2_ref[0], preferred_element_type=jnp.float32)
    c_odd = jnp.dot(ric1, bb2_ref[1], preferred_element_type=jnp.float32)
    hmax = jnp.maximum(c_even, c_odd)                          # (20, 64)
    sel_e, sel_o = _row_pool_selectors(hp=10, h=8)             # (8, 20)
    p2 = jnp.maximum(
        jnp.dot(sel_e, hmax, preferred_element_type=jnp.float32),
        jnp.dot(sel_o, hmax, preferred_element_type=jnp.float32))  # (8, 64)
    h2 = _bn_relu(p2, pp_ref[2:3, 0:K2], pp_ref[3:4, 0:K2], w=4, c=K2)
    for n in range(N):
        a2_ref[n * 6 + 1:n * 6 + 5, 16:80] = h2[n * 4:(n + 1) * 4, :]

    # ----- stage 3: conv3 3x3 (pad 1) + bias ---------------------------------
    for k in range(9):
        dy, dx = k // 3, k % 3
        ric2_ref[:, k * 64:(k + 1) * 64] = a2_ref[dy:dy + 12, dx * 16:dx * 16 + 64]
    c3 = jnp.dot(ric2_ref[...], b3_ref[...],
                 preferred_element_type=jnp.float32)           # (12, 8)
    bias = jnp.dot(pp_ref[4:5, 0:2], _channel_bcast_mat(4, 2),
                   preferred_element_type=jnp.float32)         # (1, 8)
    c3 = c3 + bias
    o_ref[0:4, :] = c3[0:4, :]                                 # image 0, y=0..3
    o_ref[4:8, :] = c3[6:10, :]                                # image 1, y=0..3


# ------------------------------ JAX wrapper ----------------------------------

def _pool_conv_weight(w, width):
    """(Cout,Cin,kh,kw) -> (2, kh*kw*width*Cin, (width//2)*Cout).

    Block-diagonal matrices acting on the row-im2col layout; index b in {0,1}
    is the horizontal position inside the 2x2 pool window (stride-2 folded in).
    """
    cout, cin, kh, kw = w.shape
    wh = width // 2
    sel = np.zeros((2, width, wh), np.float32)
    for b in range(2):
        sel[b, 2 * np.arange(wh) + b, np.arange(wh)] = 1.0
    wk = jnp.transpose(w, (2, 3, 1, 0)).reshape(kh * kw, cin, cout)  # (k,ci,co)
    bd = jnp.einsum('bxz,kic->bkxizc', jnp.asarray(sel), wk)
    return bd.reshape(2, kh * kw * width * cin, wh * cout)


def _conv_weight(w, width):
    """(Cout,Cin,kh,kw) -> (kh*kw*width*Cin, width*Cout); no pooling."""
    cout, cin, kh, kw = w.shape
    eye = jnp.asarray(np.eye(width, dtype=np.float32))
    wk = jnp.transpose(w, (2, 3, 1, 0)).reshape(kh * kw, cin, cout)
    bd = jnp.einsum('xz,kic->kxizc', eye, wk)
    return bd.reshape(kh * kw * width * cin, width * cout)


def _pack_channel_params(p):
    """gamma1/beta1/gamma2/beta2/bias3 packed into one (5, 16) array."""
    pp = jnp.zeros((5, 16), jnp.float32)
    pp = pp.at[0, :K1].set(p["g1"])
    pp = pp.at[1, :K1].set(p["be1"])
    pp = pp.at[2, :K2].set(p["g2"])
    pp = pp.at[3, :K2].set(p["be2"])
    pp = pp.at[4, :2].set(p["b3"])
    return pp


def net_forward(x_nchw, params):
    """Forward pass of `Net` for NCHW input of shape (2, 1, 16, 16)."""
    assert x_nchw.shape == (N, 1, 16, 16), x_nchw.shape
    # Stacked zero-padded (pad=2) conv1 input: rows n*20 + y_pad, lanes x_pad;
    # 4 extra zero rows at the bottom let the in-kernel row-im2col take a
    # single dy-shifted slice per tap covering both images at once.
    xpad = jnp.pad(x_nchw[:, 0, :, :], ((0, 0), (2, 2), (2, 2)))
    xpad = jnp.pad(xpad.reshape(N * 20, 20), ((0, 4), (0, 0)))    # (44, 20)

    bb1 = _pool_conv_weight(params["w1"], 16)      # (2, 400, 64)
    bb2 = _pool_conv_weight(params["w2"], 8)       # (2, 576, 64)
    b3m = _conv_weight(params["w3"], 4)            # (576, 8)
    pp = _pack_channel_params(params)              # (5, 16)
    # NOTE: conv1/conv2 biases are intentionally not passed: a per-channel
    # bias before batch-stat BatchNorm is cancelled by the mean subtraction.

    out2d = pl.pallas_call(
        _net_kernel,
        out_shape=jax.ShapeDtypeStruct((8, 8), jnp.float32),
        in_specs=[
            pl.BlockSpec((44, 20), lambda: (0, 0)),
            pl.BlockSpec((2, 400, 64), lambda: (0, 0, 0)),
            pl.BlockSpec((2, 576, 64), lambda: (0, 0, 0)),
            pl.BlockSpec((576, 8), lambda: (0, 0)),
            pl.BlockSpec((5, 16), lambda: (0, 0)),
        ],
        out_specs=pl.BlockSpec((8, 8), lambda: (0, 0)),
        scratch_shapes=[
            pltpu.VMEM((40, 400), jnp.float32),    # conv1 row-im2col
            pltpu.VMEM((22, 80), jnp.float32),     # padded conv2 input
            pltpu.VMEM((20, 576), jnp.float32),    # conv2 row-im2col
            pltpu.VMEM((14, 96), jnp.float32),     # padded conv3 input
            pltpu.VMEM((12, 576), jnp.float32),    # conv3 row-im2col
        ],
    )(xpad, bb1, bb2, b3m, pp)

    out = out2d.reshape(N, 4, 4, 2)                # (n, y, x, c)
    return jnp.transpose(out, (0, 3, 1, 2))        # NCHW (2, 2, 4, 4)


# -------------------------- plain-JAX reference ------------------------------

def reference_forward(x, p):
    def conv(x, w, b, pad):
        y = lax.conv_general_dilated(
            x, w, window_strides=(1, 1), padding=((pad, pad), (pad, pad)),
            dimension_numbers=("NCHW", "OIHW", "NCHW"),
            precision=lax.Precision.HIGHEST)
        return y + b[None, :, None, None]

    def maxpool2(x):
        return lax.reduce_window(x, -jnp.inf, lax.max,
                                 (1, 1, 2, 2), (1, 1, 2, 2), "VALID")

    def bn(x, g, b):
        mean = jnp.mean(x, axis=(0, 2, 3), keepdims=True)
        var = jnp.mean((x - mean) ** 2, axis=(0, 2, 3), keepdims=True)
        return ((x - mean) / jnp.sqrt(var + BN_EPS)) * g[None, :, None, None] \
            + b[None, :, None, None]

    y = jnp.maximum(bn(maxpool2(conv(x, p["w1"], p["b1"], 2)), p["g1"], p["be1"]), 0.0)
    y = jnp.maximum(bn(maxpool2(conv(y, p["w2"], p["b2"], 1)), p["g2"], p["be2"]), 0.0)
    return conv(y, p["w3"], p["b3"], 1)


# --------------------------------- main ---------------------------------------

if __name__ == "__main__":
    key = jax.random.PRNGKey(0)
    ks = jax.random.split(key, 12)
    params = {
        "w1": 0.2 * jax.random.normal(ks[0], (K1, 1, 5, 5), jnp.float32),
        "b1": 0.1 * jax.random.normal(ks[1], (K1,), jnp.float32),
        "g1": 1.0 + 0.1 * jax.random.normal(ks[2], (K1,), jnp.float32),
        "be1": 0.1 * jax.random.normal(ks[3], (K1,), jnp.float32),
        "w2": 0.2 * jax.random.normal(ks[4], (K2, K1, 3, 3), jnp.float32),
        "b2": 0.1 * jax.random.normal(ks[5], (K2,), jnp.float32),
        "g2": 1.0 + 0.1 * jax.random.normal(ks[6], (K2,), jnp.float32),
        "be2": 0.1 * jax.random.normal(ks[7], (K2,), jnp.float32),
        "w3": 0.2 * jax.random.normal(ks[8], (2, K2, 3, 3), jnp.float32),
        "b3": 0.1 * jax.random.normal(ks[9], (2,), jnp.float32),
    }
    x = jax.random.normal(ks[10], (2, 1, 16, 16), jnp.float32)  # NCHW, C=1

    out = jax.block_until_ready(jax.jit(net_forward)(x, params))
    ref = jax.block_until_ready(reference_forward(x, params))

    assert out.shape == (2, 2, 4, 4), out.shape
    max_err = float(jnp.max(jnp.abs(out - ref)))
    assert max_err < 5e-2, f"mismatch vs reference: {max_err}"
    print("KERNEL_OK")
</pallas_src>

<mosaic_0001>
module attributes {stable_mosaic.version = 11 : i64} {
  func.func @_net_kernel(%arg0: memref<44x20xf32, #tpu.memory_space<vmem>>, %arg1: memref<2x400x64xf32, #tpu.memory_space<vmem>>, %arg2: memref<2x576x64xf32, #tpu.memory_space<vmem>>, %arg3: memref<576x8xf32, #tpu.memory_space<vmem>>, %arg4: memref<5x16xf32, #tpu.memory_space<vmem>>, %arg5: memref<8x8xf32, #tpu.memory_space<vmem>>, %arg6: memref<40x400xf32, #tpu.memory_space<vmem>>, %arg7: memref<22x80xf32, #tpu.memory_space<vmem>>, %arg8: memref<20x576xf32, #tpu.memory_space<vmem>>, %arg9: memref<14x96xf32, #tpu.memory_space<vmem>>, %arg10: memref<12x576xf32, #tpu.memory_space<vmem>>) attributes {dimension_semantics = [], scalar_prefetch = 0 : i64, scratch_operands = 5 : i64, tpu.core_type = #tpu.core_type<tc>} {
    %cst = arith.constant 0.000000e+00 : f32
    %0 = vector.broadcast %cst : f32 to vector<22x80xf32>
    %c0 = arith.constant 0 : index
    %c0_0 = arith.constant 0 : index
    %1 = vector.load %arg7[%c0, %c0_0] : memref<22x80xf32, #tpu.memory_space<vmem>>, vector<22x80xf32>
    tpu.vector_store %arg7[%c0, %c0_0], %0 {strides = array<i32>} : memref<22x80xf32, #tpu.memory_space<vmem>>, vector<22x80xf32>,
    %cst_1 = arith.constant 0.000000e+00 : f32
    %2 = vector.broadcast %cst_1 : f32 to vector<14x96xf32>
    %c0_2 = arith.constant 0 : index
    %c0_3 = arith.constant 0 : index
    %3 = vector.load %arg9[%c0_2, %c0_3] : memref<14x96xf32, #tpu.memory_space<vmem>>, vector<14x96xf32>
    tpu.vector_store %arg9[%c0_2, %c0_3], %2 {strides = array<i32>} : memref<14x96xf32, #tpu.memory_space<vmem>>, vector<14x96xf32>,
    %c0_4 = arith.constant 0 : index
    %c0_5 = arith.constant 0 : index
    %4 = vector.load %arg0[%c0_4, %c0_5] : memref<44x20xf32, #tpu.memory_space<vmem>>, vector<40x16xf32>
    %c0_6 = arith.constant 0 : index
    %c0_7 = arith.constant 0 : index
    %5 = vector.load %arg6[%c0_6, %c0_7] : memref<40x400xf32, #tpu.memory_space<vmem>>, vector<40x16xf32>
    tpu.vector_store %arg6[%c0_6, %c0_7], %4 {strides = array<i32>} : memref<40x400xf32, #tpu.memory_space<vmem>>, vector<40x16xf32>,
    %c0_8 = arith.constant 0 : index
    %c1 = arith.constant 1 : index
    %6 = vector.load %arg0[%c0_8, %c1] : memref<44x20xf32, #tpu.memory_space<vmem>>, vector<40x16xf32>
    %c0_9 = arith.constant 0 : index
    %c16 = arith.constant 16 : index
    %7 = vector.load %arg6[%c0_9, %c16] : memref<40x400xf32, #tpu.memory_space<vmem>>, vector<40x16xf32>
    tpu.vector_store %arg6[%c0_9, %c16], %6 {strides = array<i32>} : memref<40x400xf32, #tpu.memory_space<vmem>>, vector<40x16xf32>,
    %c0_10 = arith.constant 0 : index
    %c2 = arith.constant 2 : index
    %8 = vector.load %arg0[%c0_10, %c2] : memref<44x20xf32, #tpu.memory_space<vmem>>, vector<40x16xf32>
    %c0_11 = arith.constant 0 : index
    %c32 = arith.constant 32 : index
    %9 = vector.load %arg6[%c0_11, %c32] : memref<40x400xf32, #tpu.memory_space<vmem>>, vector<40x16xf32>
    tpu.vector_store %arg6[%c0_11, %c32], %8 {strides = array<i32>} : memref<40x400xf32, #tpu.memory_space<vmem>>, vector<40x16xf32>,
    %c0_12 = arith.constant 0 : index
    %c3 = arith.constant 3 : index
    %10 = vector.load %arg0[%c0_12, %c3] : memref<44x20xf32, #tpu.memory_space<vmem>>, vector<40x16xf32>
    %c0_13 = arith.constant 0 : index
    %c48 = arith.constant 48 : index
    %11 = vector.load %arg6[%c0_13, %c48] : memref<40x400xf32, #tpu.memory_space<vmem>>, vector<40x16xf32>
    tpu.vector_store %arg6[%c0_13, %c48], %10 {strides = array<i32>} : memref<40x400xf32, #tpu.memory_space<vmem>>, vector<40x16xf32>,
    %c0_14 = arith.constant 0 : index
    %c4 = arith.constant 4 : index
    %12 = vector.load %arg0[%c0_14, %c4] : memref<44x20xf32, #tpu.memory_space<vmem>>, vector<40x16xf32>
    %c0_15 = arith.constant 0 : index
    %c64 = arith.constant 64 : index
    %13 = vector.load %arg6[%c0_15, %c64] : memref<40x400xf32, #tpu.memory_space<vmem>>, vector<40x16xf32>
    tpu.vector_store %arg6[%c0_15, %c64], %12 {strides = array<i32>} : memref<40x400xf32, #tpu.memory_space<vmem>>, vector<40x16xf32>,
    %c1_16 = arith.constant 1 : index
    %c0_17 = arith.constant 0 : index
    %14 = vector.load %arg0[%c1_16, %c0_17] : memref<44x20xf32, #tpu.memory_space<vmem>>, vector<40x16xf32>
    %c0_18 = arith.constant 0 : index
    %c80 = arith.constant 80 : index
    %15 = vector.load %arg6[%c0_18, %c80] : memref<40x400xf32, #tpu.memory_space<vmem>>, vector<40x16xf32>
    tpu.vector_store %arg6[%c0_18, %c80], %14 {strides = array<i32>} : memref<40x400xf32, #tpu.memory_space<vmem>>, vector<40x16xf32>,
    %c1_19 = arith.constant 1 : index
    %c1_20 = arith.constant 1 : index
    %16 = vector.load %arg0[%c1_19, %c1_20] : memref<44x20xf32, #tpu.memory_space<vmem>>, vector<40x16xf32>
    %c0_21 = arith.constant 0 : index
    %c96 = arith.constant 96 : index
    %17 = vector.load %arg6[%c0_21, %c96] : memref<40x400xf32, #tpu.memory_space<vmem>>, vector<40x16xf32>
    tpu.vector_store %arg6[%c0_21, %c96], %16 {strides = array<i32>} : memref<40x400xf32, #tpu.memory_space<vmem>>, vector<40x16xf32>,
    %c1_22 = arith.constant 1 : index
    %c2_23 = arith.constant 2 : index
    %18 = vector.load %arg0[%c1_22, %c2_23] : memref<44x20xf32, #tpu.memory_space<vmem>>, vector<40x16xf32>
    %c0_24 = arith.constant 0 : index
    %c112 = arith.constant 112 : index
    %19 = vector.load %arg6[%c0_24, %c112] : memref<40x400xf32, #tpu.memory_space<vmem>>, vector<40x16xf32>
    tpu.vector_store %arg6[%c0_24, %c112], %18 {strides = array<i32>} : memref<40x400xf32, #tpu.memory_space<vmem>>, vector<40x16xf32>,
    %c1_25 = arith.constant 1 : index
    %c3_26 = arith.constant 3 : index
    %20 = vector.load %arg0[%c1_25, %c3_26] : memref<44x20xf32, #tpu.memory_space<vmem>>, vector<40x16xf32>
    %c0_27 = arith.constant 0 : index
    %c128 = arith.constant 128 : index
    %21 = vector.load %arg6[%c0_27, %c128] : memref<40x400xf32, #tpu.memory_space<vmem>>, vector<40x16xf32>
    tpu.vector_store %arg6[%c0_27, %c128], %20 {strides = array<i32>} : memref<40x400xf32, #tpu.memory_space<vmem>>, vector<40x16xf32>,
    %c1_28 = arith.constant 1 : index
    %c4_29 = arith.constant 4 : index
    %22 = vector.load %arg0[%c1_28, %c4_29] : memref<44x20xf32, #tpu.memory_space<vmem>>, vector<40x16xf32>
    %c0_30 = arith.constant 0 : index
    %c144 = arith.constant 144 : index
    %23 = vector.load %arg6[%c0_30, %c144] : memref<40x400xf32, #tpu.memory_space<vmem>>, vector<40x16xf32>
    tpu.vector_store %arg6[%c0_30, %c144], %22 {strides = array<i32>} : memref<40x400xf32, #tpu.memory_space<vmem>>, vector<40x16xf32>,
    %c2_31 = arith.constant 2 : index
    %c0_32 = arith.constant 0 : index
    %24 = vector.load %arg0[%c2_31, %c0_32] : memref<44x20xf32, #tpu.memory_space<vmem>>, vector<40x16xf32>
    %c0_33 = arith.constant 0 : index
    %c160 = arith.constant 160 : index
    %25 = vector.load %arg6[%c0_33, %c160] : memref<40x400xf32, #tpu.memory_space<vmem>>, vector<40x16xf32>
    tpu.vector_store %arg6[%c0_33, %c160], %24 {strides = array<i32>} : memref<40x400xf32, #tpu.memory_space<vmem>>, vector<40x16xf32>,
    %c2_34 = arith.constant 2 : index
    %c1_35 = arith.constant 1 : index
    %26 = vector.load %arg0[%c2_34, %c1_35] : memref<44x20xf32, #tpu.memory_space<vmem>>, vector<40x16xf32>
    %c0_36 = arith.constant 0 : index
    %c176 = arith.constant 176 : index
    %27 = vector.load %arg6[%c0_36, %c176] : memref<40x400xf32, #tpu.memory_space<vmem>>, vector<40x16xf32>
    tpu.vector_store %arg6[%c0_36, %c176], %26 {strides = array<i32>} : memref<40x400xf32, #tpu.memory_space<vmem>>, vector<40x16xf32>,
    %c2_37 = arith.constant 2 : index
    %c2_38 = arith.constant 2 : index
    %28 = vector.load %arg0[%c2_37, %c2_38] : memref<44x20xf32, #tpu.memory_space<vmem>>, vector<40x16xf32>
    %c0_39 = arith.constant 0 : index
    %c192 = arith.constant 192 : index
    %29 = vector.load %arg6[%c0_39, %c192] : memref<40x400xf32, #tpu.memory_space<vmem>>, vector<40x16xf32>
    tpu.vector_store %arg6[%c0_39, %c192], %28 {strides = array<i32>} : memref<40x400xf32, #tpu.memory_space<vmem>>, vector<40x16xf32>,
    %c2_40 = arith.constant 2 : index
    %c3_41 = arith.constant 3 : index
    %30 = vector.load %arg0[%c2_40, %c3_41] : memref<44x20xf32, #tpu.memory_space<vmem>>, vector<40x16xf32>
    %c0_42 = arith.constant 0 : index
    %c208 = arith.constant 208 : index
    %31 = vector.load %arg6[%c0_42, %c208] : memref<40x400xf32, #tpu.memory_space<vmem>>, vector<40x16xf32>
    tpu.vector_store %arg6[%c0_42, %c208], %30 {strides = array<i32>} : memref<40x400xf32, #tpu.memory_space<vmem>>, vector<40x16xf32>,
    %c2_43 = arith.constant 2 : index
    %c4_44 = arith.constant 4 : index
    %32 = vector.load %arg0[%c2_43, %c4_44] : memref<44x20xf32, #tpu.memory_space<vmem>>, vector<40x16xf32>
    %c0_45 = arith.constant 0 : index
    %c224 = arith.constant 224 : index
    %33 = vector.load %arg6[%c0_45, %c224] : memref<40x400xf32, #tpu.memory_space<vmem>>, vector<40x16xf32>
    tpu.vector_store %arg6[%c0_45, %c224], %32 {strides = array<i32>} : memref<40x400xf32, #tpu.memory_space<vmem>>, vector<40x16xf32>,
    %c3_46 = arith.constant 3 : index
    %c0_47 = arith.constant 0 : index
    %34 = vector.load %arg0[%c3_46, %c0_47] : memref<44x20xf32, #tpu.memory_space<vmem>>, vector<40x16xf32>
    %c0_48 = arith.constant 0 : index
    %c240 = arith.constant 240 : index
    %35 = vector.load %arg6[%c0_48, %c240] : memref<40x400xf32, #tpu.memory_space<vmem>>, vector<40x16xf32>
    tpu.vector_store %arg6[%c0_48, %c240], %34 {strides = array<i32>} : memref<40x400xf32, #tpu.memory_space<vmem>>, vector<40x16xf32>,
    %c3_49 = arith.constant 3 : index
    %c1_50 = arith.constant 1 : index
    %36 = vector.load %arg0[%c3_49, %c1_50] : memref<44x20xf32, #tpu.memory_space<vmem>>, vector<40x16xf32>
    %c0_51 = arith.constant 0 : index
    %c256 = arith.constant 256 : index
    %37 = vector.load %arg6[%c0_51, %c256] : memref<40x400xf32, #tpu.memory_space<vmem>>, vector<40x16xf32>
    tpu.vector_store %arg6[%c0_51, %c256], %36 {strides = array<i32>} : memref<40x400xf32, #tpu.memory_space<vmem>>, vector<40x16xf32>,
    %c3_52 = arith.constant 3 : index
    %c2_53 = arith.constant 2 : index
    %38 = vector.load %arg0[%c3_52, %c2_53] : memref<44x20xf32, #tpu.memory_space<vmem>>, vector<40x16xf32>
    %c0_54 = arith.constant 0 : index
    %c272 = arith.constant 272 : index
    %39 = vector.load %arg6[%c0_54, %c272] : memref<40x400xf32, #tpu.memory_space<vmem>>, vector<40x16xf32>
    tpu.vector_store %arg6[%c0_54, %c272], %38 {strides = array<i32>} : memref<40x400xf32, #tpu.memory_space<vmem>>, vector<40x16xf32>,
    %c3_55 = arith.constant 3 : index
    %c3_56 = arith.constant 3 : index
    %40 = vector.load %arg0[%c3_55, %c3_56] : memref<44x20xf32, #tpu.memory_space<vmem>>, vector<40x16xf32>
    %c0_57 = arith.constant 0 : index
    %c288 = arith.constant 288 : index
    %41 = vector.load %arg6[%c0_57, %c288] : memref<40x400xf32, #tpu.memory_space<vmem>>, vector<40x16xf32>
    tpu.vector_store %arg6[%c0_57, %c288], %40 {strides = array<i32>} : memref<40x400xf32, #tpu.memory_space<vmem>>, vector<40x16xf32>,
    %c3_58 = arith.constant 3 : index
    %c4_59 = arith.constant 4 : index
    %42 = vector.load %arg0[%c3_58, %c4_59] : memref<44x20xf32, #tpu.memory_space<vmem>>, vector<40x16xf32>
    %c0_60 = arith.constant 0 : index
    %c304 = arith.constant 304 : index
    %43 = vector.load %arg6[%c0_60, %c304] : memref<40x400xf32, #tpu.memory_space<vmem>>, vector<40x16xf32>
    tpu.vector_store %arg6[%c0_60, %c304], %42 {strides = array<i32>} : memref<40x400xf32, #tpu.memory_space<vmem>>, vector<40x16xf32>,
    %c4_61 = arith.constant 4 : index
    %c0_62 = arith.constant 0 : index
    %44 = vector.load %arg0[%c4_61, %c0_62] : memref<44x20xf32, #tpu.memory_space<vmem>>, vector<40x16xf32>
    %c0_63 = arith.constant 0 : index
    %c320 = arith.constant 320 : index
    %45 = vector.load %arg6[%c0_63, %c320] : memref<40x400xf32, #tpu.memory_space<vmem>>, vector<40x16xf32>
    tpu.vector_store %arg6[%c0_63, %c320], %44 {strides = array<i32>} : memref<40x400xf32, #tpu.memory_space<vmem>>, vector<40x16xf32>,
    %c4_64 = arith.constant 4 : index
    %c1_65 = arith.constant 1 : index
    %46 = vector.load %arg0[%c4_64, %c1_65] : memref<44x20xf32, #tpu.memory_space<vmem>>, vector<40x16xf32>
    %c0_66 = arith.constant 0 : index
    %c336 = arith.constant 336 : index
    %47 = vector.load %arg6[%c0_66, %c336] : memref<40x400xf32, #tpu.memory_space<vmem>>, vector<40x16xf32>
    tpu.vector_store %arg6[%c0_66, %c336], %46 {strides = array<i32>} : memref<40x400xf32, #tpu.memory_space<vmem>>, vector<40x16xf32>,
    %c4_67 = arith.constant 4 : index
    %c2_68 = arith.constant 2 : index
    %48 = vector.load %arg0[%c4_67, %c2_68] : memref<44x20xf32, #tpu.memory_space<vmem>>, vector<40x16xf32>
    %c0_69 = arith.constant 0 : index
    %c352 = arith.constant 352 : index
    %49 = vector.load %arg6[%c0_69, %c352] : memref<40x400xf32, #tpu.memory_space<vmem>>, vector<40x16xf32>
    tpu.vector_store %arg6[%c0_69, %c352], %48 {strides = array<i32>} : memref<40x400xf32, #tpu.memory_space<vmem>>, vector<40x16xf32>,
    %c4_70 = arith.constant 4 : index
    %c3_71 = arith.constant 3 : index
    %50 = vector.load %arg0[%c4_70, %c3_71] : memref<44x20xf32, #tpu.memory_space<vmem>>, vector<40x16xf32>
    %c0_72 = arith.constant 0 : index
    %c368 = arith.constant 368 : index
    %51 = vector.load %arg6[%c0_72, %c368] : memref<40x400xf32, #tpu.memory_space<vmem>>, vector<40x16xf32>
    tpu.vector_store %arg6[%c0_72, %c368], %50 {strides = array<i32>} : memref<40x400xf32, #tpu.memory_space<vmem>>, vector<40x16xf32>,
    %c4_73 = arith.constant 4 : index
    %c4_74 = arith.constant 4 : index
    %52 = vector.load %arg0[%c4_73, %c4_74] : memref<44x20xf32, #tpu.memory_space<vmem>>, vector<40x16xf32>
    %c0_75 = arith.constant 0 : index
    %c384 = arith.constant 384 : index
    %53 = vector.load %arg6[%c0_75, %c384] : memref<40x400xf32, #tpu.memory_space<vmem>>, vector<40x16xf32>
    tpu.vector_store %arg6[%c0_75, %c384], %52 {strides = array<i32>} : memref<40x400xf32, #tpu.memory_space<vmem>>, vector<40x16xf32>,
    %c0_76 = arith.constant 0 : index
    %c0_77 = arith.constant 0 : index
    %54 = vector.load %arg6[%c0_76, %c0_77] : memref<40x400xf32, #tpu.memory_space<vmem>>, vector<40x400xf32>
    %c0_78 = arith.constant 0 : index
    %c0_79 = arith.constant 0 : index
    %c0_80 = arith.constant 0 : index
    %55 = vector.load %arg1[%c0_78, %c0_79, %c0_80] : memref<2x400x64xf32, #tpu.memory_space<vmem>>, vector<1x400x64xf32>
    %56 = vector.shape_cast %55 : vector<1x400x64xf32> to vector<400x64xf32>
    %cst_81 = arith.constant dense<0.000000e+00> : vector<40x64xf32>
    %57 = tpu.matmul %54, %56, %cst_81 {dimension_numbers = #tpu.dot_dimension_numbers<[1], [0], [0], [1], [0, 0, 1, 1], [], []>} : vector<40x400xf32>, vector<400x64xf32>, vector<40x64xf32> -> vector<40x64xf32>
    %c1_82 = arith.constant 1 : index
    %c0_83 = arith.constant 0 : index
    %c0_84 = arith.constant 0 : index
    %58 = vector.load %arg1[%c1_82, %c0_83, %c0_84] : memref<2x400x64xf32, #tpu.memory_space<vmem>>, vector<1x400x64xf32>
    %59 = vector.shape_cast %58 : vector<1x400x64xf32> to vector<400x64xf32>
    %cst_85 = arith.constant dense<0.000000e+00> : vector<40x64xf32>
    %60 = tpu.matmul %54, %59, %cst_85 {dimension_numbers = #tpu.dot_dimension_numbers<[1], [0], [0], [1], [0, 0, 1, 1], [], []>} : vector<40x400xf32>, vector<400x64xf32>, vector<40x64xf32> -> vector<40x64xf32>
    %61 = arith.maximumf %57, %60 : vector<40x64xf32>
    %62 = tpu.iota {dimensions = array<i32: 0>} : vector<16x40xi32>
    %63 = tpu.iota {dimensions = array<i32: 1>} : vector<16x40xi32>
    %c3_i32 = arith.constant 3 : i32
    %64 = vector.broadcast %c3_i32 : i32 to vector<16x40xi32>
    %65 = arith.shrsi %62, %64 : vector<16x40xi32>
    %c7_i32 = arith.constant 7 : i32
    %66 = vector.broadcast %c7_i32 : i32 to vector<16x40xi32>
    %67 = arith.andi %62, %66 : vector<16x40xi32>
    %c20_i32 = arith.constant 20 : i32
    %68 = vector.broadcast %c20_i32 : i32 to vector<16x40xi32>
    %69 = arith.muli %65, %68 : vector<16x40xi32>
    %c2_i32 = arith.constant 2 : i32
    %70 = vector.broadcast %c2_i32 : i32 to vector<16x40xi32>
    %71 = arith.muli %70, %67 : vector<16x40xi32>
    %72 = arith.addi %69, %71 : vector<16x40xi32>
    %73 = arith.cmpi eq, %63, %72 : vector<16x40xi32>
    %cst_86 = arith.constant 1.000000e+00 : f32
    %cst_87 = arith.constant 0.000000e+00 : f32
    %74 = vector.broadcast %cst_86 : f32 to vector<16x40xf32>
    %75 = vector.broadcast %cst_87 : f32 to vector<16x40xf32>
    %76 = arith.select %73, %74, %75 : vector<16x40xi1>, vector<16x40xf32>
    %c1_i32 = arith.constant 1 : i32
    %77 = vector.broadcast %c1_i32 : i32 to vector<16x40xi32>
    %78 = arith.addi %72, %77 : vector<16x40xi32>
    %79 = arith.cmpi eq, %63, %78 : vector<16x40xi32>
    %cst_88 = arith.constant 1.000000e+00 : f32
    %cst_89 = arith.constant 0.000000e+00 : f32
    %80 = vector.broadcast %cst_88 : f32 to vector<16x40xf32>
    %81 = vector.broadcast %cst_89 : f32 to vector<16x40xf32>
    %82 = arith.select %79, %80, %81 : vector<16x40xi1>, vector<16x40xf32>
    %cst_90 = arith.constant dense<0.000000e+00> : vector<16x64xf32>
    %83 = tpu.matmul %76, %61, %cst_90 {dimension_numbers = #tpu.dot_dimension_numbers<[1], [0], [0], [1], [0, 0, 1, 1], [], []>} : vector<16x40xf32>, vector<40x64xf32>, vector<16x64xf32> -> vector<16x64xf32>
    %cst_91 = arith.constant dense<0.000000e+00> : vector<16x64xf32>
    %84 = tpu.matmul %82, %61, %cst_91 {dimension_numbers = #tpu.dot_dimension_numbers<[1], [0], [0], [1], [0, 0, 1, 1], [], []>} : vector<16x40xf32>, vector<40x64xf32>, vector<16x64xf32> -> vector<16x64xf32>
    %85 = arith.maximumf %83, %84 : vector<16x64xf32>
    %c0_92 = arith.constant 0 : index
    %c0_93 = arith.constant 0 : index
    %86 = vector.load %arg4[%c0_92, %c0_93] : memref<5x16xf32, #tpu.memory_space<vmem>>, vector<1x8xf32>
    %c1_94 = arith.constant 1 : index
    %c0_95 = arith.constant 0 : index
    %87 = vector.load %arg4[%c1_94, %c0_95] : memref<5x16xf32, #tpu.memory_space<vmem>>, vector<1x8xf32>
    %88 = tpu.iota {dimensions = array<i32: 0>} : vector<64x8xi32>
    %89 = tpu.iota {dimensions = array<i32: 1>} : vector<64x8xi32>
    %c7_i32_96 = arith.constant 7 : i32
    %90 = vector.broadcast %c7_i32_96 : i32 to vector<64x8xi32>
    %91 = arith.andi %88, %90 : vector<64x8xi32>
    %92 = arith.cmpi eq, %91, %89 : vector<64x8xi32>
    %cst_97 = arith.constant 1.000000e+00 : f32
    %cst_98 = arith.constant 0.000000e+00 : f32
    %93 = vector.broadcast %cst_97 : f32 to vector<64x8xf32>
    %94 = vector.broadcast %cst_98 : f32 to vector<64x8xf32>
    %95 = arith.select %92, %93, %94 : vector<64x8xi1>, vector<64x8xf32>
    %96 = tpu.iota {dimensions = array<i32: 0>} : vector<8x64xi32>
    %97 = tpu.iota {dimensions = array<i32: 1>} : vector<8x64xi32>
    %c7_i32_99 = arith.constant 7 : i32
    %98 = vector.broadcast %c7_i32_99 : i32 to vector<8x64xi32>
    %99 = arith.andi %97, %98 : vector<8x64xi32>
    %100 = arith.cmpi eq, %96, %99 : vector<8x64xi32>
    %cst_100 = arith.constant 1.000000e+00 : f32
    %cst_101 = arith.constant 0.000000e+00 : f32
    %101 = vector.broadcast %cst_100 : f32 to vector<8x64xf32>
    %102 = vector.broadcast %cst_101 : f32 to vector<8x64xf32>
    %103 = arith.select %100, %101, %102 : vector<8x64xi1>, vector<8x64xf32>
    %cst_102 = arith.constant dense<0.000000e+00> : vector<64xf32>
    %104 = vector.multi_reduction <add>, %85, %cst_102 [0] : vector<16x64xf32> to vector<64xf32>
    %105 = vector.shape_cast %104 : vector<64xf32> to vector<1x64xf32>
    %cst_103 = arith.constant dense<0.000000e+00> : vector<1x8xf32>
    %106 = tpu.matmul %105, %95, %cst_103 {dimension_numbers = #tpu.dot_dimension_numbers<[1], [0], [0], [1], [0, 0, 1, 1], [], []>} : vector<1x64xf32>, vector<64x8xf32>, vector<1x8xf32> -> vector<1x8xf32>
    %107 = arith.mulf %85, %85 : vector<16x64xf32>
    %cst_104 = arith.constant dense<0.000000e+00> : vector<64xf32>
    %108 = vector.multi_reduction <add>, %107, %cst_104 [0] : vector<16x64xf32> to vector<64xf32>
    %109 = vector.shape_cast %108 : vector<64xf32> to vector<1x64xf32>
    %cst_105 = arith.constant dense<0.000000e+00> : vector<1x8xf32>
    %110 = tpu.matmul %109, %95, %cst_105 {dimension_numbers = #tpu.dot_dimension_numbers<[1], [0], [0], [1], [0, 0, 1, 1], [], []>} : vector<1x64xf32>, vector<64x8xf32>, vector<1x8xf32> -> vector<1x8xf32>
    %cst_106 = arith.constant 7.812500e-03 : f32
    %111 = vector.broadcast %cst_106 : f32 to vector<1x8xf32>
    %112 = arith.mulf %106, %111 : vector<1x8xf32>
    %cst_107 = arith.constant 7.812500e-03 : f32
    %113 = vector.broadcast %cst_107 : f32 to vector<1x8xf32>
    %114 = arith.mulf %110, %113 : vector<1x8xf32>
    %115 = arith.mulf %112, %112 : vector<1x8xf32>
    %116 = arith.subf %114, %115 : vector<1x8xf32>
    %cst_108 = arith.constant 9.99999974E-6 : f32
    %117 = vector.broadcast %cst_108 : f32 to vector<1x8xf32>
    %118 = arith.addf %116, %117 : vector<1x8xf32>
    %119 = math.rsqrt %118 : vector<1x8xf32>
    %120 = arith.mulf %86, %119 : vector<1x8xf32>
    %121 = arith.mulf %112, %120 : vector<1x8xf32>
    %122 = arith.subf %87, %121 : vector<1x8xf32>
    %cst_109 = arith.constant dense<0.000000e+00> : vector<1x64xf32>
    %123 = tpu.matmul %120, %103, %cst_109 {dimension_numbers = #tpu.dot_dimension_numbers<[1], [0], [0], [1], [0, 0, 1, 1], [], []>} : vector<1x8xf32>, vector<8x64xf32>, vector<1x64xf32> -> vector<1x64xf32>
    %cst_110 = arith.constant dense<0.000000e+00> : vector<1x64xf32>
    %124 = tpu.matmul %122, %103, %cst_110 {dimension_numbers = #tpu.dot_dimension_numbers<[1], [0], [0], [1], [0, 0, 1, 1], [], []>} : vector<1x8xf32>, vector<8x64xf32>, vector<1x64xf32> -> vector<1x64xf32>
    %125 = vector.broadcast %123 : vector<1x64xf32> to vector<16x64xf32>
    %126 = arith.mulf %85, %125 : vector<16x64xf32>
    %127 = vector.broadcast %124 : vector<1x64xf32> to vector<16x64xf32>
    %128 = arith.addf %126, %127 : vector<16x64xf32>
    %cst_111 = arith.constant 0.000000e+00 : f32
    %129 = vector.broadcast %cst_111 : f32 to vector<16x64xf32>
    %130 = arith.maximumf %128, %129 : vector<16x64xf32>
    %131 = vector.extract_strided_slice %130 {offsets = [0, 0], sizes = [8, 64], strides = [1, 1]} : vector<16x64xf32> to vector<8x64xf32>
    %c1_112 = arith.constant 1 : index
    %c8 = arith.constant 8 : index
    %132 = vector.load %arg7[%c1_112, %c8] : memref<22x80xf32, #tpu.memory_space<vmem>>, vector<8x64xf32>
    tpu.vector_store %arg7[%c1_112, %c8], %131 {strides = array<i32>} : memref<22x80xf32, #tpu.memory_space<vmem>>, vector<8x64xf32>,
    %133 = vector.extract_strided_slice %130 {offsets = [8, 0], sizes = [8, 64], strides = [1, 1]} : vector<16x64xf32> to vector<8x64xf32>
    %c11 = arith.constant 11 : index
    %c8_113 = arith.constant 8 : index
    %134 = vector.load %arg7[%c11, %c8_113] : memref<22x80xf32, #tpu.memory_space<vmem>>, vector<8x64xf32>
    tpu.vector_store %arg7[%c11, %c8_113], %133 {strides = array<i32>} : memref<22x80xf32, #tpu.memory_space<vmem>>, vector<8x64xf32>,
    %c0_114 = arith.constant 0 : index
    %c0_115 = arith.constant 0 : index
    %135 = vector.load %arg7[%c0_114, %c0_115] : memref<22x80xf32, #tpu.memory_space<vmem>>, vector<20x64xf32>
    %c0_116 = arith.constant 0 : index
    %c0_117 = arith.constant 0 : index
    %136 = vector.load %arg8[%c0_116, %c0_117] : memref<20x576xf32, #tpu.memory_space<vmem>>, vector<20x64xf32>
    tpu.vector_store %arg8[%c0_116, %c0_117], %135 {strides = array<i32>} : memref<20x576xf32, #tpu.memory_space<vmem>>, vector<20x64xf32>,
    %c0_118 = arith.constant 0 : index
    %c8_119 = arith.constant 8 : index
    %137 = vector.load %arg7[%c0_118, %c8_119] : memref<22x80xf32, #tpu.memory_space<vmem>>, vector<20x64xf32>
    %c0_120 = arith.constant 0 : index
    %c64_121 = arith.constant 64 : index
    %138 = vector.load %arg8[%c0_120, %c64_121] : memref<20x576xf32, #tpu.memory_space<vmem>>, vector<20x64xf32>
    tpu.vector_store %arg8[%c0_120, %c64_121], %137 {strides = array<i32>} : memref<20x576xf32, #tpu.memory_space<vmem>>, vector<20x64xf32>,
    %c0_122 = arith.constant 0 : index
    %c16_123 = arith.constant 16 : index
    %139 = vector.load %arg7[%c0_122, %c16_123] : memref<22x80xf32, #tpu.memory_space<vmem>>, vector<20x64xf32>
    %c0_124 = arith.constant 0 : index
    %c128_125 = arith.constant 128 : index
    %140 = vector.load %arg8[%c0_124, %c128_125] : memref<20x576xf32, #tpu.memory_space<vmem>>, vector<20x64xf32>
    tpu.vector_store %arg8[%c0_124, %c128_125], %139 {strides = array<i32>} : memref<20x576xf32, #tpu.memory_space<vmem>>, vector<20x64xf32>,
    %c1_126 = arith.constant 1 : index
    %c0_127 = arith.constant 0 : index
    %141 = vector.load %arg7[%c1_126, %c0_127] : memref<22x80xf32, #tpu.memory_space<vmem>>, vector<20x64xf32>
    %c0_128 = arith.constant 0 : index
    %c192_129 = arith.constant 192 : index
    %142 = vector.load %arg8[%c0_128, %c192_129] : memref<20x576xf32, #tpu.memory_space<vmem>>, vector<20x64xf32>
    tpu.vector_store %arg8[%c0_128, %c192_129], %141 {strides = array<i32>} : memref<20x576xf32, #tpu.memory_space<vmem>>, vector<20x64xf32>,
    %c1_130 = arith.constant 1 : index
    %c8_131 = arith.constant 8 : index
    %143 = vector.load %arg7[%c1_130, %c8_131] : memref<22x80xf32, #tpu.memory_space<vmem>>, vector<20x64xf32>
    %c0_132 = arith.constant 0 : index
    %c256_133 = arith.constant 256 : index
    %144 = vector.load %arg8[%c0_132, %c256_133] : memref<20x576xf32, #tpu.memory_space<vmem>>, vector<20x64xf32>
    tpu.vector_store %arg8[%c0_132, %c256_133], %143 {strides = array<i32>} : memref<20x576xf32, #tpu.memory_space<vmem>>, vector<20x64xf32>,
    %c1_134 = arith.constant 1 : index
    %c16_135 = arith.constant 16 : index
    %145 = vector.load %arg7[%c1_134, %c16_135] : memref<22x80xf32, #tpu.memory_space<vmem>>, vector<20x64xf32>
    %c0_136 = arith.constant 0 : index
    %c320_137 = arith.constant 320 : index
    %146 = vector.load %arg8[%c0_136, %c320_137] : memref<20x576xf32, #tpu.memory_space<vmem>>, vector<20x64xf32>
    tpu.vector_store %arg8[%c0_136, %c320_137], %145 {strides = array<i32>} : memref<20x576xf32, #tpu.memory_space<vmem>>, vector<20x64xf32>,
    %c2_138 = arith.constant 2 : index
    %c0_139 = arith.constant 0 : index
    %147 = vector.load %arg7[%c2_138, %c0_139] : memref<22x80xf32, #tpu.memory_space<vmem>>, vector<20x64xf32>
    %c0_140 = arith.constant 0 : index
    %c384_141 = arith.constant 384 : index
    %148 = vector.load %arg8[%c0_140, %c384_141] : memref<20x576xf32, #tpu.memory_space<vmem>>, vector<20x64xf32>
    tpu.vector_store %arg8[%c0_140, %c384_141], %147 {strides = array<i32>} : memref<20x576xf32, #tpu.memory_space<vmem>>, vector<20x64xf32>,
    %c2_142 = arith.constant 2 : index
    %c8_143 = arith.constant 8 : index
    %149 = vector.load %arg7[%c2_142, %c8_143] : memref<22x80xf32, #tpu.memory_space<vmem>>, vector<20x64xf32>
    %c0_144 = arith.constant 0 : index
    %c448 = arith.constant 448 : index
    %150 = vector.load %arg8[%c0_144, %c448] : memref<20x576xf32, #tpu.memory_space<vmem>>, vector<20x64xf32>
    tpu.vector_store %arg8[%c0_144, %c448], %149 {strides = array<i32>} : memref<20x576xf32, #tpu.memory_space<vmem>>, vector<20x64xf32>,
    %c2_145 = arith.constant 2 : index
    %c16_146 = arith.constant 16 : index
    %151 = vector.load %arg7[%c2_145, %c16_146] : memref<22x80xf32, #tpu.memory_space<vmem>>, vector<20x64xf32>
    %c0_147 = arith.constant 0 : index
    %c512 = arith.constant 512 : index
    %152 = vector.load %arg8[%c0_147, %c512] : memref<20x576xf32, #tpu.memory_space<vmem>>, vector<20x64xf32>
    tpu.vector_store %arg8[%c0_147, %c512], %151 {strides = array<i32>} : memref<20x576xf32, #tpu.memory_space<vmem>>, vector<20x64xf32>,
    %c0_148 = arith.constant 0 : index
    %c0_149 = arith.constant 0 : index
    %153 = vector.load %arg8[%c0_148, %c0_149] : memref<20x576xf32, #tpu.memory_space<vmem>>, vector<20x576xf32>
    %c0_150 = arith.constant 0 : index
    %c0_151 = arith.constant 0 : index
    %c0_152 = arith.constant 0 : index
    %154 = vector.load %arg2[%c0_150, %c0_151, %c0_152] : memref<2x576x64xf32, #tpu.memory_space<vmem>>, vector<1x576x64xf32>
    %155 = vector.shape_cast %154 : vector<1x576x64xf32> to vector<576x64xf32>
    %cst_153 = arith.constant dense<0.000000e+00> : vector<20x64xf32>
    %156 = tpu.matmul %153, %155, %cst_153 {dimension_numbers = #tpu.dot_dimension_numbers<[1], [0], [0], [1], [0, 0, 1, 1], [], []>} : vector<20x576xf32>, vector<576x64xf32>, vector<20x64xf32> -> vector<20x64xf32>
    %c1_154 = arith.constant 1 : index
    %c0_155 = arith.constant 0 : index
    %c0_156 = arith.constant 0 : index
    %157 = vector.load %arg2[%c1_154, %c0_155, %c0_156] : memref<2x576x64xf32, #tpu.memory_space<vmem>>, vector<1x576x64xf32>
    %158 = vector.shape_cast %157 : vector<1x576x64xf32> to vector<576x64xf32>
    %cst_157 = arith.constant dense<0.000000e+00> : vector<20x64xf32>
    %159 = tpu.matmul %153, %158, %cst_157 {dimension_numbers = #tpu.dot_dimension_numbers<[1], [0], [0], [1], [0, 0, 1, 1], [], []>} : vector<20x576xf32>, vector<576x64xf32>, vector<20x64xf32> -> vector<20x64xf32>
    %160 = arith.maximumf %156, %159 : vector<20x64xf32>
    %161 = tpu.iota {dimensions = array<i32: 0>} : vector<8x20xi32>
    %162 = tpu.iota {dimensions = array<i32: 1>} : vector<8x20xi32>
    %c2_i32_158 = arith.constant 2 : i32
    %163 = vector.broadcast %c2_i32_158 : i32 to vector<8x20xi32>
    %164 = arith.shrsi %161, %163 : vector<8x20xi32>
    %c3_i32_159 = arith.constant 3 : i32
    %165 = vector.broadcast %c3_i32_159 : i32 to vector<8x20xi32>
    %166 = arith.andi %161, %165 : vector<8x20xi32>
    %c10_i32 = arith.constant 10 : i32
    %167 = vector.broadcast %c10_i32 : i32 to vector<8x20xi32>
    %168 = arith.muli %164, %167 : vector<8x20xi32>
    %c2_i32_160 = arith.constant 2 : i32
    %169 = vector.broadcast %c2_i32_160 : i32 to vector<8x20xi32>
    %170 = arith.muli %169, %166 : vector<8x20xi32>
    %171 = arith.addi %168, %170 : vector<8x20xi32>
    %172 = arith.cmpi eq, %162, %171 : vector<8x20xi32>
    %cst_161 = arith.constant 1.000000e+00 : f32
    %cst_162 = arith.constant 0.000000e+00 : f32
    %173 = vector.broadcast %cst_161 : f32 to vector<8x20xf32>
    %174 = vector.broadcast %cst_162 : f32 to vector<8x20xf32>
    %175 = arith.select %172, %173, %174 : vector<8x20xi1>, vector<8x20xf32>
    %c1_i32_163 = arith.constant 1 : i32
    %176 = vector.broadcast %c1_i32_163 : i32 to vector<8x20xi32>
    %177 = arith.addi %171, %176 : vector<8x20xi32>
    %178 = arith.cmpi eq, %162, %177 : vector<8x20xi32>
    %cst_164 = arith.constant 1.000000e+00 : f32
    %cst_165 = arith.constant 0.000000e+00 : f32
    %179 = vector.broadcast %cst_164 : f32 to vector<8x20xf32>
    %180 = vector.broadcast %cst_165 : f32 to vector<8x20xf32>
    %181 = arith.select %178, %179, %180 : vector<8x20xi1>, vector<8x20xf32>
    %cst_166 = arith.constant dense<0.000000e+00> : vector<8x64xf32>
    %182 = tpu.matmul %175, %160, %cst_166 {dimension_numbers = #tpu.dot_dimension_numbers<[1], [0], [0], [1], [0, 0, 1, 1], [], []>} : vector<8x20xf32>, vector<20x64xf32>, vector<8x64xf32> -> vector<8x64xf32>
    %cst_167 = arith.constant dense<0.000000e+00> : vector<8x64xf32>
    %183 = tpu.matmul %181, %160, %cst_167 {dimension_numbers = #tpu.dot_dimension_numbers<[1], [0], [0], [1], [0, 0, 1, 1], [], []>} : vector<8x20xf32>, vector<20x64xf32>, vector<8x64xf32> -> vector<8x64xf32>
    %184 = arith.maximumf %182, %183 : vector<8x64xf32>
    %c2_168 = arith.constant 2 : index
    %c0_169 = arith.constant 0 : index
    %185 = vector.load %arg4[%c2_168, %c0_169] : memref<5x16xf32, #tpu.memory_space<vmem>>, vector<1x16xf32>
    %c3_170 = arith.constant 3 : index
    %c0_171 = arith.constant 0 : index
    %186 = vector.load %arg4[%c3_170, %c0_171] : memref<5x16xf32, #tpu.memory_space<vmem>>, vector<1x16xf32>
    %187 = tpu.iota {dimensions = array<i32: 0>} : vector<64x16xi32>
    %188 = tpu.iota {dimensions = array<i32: 1>} : vector<64x16xi32>
    %c15_i32 = arith.constant 15 : i32
    %189 = vector.broadcast %c15_i32 : i32 to vector<64x16xi32>
    %190 = arith.andi %187, %189 : vector<64x16xi32>
    %191 = arith.cmpi eq, %190, %188 : vector<64x16xi32>
    %cst_172 = arith.constant 1.000000e+00 : f32
    %cst_173 = arith.constant 0.000000e+00 : f32
    %192 = vector.broadcast %cst_172 : f32 to vector<64x16xf32>
    %193 = vector.broadcast %cst_173 : f32 to vector<64x16xf32>
    %194 = arith.select %191, %192, %193 : vector<64x16xi1>, vector<64x16xf32>
    %195 = tpu.iota {dimensions = array<i32: 0>} : vector<16x64xi32>
    %196 = tpu.iota {dimensions = array<i32: 1>} : vector<16x64xi32>
    %c15_i32_174 = arith.constant 15 : i32
    %197 = vector.broadcast %c15_i32_174 : i32 to vector<16x64xi32>
    %198 = arith.andi %196, %197 : vector<16x64xi32>
    %199 = arith.cmpi eq, %195, %198 : vector<16x64xi32>
    %cst_175 = arith.constant 1.000000e+00 : f32
    %cst_176 = arith.constant 0.000000e+00 : f32
    %200 = vector.broadcast %cst_175 : f32 to vector<16x64xf32>
    %201 = vector.broadcast %cst_176 : f32 to vector<16x64xf32>
    %202 = arith.select %199, %200, %201 : vector<16x64xi1>, vector<16x64xf32>
    %cst_177 = arith.constant dense<0.000000e+00> : vector<64xf32>
    %203 = vector.multi_reduction <add>, %184, %cst_177 [0] : vector<8x64xf32> to vector<64xf32>
    %204 = vector.shape_cast %203 : vector<64xf32> to vector<1x64xf32>
    %cst_178 = arith.constant dense<0.000000e+00> : vector<1x16xf32>
    %205 = tpu.matmul %204, %194, %cst_178 {dimension_numbers = #tpu.dot_dimension_numbers<[1], [0], [0], [1], [0, 0, 1, 1], [], []>} : vector<1x64xf32>, vector<64x16xf32>, vector<1x16xf32> -> vector<1x16xf32>
    %206 = arith.mulf %184, %184 : vector<8x64xf32>
    %cst_179 = arith.constant dense<0.000000e+00> : vector<64xf32>
    %207 = vector.multi_reduction <add>, %206, %cst_179 [0] : vector<8x64xf32> to vector<64xf32>
    %208 = vector.shape_cast %207 : vector<64xf32> to vector<1x64xf32>
    %cst_180 = arith.constant dense<0.000000e+00> : vector<1x16xf32>
    %209 = tpu.matmul %208, %194, %cst_180 {dimension_numbers = #tpu.dot_dimension_numbers<[1], [0], [0], [1], [0, 0, 1, 1], [], []>} : vector<1x64xf32>, vector<64x16xf32>, vector<1x16xf32> -> vector<1x16xf32>
    %cst_181 = arith.constant 3.125000e-02 : f32
    %210 = vector.broadcast %cst_181 : f32 to vector<1x16xf32>
    %211 = arith.mulf %205, %210 : vector<1x16xf32>
    %cst_182 = arith.constant 3.125000e-02 : f32
    %212 = vector.broadcast %cst_182 : f32 to vector<1x16xf32>
    %213 = arith.mulf %209, %212 : vector<1x16xf32>
    %214 = arith.mulf %211, %211 : vector<1x16xf32>
    %215 = arith.subf %213, %214 : vector<1x16xf32>
    %cst_183 = arith.constant 9.99999974E-6 : f32
    %216 = vector.broadcast %cst_183 : f32 to vector<1x16xf32>
    %217 = arith.addf %215, %216 : vector<1x16xf32>
    %218 = math.rsqrt %217 : vector<1x16xf32>
    %219 = arith.mulf %185, %218 : vector<1x16xf32>
    %220 = arith.mulf %211, %219 : vector<1x16xf32>
    %221 = arith.subf %186, %220 : vector<1x16xf32>
    %cst_184 = arith.constant dense<0.000000e+00> : vector<1x64xf32>
    %222 = tpu.matmul %219, %202, %cst_184 {dimension_numbers = #tpu.dot_dimension_numbers<[1], [0], [0], [1], [0, 0, 1, 1], [], []>} : vector<1x16xf32>, vector<16x64xf32>, vector<1x64xf32> -> vector<1x64xf32>
    %cst_185 = arith.constant dense<0.000000e+00> : vector<1x64xf32>
    %223 = tpu.matmul %221, %202, %cst_185 {dimension_numbers = #tpu.dot_dimension_numbers<[1], [0], [0], [1], [0, 0, 1, 1], [], []>} : vector<1x16xf32>, vector<16x64xf32>, vector<1x64xf32> -> vector<1x64xf32>
    %224 = vector.broadcast %222 : vector<1x64xf32> to vector<8x64xf32>
    %225 = arith.mulf %184, %224 : vector<8x64xf32>
    %226 = vector.broadcast %223 : vector<1x64xf32> to vector<8x64xf32>
    %227 = arith.addf %225, %226 : vector<8x64xf32>
    %cst_186 = arith.constant 0.000000e+00 : f32
    %228 = vector.broadcast %cst_186 : f32 to vector<8x64xf32>
    %229 = arith.maximumf %227, %228 : vector<8x64xf32>
    %230 = vector.extract_strided_slice %229 {offsets = [0, 0], sizes = [4, 64], strides = [1, 1]} : vector<8x64xf32> to vector<4x64xf32>
    %c1_187 = arith.constant 1 : index
    %c16_188 = arith.constant 16 : index
    %231 = vector.load %arg9[%c1_187, %c16_188] : memref<14x96xf32, #tpu.memory_space<vmem>>, vector<4x64xf32>
    tpu.vector_store %arg9[%c1_187, %c16_188], %230 {strides = array<i32>} : memref<14x96xf32, #tpu.memory_space<vmem>>, vector<4x64xf32>,
    %232 = vector.extract_strided_slice %229 {offsets = [4, 0], sizes = [4, 64], strides = [1, 1]} : vector<8x64xf32> to vector<4x64xf32>
    %c7 = arith.constant 7 : index
    %c16_189 = arith.constant 16 : index
    %233 = vector.load %arg9[%c7, %c16_189] : memref<14x96xf32, #tpu.memory_space<vmem>>, vector<4x64xf32>
    tpu.vector_store %arg9[%c7, %c16_189], %232 {strides = array<i32>} : memref<14x96xf32, #tpu.memory_space<vmem>>, vector<4x64xf32>,
    %c0_190 = arith.constant 0 : index
    %c0_191 = arith.constant 0 : index
    %234 = vector.load %arg9[%c0_190, %c0_191] : memref<14x96xf32, #tpu.memory_space<vmem>>, vector<12x64xf32>
    %c0_192 = arith.constant 0 : index
    %c0_193 = arith.constant 0 : index
    %235 = vector.load %arg10[%c0_192, %c0_193] : memref<12x576xf32, #tpu.memory_space<vmem>>, vector<12x64xf32>
    tpu.vector_store %arg10[%c0_192, %c0_193], %234 {strides = array<i32>} : memref<12x576xf32, #tpu.memory_space<vmem>>, vector<12x64xf32>,
    %c0_194 = arith.constant 0 : index
    %c16_195 = arith.constant 16 : index
    %236 = vector.load %arg9[%c0_194, %c16_195] : memref<14x96xf32, #tpu.memory_space<vmem>>, vector<12x64xf32>
    %c0_196 = arith.constant 0 : index
    %c64_197 = arith.constant 64 : index
    %237 = vector.load %arg10[%c0_196, %c64_197] : memref<12x576xf32, #tpu.memory_space<vmem>>, vector<12x64xf32>
    tpu.vector_store %arg10[%c0_196, %c64_197], %236 {strides = array<i32>} : memref<12x576xf32, #tpu.memory_space<vmem>>, vector<12x64xf32>,
    %c0_198 = arith.constant 0 : index
    %c32_199 = arith.constant 32 : index
    %238 = vector.load %arg9[%c0_198, %c32_199] : memref<14x96xf32, #tpu.memory_space<vmem>>, vector<12x64xf32>
    %c0_200 = arith.constant 0 : index
    %c128_201 = arith.constant 128 : index
    %239 = vector.load %arg10[%c0_200, %c128_201] : memref<12x576xf32, #tpu.memory_space<vmem>>, vector<12x64xf32>
    tpu.vector_store %arg10[%c0_200, %c128_201], %238 {strides = array<i32>} : memref<12x576xf32, #tpu.memory_space<vmem>>, vector<12x64xf32>,
    %c1_202 = arith.constant 1 : index
    %c0_203 = arith.constant 0 : index
    %240 = vector.load %arg9[%c1_202, %c0_203] : memref<14x96xf32, #tpu.memory_space<vmem>>, vector<12x64xf32>
    %c0_204 = arith.constant 0 : index
    %c192_205 = arith.constant 192 : index
    %241 = vector.load %arg10[%c0_204, %c192_205] : memref<12x576xf32, #tpu.memory_space<vmem>>, vector<12x64xf32>
    tpu.vector_store %arg10[%c0_204, %c192_205], %240 {strides = array<i32>} : memref<12x576xf32, #tpu.memory_space<vmem>>, vector<12x64xf32>,
    %c1_206 = arith.constant 1 : index
    %c16_207 = arith.constant 16 : index
    %242 = vector.load %arg9[%c1_206, %c16_207] : memref<14x96xf32, #tpu.memory_space<vmem>>, vector<12x64xf32>
    %c0_208 = arith.constant 0 : index
    %c256_209 = arith.constant 256 : index
    %243 = vector.load %arg10[%c0_208, %c256_209] : memref<12x576xf32, #tpu.memory_space<vmem>>, vector<12x64xf32>
    tpu.vector_store %arg10[%c0_208, %c256_209], %242 {strides = array<i32>} : memref<12x576xf32, #tpu.memory_space<vmem>>, vector<12x64xf32>,
    %c1_210 = arith.constant 1 : index
    %c32_211 = arith.constant 32 : index
    %244 = vector.load %arg9[%c1_210, %c32_211] : memref<14x96xf32, #tpu.memory_space<vmem>>, vector<12x64xf32>
    %c0_212 = arith.constant 0 : index
    %c320_213 = arith.constant 320 : index
    %245 = vector.load %arg10[%c0_212, %c320_213] : memref<12x576xf32, #tpu.memory_space<vmem>>, vector<12x64xf32>
    tpu.vector_store %arg10[%c0_212, %c320_213], %244 {strides = array<i32>} : memref<12x576xf32, #tpu.memory_space<vmem>>, vector<12x64xf32>,
    %c2_214 = arith.constant 2 : index
    %c0_215 = arith.constant 0 : index
    %246 = vector.load %arg9[%c2_214, %c0_215] : memref<14x96xf32, #tpu.memory_space<vmem>>, vector<12x64xf32>
    %c0_216 = arith.constant 0 : index
    %c384_217 = arith.constant 384 : index
    %247 = vector.load %arg10[%c0_216, %c384_217] : memref<12x576xf32, #tpu.memory_space<vmem>>, vector<12x64xf32>
    tpu.vector_store %arg10[%c0_216, %c384_217], %246 {strides = array<i32>} : memref<12x576xf32, #tpu.memory_space<vmem>>, vector<12x64xf32>,
    %c2_218 = arith.constant 2 : index
    %c16_219 = arith.constant 16 : index
    %248 = vector.load %arg9[%c2_218, %c16_219] : memref<14x96xf32, #tpu.memory_space<vmem>>, vector<12x64xf32>
    %c0_220 = arith.constant 0 : index
    %c448_221 = arith.constant 448 : index
    %249 = vector.load %arg10[%c0_220, %c448_221] : memref<12x576xf32, #tpu.memory_space<vmem>>, vector<12x64xf32>
    tpu.vector_store %arg10[%c0_220, %c448_221], %248 {strides = array<i32>} : memref<12x576xf32, #tpu.memory_space<vmem>>, vector<12x64xf32>,
    %c2_222 = arith.constant 2 : index
    %c32_223 = arith.constant 32 : index
    %250 = vector.load %arg9[%c2_222, %c32_223] : memref<14x96xf32, #tpu.memory_space<vmem>>, vector<12x64xf32>
    %c0_224 = arith.constant 0 : index
    %c512_225 = arith.constant 512 : index
    %251 = vector.load %arg10[%c0_224, %c512_225] : memref<12x576xf32, #tpu.memory_space<vmem>>, vector<12x64xf32>
    tpu.vector_store %arg10[%c0_224, %c512_225], %250 {strides = array<i32>} : memref<12x576xf32, #tpu.memory_space<vmem>>, vector<12x64xf32>,
    %c0_226 = arith.constant 0 : index
    %c0_227 = arith.constant 0 : index
    %252 = vector.load %arg10[%c0_226, %c0_227] : memref<12x576xf32, #tpu.memory_space<vmem>>, vector<12x576xf32>
    %c0_228 = arith.constant 0 : index
    %c0_229 = arith.constant 0 : index
    %253 = vector.load %arg3[%c0_228, %c0_229] : memref<576x8xf32, #tpu.memory_space<vmem>>, vector<576x8xf32>
    %cst_230 = arith.constant dense<0.000000e+00> : vector<12x8xf32>
    %254 = tpu.matmul %252, %253, %cst_230 {dimension_numbers = #tpu.dot_dimension_numbers<[1], [0], [0], [1], [0, 0, 1, 1], [], []>} : vector<12x576xf32>, vector<576x8xf32>, vector<12x8xf32> -> vector<12x8xf32>
    %c4_231 = arith.constant 4 : index
    %c0_232 = arith.constant 0 : index
    %255 = vector.load %arg4[%c4_231, %c0_232] : memref<5x16xf32, #tpu.memory_space<vmem>>, vector<1x2xf32>
    %256 = tpu.iota {dimensions = array<i32: 0>} : vector<2x8xi32>
    %257 = tpu.iota {dimensions = array<i32: 1>} : vector<2x8xi32>
    %c1_i32_233 = arith.constant 1 : i32
    %258 = vector.broadcast %c1_i32_233 : i32 to vector<2x8xi32>
    %259 = arith.andi %257, %258 : vector<2x8xi32>
    %260 = arith.cmpi eq, %256, %259 : vector<2x8xi32>
    %cst_234 = arith.constant 1.000000e+00 : f32
    %cst_235 = arith.constant 0.000000e+00 : f32
    %261 = vector.broadcast %cst_234 : f32 to vector<2x8xf32>
    %262 = vector.broadcast %cst_235 : f32 to vector<2x8xf32>
    %263 = arith.select %260, %261, %262 : vector<2x8xi1>, vector<2x8xf32>
    %cst_236 = arith.constant dense<0.000000e+00> : vector<1x8xf32>
    %264 = tpu.matmul %255, %263, %cst_236 {dimension_numbers = #tpu.dot_dimension_numbers<[1], [0], [0], [1], [0, 0, 1, 1], [], []>} : vector<1x2xf32>, vector<2x8xf32>, vector<1x8xf32> -> vector<1x8xf32>
    %265 = vector.broadcast %264 : vector<1x8xf32> to vector<12x8xf32>
    %266 = arith.addf %254, %265 : vector<12x8xf32>
    %267 = vector.extract_strided_slice %266 {offsets = [0, 0], sizes = [4, 8], strides = [1, 1]} : vector<12x8xf32> to vector<4x8xf32>
    %c0_237 = arith.constant 0 : index
    %c0_238 = arith.constant 0 : index
    %268 = vector.load %arg5[%c0_237, %c0_238] : memref<8x8xf32, #tpu.memory_space<vmem>>, vector<4x8xf32>
    tpu.vector_store %arg5[%c0_237, %c0_238], %267 {strides = array<i32>} : memref<8x8xf32, #tpu.memory_space<vmem>>, vector<4x8xf32>,
    %269 = vector.extract_strided_slice %266 {offsets = [6, 0], sizes = [4, 8], strides = [1, 1]} : vector<12x8xf32> to vector<4x8xf32>
    %c4_239 = arith.constant 4 : index
    %c0_240 = arith.constant 0 : index
    %270 = vector.load %arg5[%c4_239, %c0_240] : memref<8x8xf32, #tpu.memory_space<vmem>>, vector<4x8xf32>
    tpu.vector_store %arg5[%c4_239, %c0_240], %269 {strides = array<i32>} : memref<8x8xf32, #tpu.memory_space<vmem>>, vector<4x8xf32>,
    return
  }
}

</mosaic_0001>

<bundles_post_ra>
// kernel: net_forward.1
= control target key start
LH: loop header
LB: loop body
LE: loop exit
PB: predicated region body
PF: predicated region fallthrough
CT: control target
= control target key end

     0   :  { %s4976_s20 = smov 12   ;;  %s4977_s21 = smov 125   ;;  %vm34_vm0 = vcmask 130048   ;;  %v4978_v5 = vmov 0.0|0.0   ;;  %vm65_vm1 = vcmask 261248   ;;  %vm96_vm2 = vcmask 392448   ;;  %s6928_s0 = inlined_call_operand.vmem [shape: f32[44,20], index: 0, kind: input, shape index: {}]   ;;  %s6929_s1 = inlined_call_operand.vmem [shape: f32[2,400,64], index: 1, kind: input, shape index: {}]   ;;  %s6930_s4 = inlined_call_operand.vmem [shape: f32[5,16], index: 4, kind: input, shape index: {}]   ;;  %s6931_s2 = inlined_call_operand.vmem [shape: f32[2,576,64], index: 2, kind: input, shape index: {}]   ;;  %s6932_s3 = inlined_call_operand.vmem [shape: f32[576,8], index: 3, kind: input, shape index: {}]   ;;  %s6933_s5 = inlined_call_operand.vmem [shape: f32[8,8], index: 5, kind: output, shape index: {}]  }
   0x1   :  { %v5044_v0 = vld [vmem:[%s6928_s0 + $0x1] sm:$0xff]  ;;  %v5070_v4 = vld [vmem:[%s6928_s0 + $0x10] sm:$0xff]  ;;  %4543 = vmatprep.subr.bf16.mxu1 %v4978_v5  ;;  %s4979_s30 = smov 14   ;;  %s4980_s6 = smov 127   ;;  %v5084_v6 = vld [vmem:[%s6928_s0 + $0x18] sm:$0xff]  ;;  %vm127_vm3 = vcmask 523648  }
   0x2   :  { %297 = vrot.lane.b32.xlu1 %v5044_v0, %s4976_s20  ;;  %267 = vrot.lane.b32.xlu0 %v5044_v0, %s4977_s21  ;;  %v5053_v1 = vld [vmem:[%s6928_s0] sm:$0xff]  ;;  %v5063_v3 = vld [vmem:[%s6928_s0 + $0x8] sm:$0xff]  ;;  %37 = vst.msk [vmem:[#allocation2 + $0x40] sm:$0xff] %vm34_vm0, %v5070_v4  ;;  %38 = vst.msk [vmem:[#allocation2 + $0x60] sm:$0xff] %vm34_vm0, %v5084_v6  ;;  %s6950_s29 = smov 32   ;;  %s4982_s7 = smov 15  }
   0x3   :  { %v5058_v2 = vld [vmem:[%s6928_s0 + $0x3] sm:$0xff]  ;;  %35 = vst.msk [vmem:[#allocation2] sm:$0xff] %vm34_vm0, %v5053_v1  ;;  %36 = vst.msk [vmem:[#allocation2 + $0x20] sm:$0xff] %vm34_vm0, %v5063_v3  ;;  %v821_v16 = vld [vmem:[%s6929_s1 + $0x110] sm:$0xff]  ;;  %s4983_s22 = smov 30   ;;  %s4984_s23 = smov 29  }
   0x4   :  { %v5089_v7 = vld [vmem:[%s6928_s0 + $0x2] sm:$0xff]  ;;  %v822_v17 = vld [vmem:[%s6929_s1 + $0x118] sm:$0xff]  ;;  %v805_v19 = vld [vmem:[%s6929_s1 + $0x90] sm:$0xff]  ;;  %s6940_s15 = smov 44   ;;  %s6946_s16 = smov 47   ;;  %vm158_vm4 = vcmask 654848  }
   0x5   :  { %v819_v8 = vld [vmem:[%s6929_s1 + $0x100] sm:$0xff]  ;;  %v820_v9 = vld [vmem:[%s6929_s1 + $0x108] sm:$0xff]  ;;  %v806_v20 = vld [vmem:[%s6929_s1 + $0x98] sm:$0xff]  ;;  %v4547_v21 = vpack.c.bf16 %v822_v17, %v821_v16  ;;  %s4987_s12 = smov 62   ;;  %s6949_s13 = smov 45   ;;  %vm189_vm5 = vcmask 786048  }
   0x6   :  { %537 = vrot.lane.b32.xlu1 %v5058_v2, %s4979_s30  ;;  %507 = vrot.lane.b32.xlu0 %v5058_v2, %s4980_s6  ;;  %v4544_v10 = vpack.c.bf16 %v820_v9, %v819_v8  ;;  %v803_v11 = vld [vmem:[%s6929_s1 + $0x80] sm:$0xff]  ;;  %v804_v12 = vld [vmem:[%s6929_s1 + $0x88] sm:$0xff]  ;;  %v4515_v22 = vpack.c.bf16 %v806_v20, %v805_v19  ;;  %s4989_s17 = smov 60   ;;  %s6936_s18 = smov 64   ;;  %vm220_vm6 = vcmask 917248   ;;  %vm251_vm7 = vcmask 1048448  }
   0x7   :  { %v787_v13 = vld [vmem:[%s6929_s1] sm:$0xff]  ;;  %v4511_v14 = vpack.c.bf16 %v804_v12, %v803_v11  ;;  %v788_v15 = vld [vmem:[%s6929_s1 + $0x8] sm:$0xff]  ;;  %v789_v23 = vld [vmem:[%s6929_s1 + $0x10] sm:$0xff]  ;;  %s6934_s24 = smov 79   ;;  %s4992_s25 = smov 77   ;;  %vm1293_vm10 = vcmask 326656  }
   0x8   :  { %v4513_v18 = vpack.c.bf16 %v788_v15, %v787_v13  ;;  %4545 = vmatpush1.bf16.msra.mxu1 %v4544_v10  ;;  %v790_v24 = vld [vmem:[%s6929_s1 + $0x18] sm:$0xff]  ;;  %v823_v26 = vld [vmem:[%s6929_s1 + $0x120] sm:$0xff]  ;;  %v824_v27 = vld [vmem:[%s6929_s1 + $0x128] sm:$0xff]  ;;  %s4993_s8 = smov 92   ;;  %s4994_s9 = smov 80  }
   0x9   :  { %4512 = vmatprep.subr.bf16.mxu0 %v4511_v14  ;;  %4546 = vmatprep.subr.bf16.mxu1 %v4978_v5  ;;  %v4517_v25 = vpack.c.bf16 %v790_v24, %v789_v23  ;;  %v807_v28 = vld [vmem:[%s6929_s1 + $0xa0] sm:$0xff]  ;;  %v808_v29 = vld [vmem:[%s6929_s1 + $0xa8] sm:$0xff]  ;;  %v4550_v30 = vpack.c.bf16 %v824_v27, %v823_v26  ;;  %v825_v35 = vld [vmem:[%s6929_s1 + $0x130] sm:$0xff]  ;;  %s6938_s27 = smov 94   ;;  %s6947_s28 = smov 112  }
   0xa   :  { %327 = vrot.lane.b32.xlu1 %v5089_v7, %s6950_s29  ;;  %50 = vrot.lane.b32.xlu0 %v5053_v1, %s4982_s7  ;;  %v4519_v31 = vpack.c.bf16 %v808_v29, %v807_v28  ;;  %v791_v32 = vld [vmem:[%s6929_s1 + $0x20] sm:$0xff]  ;;  %v792_v33 = vld [vmem:[%s6929_s1 + $0x28] sm:$0xff]  ;;  %s6944_s10 = smov 110   ;;  %s6942_s11 = smov 109  }
   0xb   :  { %4514 = vmatpush3.bf16.msra.mxu0 %v4513_v18  ;;  %v4521_v34 = vpack.c.bf16 %v792_v33, %v791_v32  ;;  %v826_v36 = vld [vmem:[%s6929_s1 + $0x138] sm:$0xff]  ;;  %v809_v37 = vld [vmem:[%s6929_s1 + $0xb0] sm:$0xff]  ;;  %v827_v44 = vld [vmem:[%s6929_s1 + $0x140] sm:$0xff]  ;;  %s6957_s26 = smov 94   ;;  %s6958_s14 = smov 109  }
   0xc   :  { %4516 = vmatprep.subr.bf16.mxu0 %v4515_v22  ;;  %4548 = vmatpush1.bf16.msra.mxu1 %v4547_v21  ;;  %v810_v38 = vld [vmem:[%s6929_s1 + $0xb8] sm:$0xff]  ;;  %v4553_v39 = vpack.c.bf16 %v826_v36, %v825_v35  ;;  %v793_v41 = vld [vmem:[%s6929_s1 + $0x30] sm:$0xff]  ;;  %v828_v45 = vld [vmem:[%s6929_s1 + $0x148] sm:$0xff]  ;;  %s6959_s19 = smov 44  }
   0xd   :  { %4549 = vmatprep.subr.bf16.mxu1 %v4978_v5  ;;  %v4523_v40 = vpack.c.bf16 %v810_v38, %v809_v37  ;;  %v794_v42 = vld [vmem:[%s6929_s1 + $0x38] sm:$0xff]  ;;  %v811_v46 = vld [vmem:[%s6929_s1 + $0xc0] sm:$0xff]  ;;  %v812_v47 = vld [vmem:[%s6929_s1 + $0xc8] sm:$0xff]  ;;  %v4556_v49 = vpack.c.bf16 %v828_v45, %v827_v44 }
   0xe   :  { %81 = vrot.lane.b32.xlu1 %v5053_v1, %s4983_s22  ;;  %567 = vrot.lane.b32.xlu0 %v5058_v2, %s4984_s23  ;;  %v4525_v43 = vpack.c.bf16 %v794_v42, %v793_v41  ;;  %v5199_v48 = vld [vmem:[%s6928_s0 + $0x4] sm:$0xff]  ;;  %v4527_v50 = vpack.c.bf16 %v812_v47, %v811_v46  ;;  %v829_v54 = vld [vmem:[%s6929_s1 + $0x150] sm:$0xff] }
   0xf   :  { %4518 = vmatpush3.bf16.msra.mxu0 %v4517_v25  ;;  %v795_v51 = vld [vmem:[%s6929_s1 + $0x40] sm:$0xff]  ;;  %v796_v52 = vld [vmem:[%s6929_s1 + $0x48] sm:$0xff]  ;;  %v830_v55 = vld [vmem:[%s6929_s1 + $0x158] sm:$0xff] }
  0x10   :  { %4520 = vmatprep.subr.bf16.mxu0 %v4519_v31  ;;  %4551 = vmatpush1.bf16.msra.mxu1 %v4550_v30  ;;  %v4529_v53 = vpack.c.bf16 %v796_v52, %v795_v51  ;;  %v813_v56 = vld [vmem:[%s6929_s1 + $0xd0] sm:$0xff]  ;;  %v814_v57 = vld [vmem:[%s6929_s1 + $0xd8] sm:$0xff]  ;;  %v4559_v58 = vpack.c.bf16 %v830_v55, %v829_v54  ;;  %v831_v63 = vld [vmem:[%s6929_s1 + $0x160] sm:$0xff] }
  0x11   :  { %4552 = vmatprep.subr.bf16.mxu1 %v4978_v5  ;;  %v4531_v59 = vpack.c.bf16 %v814_v57, %v813_v56  ;;  %v797_v60 = vld [vmem:[%s6929_s1 + $0x50] sm:$0xff]  ;;  %v798_v61 = vld [vmem:[%s6929_s1 + $0x58] sm:$0xff]  ;;  %v815_v8 = vld [vmem:[%s6929_s1 + $0xe0] sm:$0xff] }
  0x12   :  { %597 = vrot.lane.b32.xlu1 %v5058_v2, %s6940_s15  ;;  %357 = vrot.lane.b32.xlu0 %v5089_v7, %s6946_s16  ;;  %v4533_v62 = vpack.c.bf16 %v798_v61, %v797_v60  ;;  %v816_v9 = vld [vmem:[%s6929_s1 + $0xe8] sm:$0xff]  ;;  %v799_v12 = vld [vmem:[%s6929_s1 + $0x60] sm:$0xff] }
  0x13   :  { %4522 = vmatpush3.bf16.msra.mxu0 %v4521_v34  ;;  %v4535_v11 = vpack.c.bf16 %v816_v9, %v815_v8  ;;  %v800_v13 = vld [vmem:[%s6929_s1 + $0x68] sm:$0xff]  ;;  %v833_v15 = vld [vmem:[%s6929_s1 + $0x170] sm:$0xff]  ;;  %v834_v16 = vld [vmem:[%s6929_s1 + $0x178] sm:$0xff] }
  0x14   :  { %4524 = vmatprep.subr.bf16.mxu0 %v4523_v40  ;;  %4554 = vmatpush1.bf16.msra.mxu1 %v4553_v39  ;;  %v4537_v14 = vpack.c.bf16 %v800_v13, %v799_v12  ;;  %v817_v17 = vld [vmem:[%s6929_s1 + $0xf0] sm:$0xff]  ;;  %v818_v18 = vld [vmem:[%s6929_s1 + $0xf8] sm:$0xff]  ;;  %v4565_v19 = vpack.c.bf16 %v834_v16, %v833_v15  ;;  %v835_v23 = vld [vmem:[%s6929_s1 + $0x180] sm:$0xff] }
  0x15   :  { %4555 = vmatprep.subr.bf16.mxu1 %v4978_v5  ;;  %v4539_v20 = vpack.c.bf16 %v818_v18, %v817_v17  ;;  %v801_v21 = vld [vmem:[%s6929_s1 + $0x70] sm:$0xff]  ;;  %v836_v24 = vld [vmem:[%s6929_s1 + $0x188] sm:$0xff]  ;;  %v5286_v25 = vld [vmem:[%s6928_s0 + $0x20] sm:$0xff] }
  0x16   :  { %387 = vrot.lane.b32.xlu1 %v5089_v7, %s4987_s12  ;;  %112 = vrot.lane.b32.xlu0 %v5053_v1, %s6949_s13  ;;  %39 = vst.msk [vmem:[#allocation2 + $0x80] sm:$0xff] %vm34_vm0, %v5286_v25  ;;  %v4568_v26 = vpack.c.bf16 %v836_v24, %v835_v23  ;;  %v288_v27 = vld [vmem:[%s6928_s0 + $0x9] sm:$0xff]  ;;  %v319_v29 = vld [vmem:[%s6928_s0 + $0x12] sm:$0xff] }
  0x17   :  { %4526 = vmatpush3.bf16.msra.mxu0 %v4525_v43  ;;  %v498_v28 = vld [vmem:[%s6928_s0 + $0xb] sm:$0xff]  ;;  %v499_v31 = vld [vmem:[%s6928_s0 + $0x13] sm:$0xff]  ;;  %v5442_v52 = vld [vmem:[%s6928_s0 + $0x1b] sm:$0xff] }
  0x18   :  { %4528 = vmatprep.subr.bf16.mxu0 %v4527_v50  ;;  %4557 = vmatpush1.bf16.msra.mxu1 %v4556_v49  ;;  %v618_v30 = vld [vmem:[%s6928_s0 + $0xc] sm:$0xff]  ;;  %v5437_v51 = vld [vmem:[%s6928_s0 + $0x14] sm:$0xff]  ;;  %v5537_v23 = vld [vmem:[%s6928_s0 + $0x23] sm:$0xff] }
  0x19   :  { %4558 = vmatprep.subr.bf16.mxu1 %v4978_v5 }
  0x1a   :  { %143 = vrot.lane.b32.xlu1 %v5053_v1, %s4989_s17  ;;  %627 = vrot.lane.b32.xlu0 %v5199_v48, %s6936_s18  ;;  %v832_v1 = vld [vmem:[%s6929_s1 + $0x168] sm:$0xff]  ;;  %s6952_s18 = smov 95  }
  0x1b   :  { %4530 = vmatpush3.bf16.msra.mxu0 %v4529_v53  ;;  %v4562_v10 = vpack.c.bf16 %v832_v1, %v831_v63 }
  0x1c   :  { %4532 = vmatprep.subr.bf16.mxu0 %v4531_v59  ;;  %4560 = vmatpush1.bf16.msra.mxu1 %v4559_v58 }
  0x1d   :  { %4561 = vmatprep.subr.bf16.mxu1 %v4978_v5 }
  0x1e   :  { %657 = vrot.lane.b32.xlu1 %v5199_v48, %s6934_s24  ;;  %417 = vrot.lane.b32.xlu0 %v5089_v7, %s4992_s25  ;;  %s6953_s24 = smov 124  }
  0x1f   :  { %4534 = vmatpush3.bf16.msra.mxu0 %v4533_v62  ;;  %v5478_v62 = vld [vmem:[%s6928_s0 + $0x22] sm:$0xff] }
  0x20   :  { %4536 = vmatprep.subr.bf16.mxu0 %v4535_v11  ;;  %4563 = vmatpush1.bf16.msra.mxu1 %v4562_v10 }
  0x21   :  { %4564 = vmatprep.subr.bf16.mxu1 %v4978_v5 }
  0x22   :  { %447 = vrot.lane.b32.xlu1 %v5089_v7, %s4993_s8  ;;  %174 = vrot.lane.b32.xlu0 %v5044_v0, %s4994_s9  ;;  %v802_v7 = vld [vmem:[%s6929_s1 + $0x78] sm:$0xff] }
  0x23   :  { %4538 = vmatpush3.bf16.msra.mxu0 %v4537_v14  ;;  %v4541_v22 = vpack.c.bf16 %v802_v7, %v801_v21  ;;  %v3682_v7 = vld [vmem:[%s6929_s1 + $0x210] sm:$0xff] }
  0x24   :  { %4540 = vmatprep.subr.bf16.mxu0 %v4539_v20  ;;  %4566 = vmatpush1.bf16.msra.mxu1 %v4565_v19 }
  0x25   :  { %4567 = vmatprep.subr.bf16.mxu1 %v4978_v5 }
  0x26   :  { %747 = vrot.lane.b32.xlu1 %v5199_v48, %s6953_s24  ;;  %687 = vrot.lane.b32.xlu0 %v5199_v48, %s6938_s27 }
  0x27   :  { %4542 = vmatpush3.bf16.msra.mxu0 %v4541_v22  ;;  %v3683_v22 = vld [vmem:[%s6929_s1 + $0x218] sm:$0xff] }
  0x28   :  { %4569 = vmatpush1.bf16.msra.mxu1 %v4568_v26  ;;  %v4570_v24 = vpack.c.bf16 %v3683_v22, %v3682_v7  ;;  %v3666_v26 = vld [vmem:[%s6929_s1 + $0x190] sm:$0xff]  ;;  %v3676_v7 = vld [vmem:[%s6929_s1 + $0x1e0] sm:$0xff]  ;;  %v3677_v22 = vld [vmem:[%s6929_s1 + $0x1e8] sm:$0xff] }
  0x29   :  { %4602 = vmatprep.subr.bf16.mxu1 %v4978_v5 }
  0x2a   :  { %477 = vrot.lane.b32.xlu1 %v5058_v2, %s6947_s28  ;;  %205 = vrot.lane.b32.xlu0 %v5044_v0, %s6952_s18  ;;  %v318_v2 = vld [vmem:[%s6928_s0 + $0xa] sm:$0xff] }
  0x2b   :  { %4571 = vmatprep.subr.bf16.mxu0 %v4570_v24 }
  0x2e   :  { %236 = vrot.lane.b32.xlu1 %v5044_v0, %s6944_s10  ;;  %717 = vrot.lane.b32.xlu0 %v5199_v48, %s6942_s11  ;;  %v5321_v0 = vld [vmem:[%s6928_s0 + $0x11] sm:$0xff]  ;;  %s6960_s11 = smov 110   ;;  %v5426_v48 = vld [vmem:[%s6928_s0 + $0x21] sm:$0xff] }
  0x32   :  { %299 = vrot.lane.b32.xlu1 %v288_v27, %s4976_s20  ;;  %269 = vrot.lane.b32.xlu0 %v288_v27, %s4977_s21 }
  0x36   :  { %329 = vrot.lane.b32.xlu1 %v318_v2, %s6950_s29  ;;  %52 = vrot.lane.b32.xlu0 %v5063_v3, %s4982_s7 }
  0x3a   :  { %359 = vrot.lane.b32.xlu1 %v318_v2, %s6946_s16  ;;  %83 = vrot.lane.b32.xlu0 %v5063_v3, %s4983_s22 }
  0x3e   :  { %271 = vrot.lane.b32.xlu1 %v5321_v0, %s4977_s21  ;;  %114 = vrot.lane.b32.xlu0 %v5063_v3, %s6949_s13 }
  0x42   :  { %509 = vrot.lane.b32.xlu1 %v498_v28, %s4980_s6  ;;  %389 = vrot.lane.b32.xlu0 %v318_v2, %s4987_s12 }
  0x46   :  { %301 = vrot.lane.b32.xlu1 %v5321_v0, %s4976_s20  ;;  %145 = vrot.lane.b32.xlu0 %v5063_v3, %s4989_s17  ;;  %v5359_v3 = vld [vmem:[%s6928_s0 + $0x19] sm:$0xff] }
  0x4a   :  { %539 = vrot.lane.b32.xlu1 %v498_v28, %s4979_s30  ;;  %419 = vrot.lane.b32.xlu0 %v318_v2, %s4992_s25 }
  0x4e   :  { %176 = vrot.lane.b32.xlu1 %v288_v27, %s4994_s9  ;;  %54 = vrot.lane.b32.xlu0 %v5070_v4, %s4982_s7 }
  0x52   :  { %449 = vrot.lane.b32.xlu1 %v318_v2, %s4993_s8  ;;  %331 = vrot.lane.b32.xlu0 %v319_v29, %s6950_s29 }
  0x56   :  { %85 = vrot.lane.b32.xlu1 %v5070_v4, %s4983_s22  ;;  %569 = vrot.lane.b32.xlu0 %v498_v28, %s4984_s23 }
  0x5a   :  { %361 = vrot.lane.b32.xlu1 %v319_v29, %s6946_s16  ;;  %207 = vrot.lane.b32.xlu0 %v288_v27, %s6952_s18 }
  0x5e   :  { %599 = vrot.lane.b32.xlu1 %v498_v28, %s6940_s15  ;;  %479 = vrot.lane.b32.xlu0 %v498_v28, %s6947_s28  ;;  %s6956_s15 = smov 79  }
  0x62   :  { %238 = vrot.lane.b32.xlu1 %v288_v27, %s6944_s10  ;;  %116 = vrot.lane.b32.xlu0 %v5070_v4, %s6949_s13  ;;  %s6955_s10 = smov 64   ;;  %v3667_v27 = vld [vmem:[%s6929_s1 + $0x198] sm:$0xff] }
  0x63   :  { %v4572_v28 = vpack.c.bf16 %v3667_v27, %v3666_v26  ;;  %v4592_v27 = vpack.c.bf16 %v3677_v22, %v3676_v7 }
  0x66   :  { %391 = vrot.lane.b32.xlu1 %v319_v29, %s4987_s12  ;;  %273 = vrot.lane.b32.xlu0 %v5359_v3, %s4977_s21 }
  0x6a   :  { %629 = vrot.lane.b32.xlu1 %v618_v30, %s6955_s10  ;;  %511 = vrot.lane.b32.xlu0 %v499_v31, %s4980_s6 }
  0x6e   :  { %303 = vrot.lane.b32.xlu1 %v5359_v3, %s4976_s20  ;;  %147 = vrot.lane.b32.xlu0 %v5070_v4, %s4989_s17  ;;  %v5386_v4 = vld [vmem:[%s6928_s0 + $0x1a] sm:$0xff] }
  0x72   :  { %541 = vrot.lane.b32.xlu1 %v499_v31, %s4979_s30  ;;  %421 = vrot.lane.b32.xlu0 %v319_v29, %s4992_s25 }
  0x74   :  { %v298_v32 = vpop.permute.xlu1 %297  ;;  %v268_v33 = vpop.permute.xlu0 %267 }
  0x75   :  { %282 = vst.msk [vmem:[#allocation2 + $0x8] sm:$0xff] %vm34_vm0, %v268_v33  ;;  %v3669_v33 = vld [vmem:[%s6929_s1 + $0x1a8] sm:$0xff] }
  0x76   :  { %56 = vrot.lane.b32.xlu1 %v5084_v6, %s4982_s7  ;;  %659 = vrot.lane.b32.xlu0 %v618_v30, %s6956_s15  ;;  %312 = vst.msk [vmem:[#allocation2 + $0x8] sm:$0xff] %vm65_vm1, %v298_v32  ;;  %v3668_v32 = vld [vmem:[%s6929_s1 + $0x1a0] sm:$0xff] }
  0x78   :  { %v538_v34 = vpop.permute.xlu1 %537  ;;  %v508_v35 = vpop.permute.xlu0 %507 }
  0x79   :  { %522 = vst.msk [vmem:[#allocation2 + $0x10] sm:$0xff] %vm34_vm0, %v508_v35  ;;  %v4576_v35 = vpack.c.bf16 %v3669_v33, %v3668_v32  ;;  %v3678_v32 = vld [vmem:[%s6929_s1 + $0x1f0] sm:$0xff]  ;;  %v3679_v33 = vld [vmem:[%s6929_s1 + $0x1f8] sm:$0xff] }
  0x7a   :  { %333 = vrot.lane.b32.xlu1 %v5386_v4, %s6950_s29  ;;  %178 = vrot.lane.b32.xlu0 %v5321_v0, %s4994_s9  ;;  %552 = vst.msk [vmem:[#allocation2 + $0x10] sm:$0xff] %vm65_vm1, %v538_v34 }
  0x7c   :  { %v328_v36 = vpop.permute.xlu1 %327  ;;  %v51_v37 = vpop.permute.xlu0 %50 }
  0x7d   :  { %342 = vst.msk [vmem:[#allocation2 + $0x8] sm:$0xff] %vm96_vm2, %v328_v36  ;;  %v3698_v36 = vld [vmem:[%s6929_s1 + $0x290] sm:$0xff] }
  0x7e   :  { %66 = vst.msk [vmem:[#allocation2] sm:$0xff] %vm65_vm1, %v51_v37  ;;  %571 = vrot.lane.b32.xlu1 %v499_v31, %s4984_s23  ;;  %451 = vrot.lane.b32.xlu0 %v319_v29, %s4993_s8  ;;  %v3684_v29 = vld [vmem:[%s6929_s1 + $0x220] sm:$0xff]  ;;  %v3699_v37 = vld [vmem:[%s6929_s1 + $0x298] sm:$0xff] }
  0x80   :  { %v82_v38 = vpop.permute.xlu1 %81  ;;  %v568_v39 = vpop.permute.xlu0 %567 }
  0x81   :  { %97 = vst.msk [vmem:[#allocation2] sm:$0xff] %vm96_vm2, %v82_v38  ;;  %582 = vst.msk [vmem:[#allocation2 + $0x10] sm:$0xff] %vm96_vm2, %v568_v39  ;;  %v4603_v38 = vpack.c.bf16 %v3699_v37, %v3698_v36  ;;  %v3686_v39 = vld [vmem:[%s6929_s1 + $0x230] sm:$0xff]  ;;  %v4596_v36 = vpack.c.bf16 %v3679_v33, %v3678_v32  ;;  %v3708_v37 = vld [vmem:[%s6929_s1 + $0x2e0] sm:$0xff] }
  0x82   :  { %749 = vrot.lane.b32.xlu1 %v618_v30, %s6953_s24  ;;  %689 = vrot.lane.b32.xlu0 %v618_v30, %s6957_s26 }
  0x84   :  { %v598_v40 = vpop.permute.xlu1 %597  ;;  %v358_v41 = vpop.permute.xlu0 %357 }
  0x85   :  { %612 = vst.msk [vmem:[#allocation2 + $0x10] sm:$0xff] %vm127_vm3, %v598_v40  ;;  %372 = vst.msk [vmem:[#allocation2 + $0x8] sm:$0xff] %vm127_vm3, %v358_v41  ;;  %v3687_v40 = vld [vmem:[%s6929_s1 + $0x238] sm:$0xff] }
  0x86   :  { %209 = vrot.lane.b32.xlu1 %v5321_v0, %s6952_s18  ;;  %87 = vrot.lane.b32.xlu0 %v5084_v6, %s4983_s22  ;;  %v4578_v41 = vpack.c.bf16 %v3687_v40, %v3686_v39  ;;  %v3696_v40 = vld [vmem:[%s6929_s1 + $0x280] sm:$0xff] }
  0x88   :  { %v388_v42 = vpop.permute.xlu1 %387  ;;  %v113_v43 = vpop.permute.xlu0 %112 }
  0x89   :  { %402 = vst.msk [vmem:[#allocation2 + $0x8] sm:$0xff] %vm158_vm4, %v388_v42  ;;  %v3670_v42 = vld [vmem:[%s6929_s1 + $0x1b0] sm:$0xff] }
  0x8a   :  { %128 = vst.msk [vmem:[#allocation2] sm:$0xff] %vm127_vm3, %v113_v43  ;;  %481 = vrot.lane.b32.xlu1 %v499_v31, %s6947_s28  ;;  %363 = vrot.lane.b32.xlu0 %v5386_v4, %s6946_s16  ;;  %s6964_s16 = smov 124  }
  0x8c   :  { %v144_v44 = vpop.permute.xlu1 %143  ;;  %v628_v45 = vpop.permute.xlu0 %627 }
  0x8d   :  { %159 = vst.msk [vmem:[#allocation2] sm:$0xff] %vm158_vm4, %v144_v44  ;;  %642 = vst.msk [vmem:[#allocation2 + $0x10] sm:$0xff] %vm158_vm4, %v628_v45 }
  0x8e   :  { %719 = vrot.lane.b32.xlu1 %v618_v30, %s6958_s14  ;;  %601 = vrot.lane.b32.xlu0 %v499_v31, %s6959_s19  ;;  %v5560_v30 = vld [vmem:[%s6928_s0 + $0x1c] sm:$0xff] }
  0x90   :  { %v658_v46 = vpop.permute.xlu1 %657  ;;  %v418_v47 = vpop.permute.xlu0 %417 }
  0x91   :  { %672 = vst.msk [vmem:[#allocation2 + $0x10] sm:$0xff] %vm189_vm5, %v658_v46  ;;  %432 = vst.msk [vmem:[#allocation2 + $0x8] sm:$0xff] %vm189_vm5, %v418_v47  ;;  %v3700_v46 = vld [vmem:[%s6929_s1 + $0x2a0] sm:$0xff]  ;;  %v3701_v47 = vld [vmem:[%s6929_s1 + $0x2a8] sm:$0xff] }
  0x92   :  { %240 = vrot.lane.b32.xlu1 %v5321_v0, %s6960_s11  ;;  %118 = vrot.lane.b32.xlu0 %v5084_v6, %s6949_s13  ;;  %s6962_s13 = smov 47  }
  0x94   :  { %v448_v49 = vpop.permute.xlu1 %447  ;;  %v175_v50 = vpop.permute.xlu0 %174 }
  0x95   :  { %462 = vst.msk [vmem:[#allocation2 + $0x8] sm:$0xff] %vm220_vm6, %v448_v49  ;;  %v4606_v49 = vpack.c.bf16 %v3701_v47, %v3700_v46  ;;  %v3710_v47 = vld [vmem:[%s6929_s1 + $0x2f0] sm:$0xff] }
  0x96   :  { %190 = vst.msk [vmem:[#allocation2] sm:$0xff] %vm189_vm5, %v175_v50  ;;  %393 = vrot.lane.b32.xlu1 %v5386_v4, %s4987_s12  ;;  %275 = vrot.lane.b32.xlu0 %v5426_v48, %s4977_s21  ;;  %v3688_v50 = vld [vmem:[%s6929_s1 + $0x240] sm:$0xff] }
  0x98   :  { %v748_v53 = vpop.permute.xlu1 %747  ;;  %v688_v54 = vpop.permute.xlu0 %687 }
  0x99   :  { %762 = vst.msk [vmem:[#allocation2 + $0x18] sm:$0xff] %vm34_vm0, %v748_v53  ;;  %v3672_v53 = vld [vmem:[%s6929_s1 + $0x1c0] sm:$0xff] }
  0x9a   :  { %702 = vst.msk [vmem:[#allocation2 + $0x10] sm:$0xff] %vm220_vm6, %v688_v54  ;;  %631 = vrot.lane.b32.xlu1 %v5437_v51, %s6955_s10  ;;  %513 = vrot.lane.b32.xlu0 %v5442_v52, %s4980_s6  ;;  %v3673_v54 = vld [vmem:[%s6929_s1 + $0x1c8] sm:$0xff] }
  0x9c   :  { %v478_v55 = vpop.permute.xlu1 %477  ;;  %v206_v56 = vpop.permute.xlu0 %205 }
  0x9d   :  { %492 = vst.msk [vmem:[#allocation2 + $0x8] sm:$0xff] %vm251_vm7, %v478_v55 }
  0x9e   :  { %221 = vst.msk [vmem:[#allocation2] sm:$0xff] %vm220_vm6, %v206_v56  ;;  %305 = vrot.lane.b32.xlu1 %v5426_v48, %s4976_s20  ;;  %149 = vrot.lane.b32.xlu0 %v5084_v6, %s4989_s17 }
  0xa0   :  { %v237_v57 = vpop.permute.xlu1 %236  ;;  %v718_v58 = vpop.permute.xlu0 %717  ;;  %v5456_v59 = vld [vmem:[#allocation2 + $0x18] sm:$0xff] }
  0xa1   :  { %252 = vst.msk [vmem:[#allocation2] sm:$0xff] %vm251_vm7, %v237_v57  ;;  %732 = vst.msk [vmem:[#allocation2 + $0x10] sm:$0xff] %vm251_vm7, %v718_v58  ;;  %3661 = vmatprep.mubr.msk.f32.mxu1 %vm34_vm0, %v5456_v59  ;;  %v4584_v57 = vpack.c.bf16 %v3673_v54, %v3672_v53  ;;  %v3702_v58 = vld [vmem:[%s6929_s1 + $0x2b0] sm:$0xff]  ;;  %v3712_v54 = vld [vmem:[%s6929_s1 + $0x300] sm:$0xff] }
  0xa2   :  { %543 = vrot.lane.b32.xlu1 %v5442_v52, %s4979_s30  ;;  %423 = vrot.lane.b32.xlu0 %v5386_v4, %s4992_s25 }
  0xa4   :  { %v300_v60 = vpop.permute.xlu1 %299  ;;  %v270_v61 = vpop.permute.xlu0 %269  ;;  %v5466_v6 = vld [vmem:[#allocation2 + $0x8] sm:$0xff] }
  0xa5   :  { %283 = vst.msk [vmem:[#allocation2 + $0x28] sm:$0xff] %vm34_vm0, %v270_v61  ;;  %916 = vmatprep.mubr.f32.mxu0 %v5466_v6 }
  0xa6   :  { %313 = vst.msk [vmem:[#allocation2 + $0x28] sm:$0xff] %vm65_vm1, %v300_v60  ;;  %58 = vrot.lane.b32.xlu1 %v5286_v25, %s4982_s7  ;;  %661 = vrot.lane.b32.xlu0 %v5437_v51, %s6956_s15  ;;  %s6961_s7 = smov 112   ;;  %v3703_v60 = vld [vmem:[%s6929_s1 + $0x2b8] sm:$0xff] }
  0xa7   :  { %v4609_v61 = vpack.c.bf16 %v3703_v60, %v3702_v58  ;;  %v3715_v58 = vld [vmem:[%s6929_s1 + $0x318] sm:$0xff] }
  0xa8   :  { %v330_v63 = vpop.permute.xlu1 %329  ;;  %v53_v1 = vpop.permute.xlu0 %52  ;;  %v5480_v8 = vld [vmem:[#allocation2] sm:$0xff]  ;;  %v5482_v9 = vld [vmem:[#allocation2 + $0x10] sm:$0xff] }
  0xa9   :  { %343 = vst.msk [vmem:[#allocation2 + $0x28] sm:$0xff] %vm96_vm2, %v330_v63  ;;  %917 = vmatmul.mubr.f32.vlgmr.msra.gmra.mrb[0].mxu0 %v5480_v8  ;;  %1007 = vmatmul.mubr.f32.vlgmr.msra.gmra.mrb[0].mxu1 %v5482_v9  ;;  %v3690_v63 = vld [vmem:[%s6929_s1 + $0x250] sm:$0xff] }
  0xaa   :  { %67 = vst.msk [vmem:[#allocation2 + $0x20] sm:$0xff] %vm65_vm1, %v53_v1  ;;  %335 = vrot.lane.b32.xlu1 %v5478_v62, %s6950_s29  ;;  %180 = vrot.lane.b32.xlu0 %v5359_v3, %s4994_s9  ;;  %v3691_v1 = vld [vmem:[%s6929_s1 + $0x258] sm:$0xff] }
  0xab   :  { %4573 = vmatpush3.bf16.msra.mxu0 %v4572_v28  ;;  %4604 = vmatpush1.bf16.msra.mxu1 %v4603_v38  ;;  %v3709_v38 = vld [vmem:[%s6929_s1 + $0x2e8] sm:$0xff] }
  0xac   :  { %v360_v10 = vpop.permute.xlu1 %359  ;;  %v84_v11 = vpop.permute.xlu0 %83  ;;  %4605 = vmatprep.subr.bf16.mxu1 %v4978_v5  ;;  %v4618_v39 = vpack.c.bf16 %v3709_v38, %v3708_v37 }
  0xad   :  { %373 = vst.msk [vmem:[#allocation2 + $0x28] sm:$0xff] %vm127_vm3, %v360_v10  ;;  %v4586_v10 = vpack.c.bf16 %v3691_v1, %v3690_v63 }
  0xae   :  { %98 = vst.msk [vmem:[#allocation2 + $0x20] sm:$0xff] %vm96_vm2, %v84_v11  ;;  %573 = vrot.lane.b32.xlu1 %v5442_v52, %s4984_s23  ;;  %453 = vrot.lane.b32.xlu0 %v5386_v4, %s4993_s8  ;;  %v3674_v11 = vld [vmem:[%s6929_s1 + $0x1d0] sm:$0xff] }
  0xaf   :  { %4607 = vmatpush1.bf16.msra.mxu1 %v4606_v49  ;;  %v3711_v49 = vld [vmem:[%s6929_s1 + $0x2f8] sm:$0xff] }
  0xb0   :  { %v272_v12 = vpop.permute.xlu1 %271  ;;  %v115_v13 = vpop.permute.xlu0 %114  ;;  %4608 = vmatprep.subr.bf16.mxu1 %v4978_v5 }
  0xb1   :  { %284 = vst.msk [vmem:[#allocation2 + $0x48] sm:$0xff] %vm34_vm0, %v272_v12  ;;  %v3675_v12 = vld [vmem:[%s6929_s1 + $0x1d8] sm:$0xff] }
  0xb2   :  { %129 = vst.msk [vmem:[#allocation2 + $0x20] sm:$0xff] %vm127_vm3, %v115_v13  ;;  %751 = vrot.lane.b32.xlu1 %v5437_v51, %s6953_s24  ;;  %691 = vrot.lane.b32.xlu0 %v5437_v51, %s6957_s26 }
  0xb3   :  { %4610 = vmatpush1.bf16.msra.mxu1 %v4609_v61 }
  0xb4   :  { %v510_v14 = vpop.permute.xlu1 %509  ;;  %v390_v15 = vpop.permute.xlu0 %389  ;;  %4611 = vmatprep.subr.bf16.mxu1 %v4978_v5 }
  0xb5   :  { %523 = vst.msk [vmem:[#allocation2 + $0x30] sm:$0xff] %vm34_vm0, %v510_v14 }
  0xb6   :  { %403 = vst.msk [vmem:[#allocation2 + $0x28] sm:$0xff] %vm158_vm4, %v390_v15  ;;  %211 = vrot.lane.b32.xlu1 %v5359_v3, %s6952_s18  ;;  %89 = vrot.lane.b32.xlu0 %v5286_v25, %s4983_s22  ;;  %s6963_s22 = smov 45   ;;  %v4588_v15 = vpack.c.bf16 %v3675_v12, %v3674_v11 }
  0xb8   :  { %v302_v16 = vpop.permute.xlu1 %301  ;;  %v146_v17 = vpop.permute.xlu0 %145 }
  0xb9   :  { %314 = vst.msk [vmem:[#allocation2 + $0x48] sm:$0xff] %vm65_vm1, %v302_v16  ;;  %v3704_v16 = vld [vmem:[%s6929_s1 + $0x2c0] sm:$0xff] }
  0xba   :  { %160 = vst.msk [vmem:[#allocation2 + $0x20] sm:$0xff] %vm158_vm4, %v146_v17  ;;  %483 = vrot.lane.b32.xlu1 %v5442_v52, %s6961_s7  ;;  %365 = vrot.lane.b32.xlu0 %v5478_v62, %s6962_s13  ;;  %v3705_v17 = vld [vmem:[%s6929_s1 + $0x2c8] sm:$0xff] }
  0xbc   :  { %v540_v18 = vpop.permute.xlu1 %539  ;;  %v420_v19 = vpop.permute.xlu0 %419 }
  0xbd   :  { %553 = vst.msk [vmem:[#allocation2 + $0x30] sm:$0xff] %vm65_vm1, %v540_v18  ;;  %v4612_v18 = vpack.c.bf16 %v3705_v17, %v3704_v16 }
  0xbe   :  { %433 = vst.msk [vmem:[#allocation2 + $0x28] sm:$0xff] %vm189_vm5, %v420_v19  ;;  %721 = vrot.lane.b32.xlu1 %v5437_v51, %s6958_s14  ;;  %603 = vrot.lane.b32.xlu0 %v5442_v52, %s6959_s19  ;;  %v3689_v51 = vld [vmem:[%s6929_s1 + $0x248] sm:$0xff]  ;;  %v3692_v19 = vld [vmem:[%s6929_s1 + $0x260] sm:$0xff] }
  0xbf   :  { %v4582_v52 = vpack.c.bf16 %v3689_v51, %v3688_v50  ;;  %4613 = vmatpush1.bf16.msra.mxu1 %v4612_v18  ;;  %v4621_v50 = vpack.c.bf16 %v3711_v49, %v3710_v47  ;;  %v621_v51 = vld [vmem:[%s6928_s0 + $0x24] sm:$0xff] }
  0xc0   :  { %v177_v20 = vpop.permute.xlu1 %176  ;;  %v55_v21 = vpop.permute.xlu0 %54  ;;  %4614 = vmatprep.subr.bf16.mxu1 %v4978_v5 }
  0xc1   :  { %191 = vst.msk [vmem:[#allocation2 + $0x20] sm:$0xff] %vm189_vm5, %v177_v20  ;;  %v3693_v20 = vld [vmem:[%s6929_s1 + $0x268] sm:$0xff] }
  0xc2   :  { %68 = vst.msk [vmem:[#allocation2 + $0x40] sm:$0xff] %vm65_vm1, %v55_v21  ;;  %242 = vrot.lane.b32.xlu1 %v5359_v3, %s6960_s11  ;;  %120 = vrot.lane.b32.xlu0 %v5286_v25, %s6963_s22  ;;  %v3685_v3 = vld [vmem:[%s6929_s1 + $0x228] sm:$0xff]  ;;  %v4590_v21 = vpack.c.bf16 %v3693_v20, %v3692_v19  ;;  %s5010_s22 = smov 96  }
  0xc3   :  { %v4574_v31 = vpack.c.bf16 %v3685_v3, %v3684_v29  ;;  %v3694_v29 = vld [vmem:[%s6929_s1 + $0x270] sm:$0xff]  ;;  %v3695_v3 = vld [vmem:[%s6929_s1 + $0x278] sm:$0xff] }
  0xc4   :  { %v450_v2 = vpop.permute.xlu1 %449  ;;  %v332_v0 = vpop.permute.xlu0 %331 }
  0xc5   :  { %463 = vst.msk [vmem:[#allocation2 + $0x28] sm:$0xff] %vm220_vm6, %v450_v2  ;;  %4575 = vmatprep.subr.bf16.mxu0 %v4574_v31  ;;  %v3706_v2 = vld [vmem:[%s6929_s1 + $0x2d0] sm:$0xff]  ;;  %v4594_v31 = vpack.c.bf16 %v3695_v3, %v3694_v29 }
  0xc6   :  { %344 = vst.msk [vmem:[#allocation2 + $0x48] sm:$0xff] %vm96_vm2, %v332_v0  ;;  %515 = vrot.lane.b32.xlu1 %v5537_v23, %s4980_s6  ;;  %395 = vrot.lane.b32.xlu0 %v5478_v62, %s4987_s12  ;;  %v3707_v0 = vld [vmem:[%s6929_s1 + $0x2d8] sm:$0xff] }
  0xc7   :  { %4577 = vmatpush3.bf16.msra.mxu0 %v4576_v35  ;;  %v4615_v28 = vpack.c.bf16 %v3707_v0, %v3706_v2 }
  0xc8   :  { %v86_v4 = vpop.permute.xlu1 %85  ;;  %v570_v34 = vpop.permute.xlu0 %569  ;;  %4579 = vmatprep.subr.bf16.mxu0 %v4578_v41  ;;  %v3697_v41 = vld [vmem:[%s6929_s1 + $0x288] sm:$0xff] }
  0xc9   :  { %99 = vst.msk [vmem:[#allocation2 + $0x40] sm:$0xff] %vm96_vm2, %v86_v4  ;;  %583 = vst.msk [vmem:[#allocation2 + $0x30] sm:$0xff] %vm96_vm2, %v570_v34  ;;  %4616 = vmatpush1.bf16.msra.mxu1 %v4615_v28 }
  0xca   :  { %151 = vrot.lane.b32.xlu1 %v5286_v25, %s4989_s17  ;;  %633 = vrot.lane.b32.xlu0 %v5560_v30, %s6955_s10  ;;  %v3671_v25 = vld [vmem:[%s6929_s1 + $0x1b8] sm:$0xff]  ;;  %s5008_s17 = smov 48  }
  0xcb   :  { %v4580_v45 = vpack.c.bf16 %v3671_v25, %v3670_v42  ;;  %4617 = vmatprep.subr.bf16.mxu1 %v4978_v5  ;;  %v4598_v42 = vpack.c.bf16 %v3697_v41, %v3696_v40  ;;  %v3680_v25 = vld [vmem:[%s6929_s1 + $0x200] sm:$0xff] }
  0xcc   :  { %v362_v43 = vpop.permute.xlu1 %361  ;;  %v208_v44 = vpop.permute.xlu0 %207 }
  0xcd   :  { %374 = vst.msk [vmem:[#allocation2 + $0x48] sm:$0xff] %vm127_vm3, %v362_v43  ;;  %4581 = vmatpush3.bf16.msra.mxu0 %v4580_v45  ;;  %4619 = vmatpush1.bf16.msra.mxu1 %v4618_v39  ;;  %v3681_v43 = vld [vmem:[%s6929_s1 + $0x208] sm:$0xff] }
  0xce   :  { %222 = vst.msk [vmem:[#allocation2 + $0x20] sm:$0xff] %vm220_vm6, %v208_v44  ;;  %545 = vrot.lane.b32.xlu1 %v5537_v23, %s4979_s30  ;;  %425 = vrot.lane.b32.xlu0 %v5478_v62, %s4992_s25  ;;  %v4600_v46 = vpack.c.bf16 %v3681_v43, %v3680_v25  ;;  %s6972_s30 = smov 32  }
  0xcf   :  { %4583 = vmatprep.subr.bf16.mxu0 %v4582_v52  ;;  %4620 = vmatprep.subr.bf16.mxu1 %v4978_v5 }
  0xd0   :  { %v600_v55 = vpop.permute.xlu1 %599  ;;  %v480_v56 = vpop.permute.xlu0 %479 }
  0xd1   :  { %613 = vst.msk [vmem:[#allocation2 + $0x30] sm:$0xff] %vm127_vm3, %v600_v55  ;;  %4585 = vmatpush3.bf16.msra.mxu0 %v4584_v57  ;;  %4622 = vmatpush1.bf16.msra.mxu1 %v4621_v50  ;;  %v3714_v57 = vld [vmem:[%s6929_s1 + $0x310] sm:$0xff] }
  0xd2   :  { %493 = vst.msk [vmem:[#allocation2 + $0x28] sm:$0xff] %vm251_vm7, %v480_v56  ;;  %182 = vrot.lane.b32.xlu1 %v5426_v48, %s4994_s9  ;;  %663 = vrot.lane.b32.xlu0 %v5560_v30, %s6956_s15 }
  0xd3   :  { %4587 = vmatprep.subr.bf16.mxu0 %v4586_v10  ;;  %4623 = vmatprep.subr.bf16.mxu1 %v4978_v5 }
  0xd4   :  { %v239_v13 = vpop.permute.xlu1 %238  ;;  %v117_v14 = vpop.permute.xlu0 %116 }
  0xd5   :  { %253 = vst.msk [vmem:[#allocation2 + $0x20] sm:$0xff] %vm251_vm7, %v239_v13  ;;  %4589 = vmatpush3.bf16.msra.mxu0 %v4588_v15 }
  0xd6   :  { %130 = vst.msk [vmem:[#allocation2 + $0x40] sm:$0xff] %vm127_vm3, %v117_v14  ;;  %575 = vrot.lane.b32.xlu1 %v5537_v23, %s4984_s23  ;;  %455 = vrot.lane.b32.xlu0 %v5478_v62, %s4993_s8  ;;  %s6965_s23 = smov 95  }
  0xd7   :  { %4591 = vmatprep.subr.bf16.mxu0 %v4590_v21 }
  0xd8   :  { %v392_v62 = vpop.permute.xlu1 %391  ;;  %v274_v24 = vpop.permute.xlu0 %273 }
  0xd9   :  { %v5667_v26 = vld [vmem:[#allocation2 + $0x28] sm:$0xff]  ;;  %404 = vst.msk [vmem:[#allocation2 + $0x48] sm:$0xff] %vm158_vm4, %v392_v62  ;;  %4593 = vmatpush3.bf16.msra.mxu0 %v4592_v27 }
  0xda   :  { %285 = vst.msk [vmem:[#allocation2 + $0x68] sm:$0xff] %vm34_vm0, %v274_v24  ;;  %921 = vmatprep.mubr.f32.mxu0 %v5667_v26  ;;  %753 = vrot.lane.b32.xlu1 %v5560_v30, %s6964_s16 }
  0xdb   :  { %693 = vrot.lane.b32.xlu0 %v5560_v30, %s6957_s26  ;;  %4595 = vmatprep.subr.bf16.mxu0 %v4594_v31 }
  0xdc   :  { %v630_v4 = vpop.permute.xlu1 %629  ;;  %v512_v34 = vpop.permute.xlu0 %511  ;;  %v5695_v35 = vld [vmem:[#allocation2 + $0x20] sm:$0xff] }
  0xdd   :  { %643 = vst.msk [vmem:[#allocation2 + $0x30] sm:$0xff] %vm158_vm4, %v630_v4  ;;  %922 = vmatmul.mubr.f32.gmra.mrb[2].mxu0 %v5695_v35 }
  0xde   :  { %524 = vst.msk [vmem:[#allocation2 + $0x50] sm:$0xff] %vm34_vm0, %v512_v34  ;;  %485 = vrot.lane.b32.xlu1 %v5537_v23, %s6961_s7  ;;  %4597 = vmatpush3.bf16.msra.mxu0 %v4596_v36 }
  0xdf   :  { %213 = vrot.lane.b32.xlu0 %v5426_v48, %s6965_s23  ;;  %4599 = vmatprep.subr.bf16.mxu0 %v4598_v42 }
  0xe0   :  { %v304_v44 = vpop.permute.xlu1 %303  ;;  %v148_v45 = vpop.permute.xlu0 %147 }
  0xe1   :  { %315 = vst.msk [vmem:[#allocation2 + $0x68] sm:$0xff] %vm65_vm1, %v304_v44 }
  0xe2   :  { %161 = vst.msk [vmem:[#allocation2 + $0x40] sm:$0xff] %vm158_vm4, %v148_v45  ;;  %723 = vrot.lane.b32.xlu1 %v5560_v30, %s6958_s14  ;;  %4601 = vmatpush3.bf16.msra.mxu0 %v4600_v46  ;;  %v3713_v30 = vld [vmem:[%s6929_s1 + $0x308] sm:$0xff] }
  0xe3   :  { %605 = vrot.lane.b32.xlu0 %v5537_v23, %s6959_s19  ;;  %v4624_v23 = vpack.c.bf16 %v3713_v30, %v3712_v54 }
  0xe4   :  { %v542_v52 = vpop.permute.xlu1 %541  ;;  %v422_v53 = vpop.permute.xlu0 %421 }
  0xe5   :  { %554 = vst.msk [vmem:[#allocation2 + $0x50] sm:$0xff] %vm65_vm1, %v542_v52  ;;  %4625 = vmatpush1.bf16.msra.mxu1 %v4624_v23 }
  0xe6   :  { %434 = vst.msk [vmem:[#allocation2 + $0x48] sm:$0xff] %vm189_vm5, %v422_v53  ;;  %635 = vrot.lane.b32.xlu1 %v621_v51, %s6955_s10  ;;  %4626 = vmatprep.subr.bf16.mxu1 %v4978_v5 }
  0xe7   :  { %244 = vrot.lane.b32.xlu0 %v5426_v48, %s6960_s11  ;;  %v4627_v48 = vpack.c.bf16 %v3715_v58, %v3714_v57  ;;  %s5005_s11 = smov 8  }
  0xe8   :  { %v57_v55 = vpop.permute.xlu1 %56  ;;  %v660_v56 = vpop.permute.xlu0 %659 }
  0xe9   :  { %69 = vst.msk [vmem:[#allocation2 + $0x60] sm:$0xff] %vm65_vm1, %v57_v55  ;;  %4628 = vmatpush1.bf16.msra.mxu1 %v4627_v48 }
  0xea   :  { %673 = vst.msk [vmem:[#allocation2 + $0x30] sm:$0xff] %vm189_vm5, %v660_v56  ;;  %695 = vrot.lane.b32.xlu1 %v621_v51, %s6957_s26 }
  0xeb   :  { %665 = vrot.lane.b32.xlu0 %v621_v51, %s6956_s15 }
  0xec   :  { %v334_v60 = vpop.permute.xlu1 %333  ;;  %v179_v61 = vpop.permute.xlu0 %178 }
  0xed   :  { %345 = vst.msk [vmem:[#allocation2 + $0x68] sm:$0xff] %vm96_vm2, %v334_v60 }
  0xee   :  { %192 = vst.msk [vmem:[#allocation2 + $0x40] sm:$0xff] %vm189_vm5, %v179_v61  ;;  %725 = vrot.lane.b32.xlu1 %v621_v51, %s6958_s14 }
  0xef   :  { %755 = vrot.lane.b32.xlu0 %v621_v51, %s6964_s16  ;;  %s5007_s16 = smov 56  }
  0xf0   :  { %v572_v63 = vpop.permute.xlu1 %571  ;;  %v452_v1 = vpop.permute.xlu0 %451 }
  0xf1   :  { %584 = vst.msk [vmem:[#allocation2 + $0x50] sm:$0xff] %vm96_vm2, %v572_v63 }
  0xf2   :  { %464 = vst.msk [vmem:[#allocation2 + $0x48] sm:$0xff] %vm220_vm6, %v452_v1 }
  0xf4   :  { %v750_v10 = vpop.permute.xlu1 %749  ;;  %v690_v11 = vpop.permute.xlu0 %689 }
  0xf5   :  { %763 = vst.msk [vmem:[#allocation2 + $0x38] sm:$0xff] %vm34_vm0, %v750_v10 }
  0xf6   :  { %703 = vst.msk [vmem:[#allocation2 + $0x30] sm:$0xff] %vm220_vm6, %v690_v11 }
  0xf8   :  { %v210_v12 = vpop.permute.xlu1 %209  ;;  %v88_v13 = vpop.permute.xlu0 %87 }
  0xf9   :  { %223 = vst.msk [vmem:[#allocation2 + $0x40] sm:$0xff] %vm220_vm6, %v210_v12 }
  0xfa   :  { %100 = vst.msk [vmem:[#allocation2 + $0x60] sm:$0xff] %vm96_vm2, %v88_v13 }
  0xfc   :  { %v482_v14 = vpop.permute.xlu1 %481  ;;  %v364_v15 = vpop.permute.xlu0 %363  ;;  %v5772_v16 = vld [vmem:[#allocation2 + $0x38] sm:$0xff] }
  0xfd   :  { %494 = vst.msk [vmem:[#allocation2 + $0x48] sm:$0xff] %vm251_vm7, %v482_v14  ;;  %3662 = vmatprep.mubr.msk.f32.mxu1 %vm34_vm0, %v5772_v16 }
  0xfe   :  { %375 = vst.msk [vmem:[#allocation2 + $0x68] sm:$0xff] %vm127_vm3, %v364_v15 }
 0x100   :  { %v720_v17 = vpop.permute.xlu1 %719  ;;  %v602_v18 = vpop.permute.xlu0 %601 }
 0x101   :  { %733 = vst.msk [vmem:[#allocation2 + $0x30] sm:$0xff] %vm251_vm7, %v720_v17 }
 0x102   :  { %614 = vst.msk [vmem:[#allocation2 + $0x50] sm:$0xff] %vm127_vm3, %v602_v18 }
 0x104   :  { %v241_v19 = vpop.permute.xlu1 %240  ;;  %v119_v20 = vpop.permute.xlu0 %118  ;;  %v5780_v21 = vld [vmem:[#allocation2 + $0x48] sm:$0xff] }
 0x105   :  { %254 = vst.msk [vmem:[#allocation2 + $0x40] sm:$0xff] %vm251_vm7, %v241_v19  ;;  %926 = vmatprep.mubr.f32.mxu0 %v5780_v21 }
 0x106   :  { %131 = vst.msk [vmem:[#allocation2 + $0x60] sm:$0xff] %vm127_vm3, %v119_v20 }
 0x108   :  { %v394_v7 = vpop.permute.xlu1 %393  ;;  %v276_v22 = vpop.permute.xlu0 %275  ;;  %v5785_v62 = vld [vmem:[#allocation2 + $0x30] sm:$0xff] }
 0x109   :  { %405 = vst.msk [vmem:[#allocation2 + $0x68] sm:$0xff] %vm158_vm4, %v394_v7  ;;  %1012 = vmatmul.mubr.f32.gmra.mrb[2].mxu1 %v5785_v62 }
 0x10a   :  { %286 = vst.msk [vmem:[#allocation2 + $0x88] sm:$0xff] %vm34_vm0, %v276_v22 }
 0x10c   :  { %v632_v24 = vpop.permute.xlu1 %631  ;;  %v514_v27 = vpop.permute.xlu0 %513  ;;  %v5790_v2 = vld [vmem:[#allocation2 + $0x40] sm:$0xff] }
 0x10d   :  { %644 = vst.msk [vmem:[#allocation2 + $0x50] sm:$0xff] %vm158_vm4, %v632_v24  ;;  %927 = vmatmul.mubr.f32.gmra.mrb[4].mxu0 %v5790_v2 }
 0x10e   :  { %525 = vst.msk [vmem:[#allocation2 + $0x70] sm:$0xff] %vm34_vm0, %v514_v27  ;;  %v1268_v27 = vlaneseq }
 0x110   :  { %v306_v0 = vpop.permute.xlu1 %305  ;;  %v150_v28 = vpop.permute.xlu0 %149 }
 0x111   :  { %316 = vst.msk [vmem:[#allocation2 + $0x88] sm:$0xff] %vm65_vm1, %v306_v0 }
 0x112   :  { %162 = vst.msk [vmem:[#allocation2 + $0x60] sm:$0xff] %vm158_vm4, %v150_v28 }
 0x114   :  { %v544_v29 = vpop.permute.xlu1 %543  ;;  %v424_v3 = vpop.permute.xlu0 %423 }
 0x115   :  { %555 = vst.msk [vmem:[#allocation2 + $0x70] sm:$0xff] %vm65_vm1, %v544_v29 }
 0x116   :  { %435 = vst.msk [vmem:[#allocation2 + $0x68] sm:$0xff] %vm189_vm5, %v424_v3 }
 0x118   :  { %v59_v31 = vpop.permute.xlu1 %58  ;;  %v662_v32 = vpop.permute.xlu0 %661 }
 0x119   :  { %70 = vst.msk [vmem:[#allocation2 + $0x80] sm:$0xff] %vm65_vm1, %v59_v31 }
 0x11a   :  { %674 = vst.msk [vmem:[#allocation2 + $0x50] sm:$0xff] %vm189_vm5, %v662_v32  ;;  %v5875_v32 = vand.u32 127, %v1268_v27 }
 0x11c   :  { %v336_v33 = vpop.permute.xlu1 %335  ;;  %v181_v4 = vpop.permute.xlu0 %180 }
 0x11d   :  { %346 = vst.msk [vmem:[#allocation2 + $0x88] sm:$0xff] %vm96_vm2, %v336_v33 }
 0x11e   :  { %193 = vst.msk [vmem:[#allocation2 + $0x60] sm:$0xff] %vm189_vm5, %v181_v4  ;;  %v5001_v4 = vmov 0.0  }
 0x120   :  { %v574_v34 = vpop.permute.xlu1 %573  ;;  %v454_v36 = vpop.permute.xlu0 %453 }
 0x121   :  { %585 = vst.msk [vmem:[#allocation2 + $0x70] sm:$0xff] %vm96_vm2, %v574_v34 }
 0x122   :  { %465 = vst.msk [vmem:[#allocation2 + $0x68] sm:$0xff] %vm220_vm6, %v454_v36 }
 0x124   :  { %v752_v37 = vpop.permute.xlu1 %751  ;;  %v692_v38 = vpop.permute.xlu0 %691 }
 0x125   :  { %764 = vst.msk [vmem:[#allocation2 + $0x58] sm:$0xff] %vm34_vm0, %v752_v37 }
 0x126   :  { %704 = vst.msk [vmem:[#allocation2 + $0x50] sm:$0xff] %vm220_vm6, %v692_v38 }
 0x128   :  { %v212_v39 = vpop.permute.xlu1 %211  ;;  %v90_v40 = vpop.permute.xlu0 %89 }
 0x129   :  { %224 = vst.msk [vmem:[#allocation2 + $0x60] sm:$0xff] %vm220_vm6, %v212_v39 }
 0x12a   :  { %101 = vst.msk [vmem:[#allocation2 + $0x80] sm:$0xff] %vm96_vm2, %v90_v40 }
 0x12c   :  { %v484_v41 = vpop.permute.xlu1 %483  ;;  %v366_v42 = vpop.permute.xlu0 %365  ;;  %v5809_v25 = vld [vmem:[#allocation2 + $0x58] sm:$0xff] }
 0x12d   :  { %495 = vst.msk [vmem:[#allocation2 + $0x68] sm:$0xff] %vm251_vm7, %v484_v41  ;;  %3663 = vmatprep.mubr.msk.f32.mxu1 %vm34_vm0, %v5809_v25 }
 0x12e   :  { %376 = vst.msk [vmem:[#allocation2 + $0x88] sm:$0xff] %vm127_vm3, %v366_v42 }
 0x130   :  { %v722_v43 = vpop.permute.xlu1 %721  ;;  %v604_v44 = vpop.permute.xlu0 %603 }
 0x131   :  { %734 = vst.msk [vmem:[#allocation2 + $0x50] sm:$0xff] %vm251_vm7, %v722_v43 }
 0x132   :  { %615 = vst.msk [vmem:[#allocation2 + $0x70] sm:$0xff] %vm127_vm3, %v604_v44 }
 0x134   :  { %v243_v45 = vpop.permute.xlu1 %242  ;;  %v121_v46 = vpop.permute.xlu0 %120  ;;  %v5817_v47 = vld [vmem:[#allocation2 + $0x68] sm:$0xff] }
 0x135   :  { %255 = vst.msk [vmem:[#allocation2 + $0x60] sm:$0xff] %vm251_vm7, %v243_v45  ;;  %931 = vmatprep.mubr.f32.mxu0 %v5817_v47 }
 0x136   :  { %132 = vst.msk [vmem:[#allocation2 + $0x80] sm:$0xff] %vm127_vm3, %v121_v46 }
 0x138   :  { %v516_v49 = vpop.permute.xlu1 %515  ;;  %v396_v50 = vpop.permute.xlu0 %395  ;;  %v5822_v51 = vld [vmem:[#allocation2 + $0x50] sm:$0xff] }
 0x139   :  { %526 = vst.msk [vmem:[#allocation2 + $0x90] sm:$0xff] %vm34_vm0, %v516_v49  ;;  %1017 = vmatmul.mubr.f32.gmra.mrb[4].mxu1 %v5822_v51 }
 0x13a   :  { %406 = vst.msk [vmem:[#allocation2 + $0x88] sm:$0xff] %vm158_vm4, %v396_v50 }
 0x13c   :  { %v152_v52 = vpop.permute.xlu1 %151  ;;  %v634_v53 = vpop.permute.xlu0 %633  ;;  %v779_v54 = vld [vmem:[#allocation2 + $0x60] sm:$0xff] }
 0x13d   :  { %163 = vst.msk [vmem:[#allocation2 + $0x80] sm:$0xff] %vm158_vm4, %v152_v52  ;;  %645 = vst.msk [vmem:[#allocation2 + $0x70] sm:$0xff] %vm158_vm4, %v634_v53  ;;  %932 = vmatmul.mubr.f32.gmra.mrb[6].mxu0 %v779_v54 }
 0x140   :  { %v546_v30 = vpop.permute.xlu1 %545  ;;  %v426_v23 = vpop.permute.xlu0 %425 }
 0x141   :  { %556 = vst.msk [vmem:[#allocation2 + $0x90] sm:$0xff] %vm65_vm1, %v546_v30 }
 0x142   :  { %436 = vst.msk [vmem:[#allocation2 + $0x88] sm:$0xff] %vm189_vm5, %v426_v23 }
 0x144   :  { %v183_v55 = vpop.permute.xlu1 %182  ;;  %v664_v56 = vpop.permute.xlu0 %663 }
 0x145   :  { %194 = vst.msk [vmem:[#allocation2 + $0x80] sm:$0xff] %vm189_vm5, %v183_v55  ;;  %675 = vst.msk [vmem:[#allocation2 + $0x70] sm:$0xff] %vm189_vm5, %v664_v56 }
 0x148   :  { %v576_v57 = vpop.permute.xlu1 %575  ;;  %v456_v58 = vpop.permute.xlu0 %455 }
 0x149   :  { %586 = vst.msk [vmem:[#allocation2 + $0x90] sm:$0xff] %vm96_vm2, %v576_v57 }
 0x14a   :  { %466 = vst.msk [vmem:[#allocation2 + $0x88] sm:$0xff] %vm220_vm6, %v456_v58 }
 0x14c   :  { %v754_v48 = vpop.permute.xlu1 %753 }
 0x14d   :  { %v694_v60 = vpop.permute.xlu0 %693  ;;  %765 = vst.msk [vmem:[#allocation2 + $0x78] sm:$0xff] %vm34_vm0, %v754_v48 }
 0x14e   :  { %705 = vst.msk [vmem:[#allocation2 + $0x70] sm:$0xff] %vm220_vm6, %v694_v60 }
 0x150   :  { %v486_v61 = vpop.permute.xlu1 %485 }
 0x151   :  { %v214_v63 = vpop.permute.xlu0 %213  ;;  %496 = vst.msk [vmem:[#allocation2 + $0x88] sm:$0xff] %vm251_vm7, %v486_v61 }
 0x152   :  { %225 = vst.msk [vmem:[#allocation2 + $0x80] sm:$0xff] %vm220_vm6, %v214_v63 }
 0x154   :  { %v724_v1 = vpop.permute.xlu1 %723  ;;  %v782_v11 = vld [vmem:[#allocation2 + $0x78] sm:$0xff] }
 0x155   :  { %v606_v10 = vpop.permute.xlu0 %605  ;;  %735 = vst.msk [vmem:[#allocation2 + $0x70] sm:$0xff] %vm251_vm7, %v724_v1  ;;  %3664 = vmatprep.mubr.msk.f32.mxu1 %vm34_vm0, %v782_v11 }
 0x156   :  { %616 = vst.msk [vmem:[#allocation2 + $0x90] sm:$0xff] %vm127_vm3, %v606_v10 }
 0x158   :  { %v636_v13 = vpop.permute.xlu1 %635  ;;  %v784_v14 = vld [vmem:[#allocation2 + $0x88] sm:$0xff] }
 0x159   :  { %v245_v12 = vpop.permute.xlu0 %244  ;;  %646 = vst.msk [vmem:[#allocation2 + $0x90] sm:$0xff] %vm158_vm4, %v636_v13  ;;  %936 = vmatprep.mubr.f32.mxu0 %v784_v14 }
 0x15a   :  { %256 = vst.msk [vmem:[#allocation2 + $0x80] sm:$0xff] %vm251_vm7, %v245_v12 }
 0x15c   :  { %v696_v17 = vpop.permute.xlu1 %695  ;;  %v781_v18 = vld [vmem:[#allocation2 + $0x70] sm:$0xff] }
 0x15d   :  { %v666_v15 = vpop.permute.xlu0 %665  ;;  %1022 = vmatmul.mubr.f32.gmra.mrb[6].mxu1 %v781_v18 }
 0x15e   :  { %676 = vst.msk [vmem:[#allocation2 + $0x90] sm:$0xff] %vm189_vm5, %v666_v15 }
 0x15f   :  { %706 = vst.msk [vmem:[#allocation2 + $0x90] sm:$0xff] %vm220_vm6, %v696_v17 }
 0x160   :  { %v726_v20 = vpop.permute.xlu1 %725 }
 0x161   :  { %v756_v19 = vpop.permute.xlu0 %755  ;;  %v783_v7 = vld [vmem:[#allocation2 + $0x80] sm:$0xff]  ;;  %736 = vst.msk [vmem:[#allocation2 + $0x90] sm:$0xff] %vm251_vm7, %v726_v20 }
 0x162   :  { %766 = vst.msk [vmem:[#allocation2 + $0x98] sm:$0xff] %vm34_vm0, %v756_v19  ;;  %937 = vmatmul.mubr.f32.gmra.mrb[8].mxu0 %v783_v7 }
 0x163   :  { %1147 = vmatprep.mubr.f32.mxu0 %v5466_v6 }
 0x166   :  { %1148 = vmatmul.mubr.f32.vlgmr.msra.gmra.mrb[10].mxu0 %v5480_v8 }
 0x167   :  { %1152 = vmatprep.mubr.f32.mxu0 %v5667_v26 }
 0x168   :  { %v785_v24 = vld [vmem:[#allocation2 + $0x90] sm:$0xff] }
 0x169   :  { %v786_v22 = vld [vmem:[#allocation2 + $0x98] sm:$0xff] }
 0x16a   :  { %3665 = vmatprep.mubr.msk.f32.mxu1 %vm34_vm0, %v786_v22  ;;  %1153 = vmatmul.mubr.f32.gmra.mrb[12].mxu0 %v5695_v35 }
 0x16b   :  { %1027 = vmatmul.mubr.f32.gmra.mrb[8].mxu1 %v785_v24  ;;  %1157 = vmatprep.mubr.f32.mxu0 %v5780_v21 }
 0x16c   :  { %3716 = vmatprep.mubr.msk.f32.mxu1 %vm34_vm0, %v5456_v59 }
 0x16e   :  { %1158 = vmatmul.mubr.f32.gmra.mrb[14].mxu0 %v5790_v2  ;;  %v5869_v2 = vshrl.u32 %v1268_v27, 7 }
 0x16f   :  { %1162 = vmatprep.mubr.f32.mxu0 %v5817_v47  ;;  %1238 = vmatmul.mubr.f32.vlgmr.msra.gmra.mrb[10].mxu1 %v5482_v9 }
 0x170   :  { %3717 = vmatprep.mubr.msk.f32.mxu1 %vm34_vm0, %v5772_v16  ;;  %v1273_v0 = vshra.s32 %v5869_v2, 3  ;;  %v1275_v28 = vand.u32 7, %v5869_v2  ;;  %v5884_v1 = vadd.s32 8, %v5869_v2 }
 0x172   :  { %1163 = vmatmul.mubr.f32.gmra.mrb[16].mxu0 %v779_v54  ;;  %v1277_v29 = vmul.u32 20, %v1273_v0  ;;  %v1279_v3 = vmul.u32 2, %v1275_v28  ;;  %v1276_v19 = vand.u32 7, %v5884_v1  ;;  %vm1472_vm13 = vcmp.eq.s32.totalorder %v1275_v28, %v5875_v32 }
 0x173   :  { %1167 = vmatprep.mubr.f32.mxu0 %v784_v14  ;;  %1243 = vmatmul.mubr.f32.gmra.mrb[12].mxu1 %v5785_v62  ;;  %v5916_v28 = vadd.s32 32, %v5869_v2 }
 0x174   :  { %3718 = vmatprep.mubr.msk.f32.mxu1 %vm34_vm0, %v5809_v25  ;;  %v1281_v31 = vadd.s32 %v1279_v3, %v1277_v29  ;;  %vm1473_vm14 = vcmp.eq.s32.totalorder %v1276_v19, %v5875_v32 }
 0x175   :  { %vm4646_vm15 = vmpackc.low %vm1473_vm14, %vm1472_vm13  ;;  %vm1667_vm13 = vcmask 64512   ;;  %vm20_vm14 = vcmask 654336  }
 0x176   :  { %1168 = vmatmul.mubr.f32.gmra.mrb[18].mxu0 %v783_v7  ;;  %v1287_v33 = vadd.s32 1, %v1281_v31  ;;  %vm1283_vm8 = vcmp.eq.s32.totalorder %v5875_v32, %v1281_v31  ;;  %22 = vst.msk [vmem:[#allocation3 + $0x8] sm:$0xff] %vm20_vm14, %v5001_v4  ;;  %21 = vst.msk [vmem:[#allocation3] sm:$0xff] %vm20_vm14, %v5001_v4 }
 0x177   :  { %1248 = vmatmul.mubr.f32.gmra.mrb[14].mxu1 %v5822_v51  ;;  %v1285_v34 = vsel %vm1283_vm8, 1.0, %v5001_v4 }
 0x178   :  { %3719 = vmatprep.mubr.msk.f32.mxu1 %vm34_vm0, %v782_v11  ;;  %vm1289_vm9 = vcmp.eq.s32.totalorder %v5875_v32, %v1287_v33  ;;  %4303 = vmatprep.mubr.msk.f32.mxu0 %vm1293_vm10, %v1285_v34 }
 0x179   :  { %v1291_v36 = vsel %vm1289_vm9, 1.0, %v5001_v4 }
 0x17b   :  { %1253 = vmatmul.mubr.f32.gmra.mrb[16].mxu1 %v781_v18  ;;  %v1274_v18 = vshra.s32 %v5884_v1, 3 }
 0x17c   :  { %3720 = vmatprep.mubr.msk.f32.mxu1 %vm34_vm0, %v786_v22  ;;  %v3889_v59 = vpop.f32.mrb[0].mxu0  ;;  %v1008_v6 = vpop.f32.mrb[0].mxu1 }
 0x17d   :  { %v3890_v8 = vpop.f32.mrb[1].mxu0  ;;  %v1010_v9 = vpop.f32.mrb[1].mxu1 }
 0x17e   :  { %v3891_v26 = vadd.f32 %v3890_v8, %v3889_v59  ;;  %v1278_v9 = vmul.u32 20, %v1274_v18 }
 0x17f   :  { %1258 = vmatmul.mubr.f32.gmra.mrb[18].mxu1 %v785_v24 }
 0x180   :  { %v5867_v35 = vadd.f32 %v3891_v26, %v1008_v6  ;;  %4316 = vmatprep.mubr.msk.f32.mxu1 %vm1293_vm10, %v1291_v36  ;;  %v1280_v26 = vmul.u32 2, %v1276_v19 }
 0x182   :  { %v1282_v3 = vadd.s32 %v1280_v26, %v1278_v9 }
 0x184   :  { %vm1284_vm11 = vcmp.eq.s32.totalorder %v5875_v32, %v1282_v3 }
 0x1b0   :  { %v3892_v16 = vpop.f32.mrb[2].mxu0 }
 0x1b1   :  { %v3893_v21 = vpop.f32.mrb[3].mxu0 }
 0x1b2   :  { %v3894_v62 = vadd.f32 %v3893_v21, %v3892_v16 }
 0x1dc   :  { %v1013_v37 = vpop.f32.mrb[2].mxu1 }
 0x1dd   :  { %v1014_v38 = vadd.f32 %v3894_v62, %v1013_v37  ;;  %v1015_v39 = vpop.f32.mrb[3].mxu1  ;;  %v1288_v37 = vadd.s32 1, %v1282_v3 }
 0x1df   :  { %vm1290_vm12 = vcmp.eq.s32.totalorder %v5875_v32, %v1288_v37  ;;  %v1458_v37 = vld [vmem:[%s6930_s4] sm:$0x1] }
 0x1e0   :  { %v3895_v40 = vpop.f32.mrb[4].mxu0 }
 0x1e1   :  { %v3896_v41 = vpop.f32.mrb[5].mxu0 }
 0x1e2   :  { %v3897_v42 = vadd.f32 %v3896_v41, %v3895_v40 }
 0x20c   :  { %v1018_v25 = vpop.f32.mrb[4].mxu1 }
 0x20d   :  { %v1019_v43 = vadd.f32 %v3897_v42, %v1018_v25  ;;  %v1020_v44 = vpop.f32.mrb[5].mxu1  ;;  %v1286_v25 = vsel %vm1284_vm11, 1.0, %v5001_v4  ;;  %vm1491_vm11 = vcmask 523264  }
 0x20e   :  { %v5902_v44 = vadd.s32 16, %v5869_v2 }
 0x210   :  { %v3898_v45 = vpop.f32.mrb[6].mxu0 }
 0x211   :  { %v3899_v46 = vpop.f32.mrb[7].mxu0 }
 0x212   :  { %v3900_v47 = vadd.f32 %v3899_v46, %v3898_v45  ;;  %v5905_v45 = vadd.s32 24, %v5869_v2  ;;  %v5002_v46 = vmov 1.0|1.0  }
 0x230   :  { %v1023_v49 = vpop.f32.mrb[6].mxu1 }
 0x231   :  { %v1024_v50 = vadd.f32 %v3900_v47, %v1023_v49  ;;  %v1025_v51 = vpop.f32.mrb[7].mxu1  ;;  %v1466_v47 = vand.u32 7, %v5902_v44  ;;  %v1467_v49 = vand.u32 7, %v5905_v45 }
 0x232   :  { %v1468_v51 = vand.u32 7, %v5916_v28 }
 0x233   :  { %vm1474_vm1 = vcmp.eq.s32.totalorder %v1466_v47, %v5875_v32  ;;  %vm1475_vm2 = vcmp.eq.s32.totalorder %v1467_v49, %v5875_v32 }
 0x234   :  { %vm4649_vm3 = vmpackc.low %vm1475_vm2, %vm1474_vm1  ;;  %vm1476_vm4 = vcmp.eq.s32.totalorder %v1468_v51, %v5875_v32  ;;  %vm1832_vm1 = vcmask 588864   ;;  %vm1844_vm2 = vcmask 519168  }
 0x235   :  { %v3901_v52 = vpop.f32.mrb[8].mxu0 }
 0x236   :  { %v3902_v53 = vpop.f32.mrb[9].mxu0 }
 0x237   :  { %v3903_v54 = vadd.f32 %v3902_v53, %v3901_v52  ;;  %v5930_v53 = vadd.s32 48, %v5869_v2 }
 0x239   :  { %v3936_v30 = vpop.f32.mrb[10].mxu0 }
 0x23a   :  { %v3937_v23 = vpop.f32.mrb[11].mxu0 }
 0x23b   :  { %v3938_v55 = vadd.f32 %v3937_v23, %v3936_v30  ;;  %v1470_v30 = vand.u32 7, %v5930_v53 }
 0x23d   :  { %v3939_v56 = vpop.f32.mrb[12].mxu0  ;;  %vm1478_vm7 = vcmp.eq.s32.totalorder %v1470_v30, %v5875_v32 }
 0x23e   :  { %v1028_v57 = vpop.f32.mrb[8].mxu1  ;;  %v3940_v58 = vpop.f32.mrb[13].mxu0 }
 0x23f   :  { %v1029_v48 = vadd.f32 %v3903_v54, %v1028_v57  ;;  %v3941_v60 = vadd.f32 %v3940_v58, %v3939_v56  ;;  %v1030_v61 = vpop.f32.mrb[9].mxu1  ;;  %v5933_v54 = vadd.s32 56, %v5869_v2 }
 0x241   :  { %v3942_v63 = vpop.f32.mrb[14].mxu0  ;;  %v1471_v23 = vand.u32 7, %v5933_v54 }
 0x242   :  { %v3943_v10 = vpop.f32.mrb[15].mxu0  ;;  %v1239_v11 = vpop.f32.mrb[10].mxu1 }
 0x243   :  { %v3944_v12 = vadd.f32 %v3943_v10, %v3942_v63  ;;  %v1240_v13 = vadd.f32 %v3938_v55, %v1239_v11  ;;  %v1241_v14 = vpop.f32.mrb[11].mxu1  ;;  %vm1479_vm8 = vcmp.eq.s32.totalorder %v1471_v23, %v5875_v32 }
 0x244   :  { %vm4655_vm9 = vmpackc.low %vm1479_vm8, %vm1478_vm7  ;;  %vm2646_vm7 = vcmask 1043456   ;;  %vm2642_vm8 = vcmask 162816  }
 0x245   :  { %v1263_v15 = vmax.f32 %v5867_v35, %v1240_v13  ;;  %v3945_v17 = vpop.f32.mrb[16].mxu0 }
 0x246   :  { %v3946_v20 = vpop.f32.mrb[17].mxu0  ;;  %v1244_v7 = vpop.f32.mrb[12].mxu1 }
 0x247   :  { %v3947_v22 = vadd.f32 %v3946_v20, %v3945_v17  ;;  %v1245_v24 = vadd.f32 %v3941_v60, %v1244_v7  ;;  %v1246_v59 = vpop.f32.mrb[13].mxu1 }
 0x249   :  { %v1264_v6 = vmax.f32 %v1014_v38, %v1245_v24  ;;  %v3948_v8 = vpop.f32.mrb[18].mxu0 }
 0x24a   :  { %v3949_v16 = vpop.f32.mrb[19].mxu0  ;;  %v1249_v21 = vpop.f32.mrb[14].mxu1 }
 0x24b   :  { %v4629_v62 = vpack.c.bf16 %v1264_v6, %v1263_v15  ;;  %v3950_v27 = vadd.f32 %v3949_v16, %v3948_v8  ;;  %v1250_v0 = vadd.f32 %v3944_v12, %v1249_v21  ;;  %v1251_v35 = vpop.f32.mrb[15].mxu1  ;;  %v1488_v16 = vand.u32 7, %v5875_v32  ;;  %v2046_v21 = vld [vmem:[%s6931_s2 + $0x198] sm:$0xff] }
 0x24d   :  { %v1265_v29 = vmax.f32 %v1019_v43, %v1250_v0  ;;  %4630 = vmatprep.subr.bf16.mxu0 %v4629_v62  ;;  %4638 = vmatprep.subr.bf16.mxu1 %v4629_v62  ;;  %v1292_v43 = vsel %vm1290_vm12, 1.0, %v5001_v4  ;;  %vm5965_vm12 = vcmp.eq.s32.totalorder %v5869_v2, %v1488_v16 }
 0x24e   :  { %v1254_v31 = vpop.f32.mrb[16].mxu1  ;;  %4632 = vmatpush3.bf16.msra.mxu0 %v4629_v62  ;;  %4640 = vmatpush3.bf16.msra.mxu1 %v4629_v62  ;;  %v5004_v62 = vmov 1.0  }
 0x24f   :  { %v1255_v33 = vadd.f32 %v3947_v22, %v1254_v31  ;;  %v1256_v34 = vpop.f32.mrb[17].mxu1 }
 0x251   :  { %v1266_v36 = vmax.f32 %v1024_v50, %v1255_v33  ;;  %v5919_v50 = vadd.s32 40, %v5869_v2 }
 0x252   :  { %v1259_v38 = vpop.f32.mrb[18].mxu1 }
 0x253   :  { %v4633_v39 = vpack.c.bf16 %v1266_v36, %v1265_v29  ;;  %v1260_v40 = vadd.f32 %v3950_v27, %v1259_v38  ;;  %v1261_v41 = vpop.f32.mrb[19].mxu1  ;;  %v1469_v52 = vand.u32 7, %v5919_v50 }
 0x255   :  { %v1267_v42 = vmax.f32 %v1029_v48, %v1260_v40  ;;  %4634 = vmatprep.subr.bf16.mxu0 %v4633_v39  ;;  %4642 = vmatprep.subr.bf16.mxu1 %v4633_v39  ;;  %vm1477_vm5 = vcmp.eq.s32.totalorder %v1469_v52, %v5875_v32  ;;  %v1459_v40 = vld [vmem:[%s6930_s4 + $0x1] sm:$0x1] }
 0x256   :  { %4636 = vmatpush3.bf16.msra.mxu0 %v4633_v39  ;;  %4644 = vmatpush3.bf16.msra.mxu1 %v4633_v39  ;;  %vm4652_vm6 = vmpackc.low %vm1477_vm5, %vm1476_vm4  ;;  %vm1864_vm4 = vcmask 1043968  }
 0x257   :  { %4301 = vmatprep.subr.mxu0 %v1267_v42  ;;  %4314 = vmatprep.subr.mxu1 %v1267_v42 }
 0x25a   :  { %4302 = vmatpush3.msra.mxu0 %v1267_v42  ;;  %4315 = vmatpush3.msra.mxu1 %v1267_v42 }
 0x25b   :  { %4304 = vmatmul.mubr.msk.f32.vlgmr.msra.gmra.mrb[20].mxu0 %vm1293_vm10, %v1286_v25  ;;  %4317 = vmatmul.mubr.msk.f32.vlgmr.msra.gmra.mrb[20].mxu1 %vm1293_vm10, %v1292_v43  ;;  %vm5003_vm10 = vmmov 0   ;;  %v5986_v25 = vsub.s32 0, %v5869_v2 }
 0x25c   :  { %4645 = vmatprep.subr.bf16.mxu0 %v4978_v5  ;;  %4657 = vmatprep.subr.bf16.mxu1 %v4978_v5 }
 0x25d   :  { %4647 = vmatpush3.bf16.msk.msra.mxu0 %vm4646_vm15, %v5002_v46  ;;  %4659 = vmatpush3.bf16.msk.msra.mxu1 %vm4646_vm15, %v5002_v46  ;;  %vm23_vm15 = vcmask 652288  }
 0x25e   :  { %4648 = vmatprep.subr.bf16.mxu0 %v4978_v5  ;;  %4660 = vmatprep.subr.bf16.mxu1 %v4978_v5  ;;  %24 = vst.msk [vmem:[#allocation3 + $0x10] sm:$0x3f] %vm23_vm15, %v5001_v4 }
 0x25f   :  { %4335 = vmatprep.mubr.msk.f32.mxu0 %vm5003_vm10, %v5001_v4  ;;  %4354 = vmatprep.mubr.msk.f32.mxu1 %vm5003_vm10, %v5001_v4 }
 0x261   :  { %4650 = vmatpush3.bf16.msk.msra.mxu0 %vm4649_vm3, %v5002_v46  ;;  %4662 = vmatpush3.bf16.msk.msra.mxu1 %vm4649_vm3, %v5002_v46  ;;  %vm1861_vm3 = vcmask 1048064  }
 0x262   :  { %4651 = vmatprep.subr.bf16.mxu0 %v4978_v5  ;;  %4663 = vmatprep.subr.bf16.mxu1 %v4978_v5 }
 0x265   :  { %4653 = vmatpush3.bf16.msk.msra.mxu0 %vm4652_vm6, %v5002_v46  ;;  %4665 = vmatpush3.bf16.msk.msra.mxu1 %vm4652_vm6, %v5002_v46 }
 0x266   :  { %4654 = vmatprep.subr.bf16.mxu0 %v4978_v5  ;;  %4666 = vmatprep.subr.bf16.mxu1 %v4978_v5 }
 0x269   :  { %4656 = vmatpush3.bf16.msk.msra.mxu0 %vm4655_vm9, %v5002_v46  ;;  %4668 = vmatpush3.bf16.msk.msra.mxu1 %vm4655_vm9, %v5002_v46 }
 0x26a   :  { %4357 = vmatprep.subr.mxu0 %v5001_v4 }
 0x32e   :  { %v4305_v55 = vpop.f32.mrb[20].mxu0  ;;  %v4318_v56 = vpop.f32.mrb[20].mxu1 }
 0x32f   :  { %v5950_v57 = vmax.f32 %v4305_v55, %v4318_v56  ;;  %v1366_v58 = vpop.f32.mrb[21].mxu0  ;;  %v1447_v48 = vpop.f32.mrb[21].mxu1 }
 0x330   :  { %v1456_v60 = vmax.f32 %v1366_v58, %v1447_v48 }
 0x331   :  { %v1493_v61 = vsel %vm1491_vm11, %v5950_v57, 0.0  ;;  %v1575_v63 = vmul.f32 %v5950_v57, %v5950_v57 }
 0x332   :  { %v1492_v10 = vsel %vm1491_vm11, %v1456_v60, 0.0  ;;  %v1574_v11 = vmul.f32 %v1456_v60, %v1456_v60 }
 0x333   :  { %v1577_v12 = vsel %vm1491_vm11, %v1575_v63, 0.0  ;;  %v1494_v13 = vadd.f32 %v1493_v61, %v1492_v10  ;;  %v2011_v63 = vld [vmem:[%s6931_s2 + $0x80] sm:$0xff] }
 0x334   :  { %v1576_v14 = vsel %vm1491_vm11, %v1574_v11, 0.0  ;;  %v1996_v11 = vld [vmem:[%s6931_s2 + $0x8] sm:$0xff] }
 0x335   :  { %v1495_v15 = vrot.slane %v1494_v13, 4  ;;  %v1578_v17 = vadd.f32 %v1577_v12, %v1576_v14  ;;  %v2013_v12 = vld [vmem:[%s6931_s2 + $0x90] sm:$0xff] }
 0x337   :  { %v1496_v18 = vadd.f32 %v1495_v15, %v1494_v13  ;;  %v1579_v19 = vrot.slane %v1578_v17, 4  ;;  %v2014_v13 = vld [vmem:[%s6931_s2 + $0x98] sm:$0xff] }
 0x338   :  { %v4673_v15 = vpack.c.bf16 %v2014_v13, %v2013_v12  ;;  %v2051_v12 = vld [vmem:[%s6931_s2 + $0x1c0] sm:$0xff] }
 0x339   :  { %v1497_v20 = vrot.slane %v1496_v18, 2  ;;  %v1580_v7 = vadd.f32 %v1579_v19, %v1578_v17  ;;  %v2043_v17 = vld [vmem:[%s6931_s2 + $0x180] sm:$0xff]  ;;  %v1997_v19 = vld [vmem:[%s6931_s2 + $0x10] sm:$0xff] }
 0x33b   :  { %v1498_v22 = vadd.f32 %v1497_v20, %v1496_v18  ;;  %v1581_v24 = vrot.slane %v1580_v7, 2  ;;  %v2044_v18 = vld [vmem:[%s6931_s2 + $0x188] sm:$0xff] }
 0x33c   :  { %v4701_v20 = vpack.c.bf16 %v2044_v18, %v2043_v17  ;;  %v2006_v17 = vld [vmem:[%s6931_s2 + $0x58] sm:$0xff] }
 0x33d   :  { %v1499_v59 = vrot.slane %v1498_v22, 1  ;;  %v1582_v6 = vadd.f32 %v1581_v24, %v1580_v7  ;;  %v1998_v7 = vld [vmem:[%s6931_s2 + $0x18] sm:$0xff]  ;;  %v2028_v24 = vld [vmem:[%s6931_s2 + $0x108] sm:$0xff] }
 0x33e   :  { %4702 = vmatprep.subr.bf16.mxu1 %v4701_v20  ;;  %v2035_v20 = vld [vmem:[%s6931_s2 + $0x140] sm:$0xff] }
 0x33f   :  { %v1500_v8 = vadd.f32 %v1499_v59, %v1498_v22  ;;  %v1583_v9 = vrot.slane %v1582_v6, 1  ;;  %v2027_v22 = vld [vmem:[%s6931_s2 + $0x100] sm:$0xff]  ;;  %v4675_v59 = vpack.c.bf16 %v1998_v7, %v1997_v19  ;;  %v2036_v7 = vld [vmem:[%s6931_s2 + $0x148] sm:$0xff] }
 0x341   :  { %4336 = vmatmul.mubr.msk.f32.vlgmr.msra.gmra.mrb[22].mxu0 %vm1491_vm11, %v1500_v8  ;;  %v1584_v26 = vadd.f32 %v1583_v9, %v1582_v6  ;;  %v4703_v6 = vpack.c.bf16 %v2028_v24, %v2027_v22  ;;  %v2015_v8 = vld [vmem:[%s6931_s2 + $0xa0] sm:$0xff]  ;;  %v2016_v9 = vld [vmem:[%s6931_s2 + $0xa8] sm:$0xff] }
 0x342   :  { %4359 = vmatprep.mubr.msk.f32.mxu0 %vm5003_vm10, %v5001_v4  ;;  %4358 = vmatpush3.msk.msra.mxu0 %vm5965_vm12, %v5004_v62  ;;  %v4677_v16 = vpack.c.bf16 %v2016_v9, %v2015_v8  ;;  %v2024_v8 = vld [vmem:[%s6931_s2 + $0xe8] sm:$0xff]  ;;  %v2053_v9 = vld [vmem:[%s6931_s2 + $0x1d0] sm:$0xff] }
 0x343   :  { %4355 = vmatmul.mubr.msk.f32.vlgmr.msra.gmra.mrb[22].mxu1 %vm1491_vm11, %v1584_v26  ;;  %4362 = vmatprep.subr.mxu0 %v5001_v4  ;;  %v2045_v26 = vld [vmem:[%s6931_s2 + $0x190] sm:$0xff] }
 0x344   :  { %4704 = vmatpush3.bf16.msra.mxu1 %v4703_v6  ;;  %v2023_v6 = vld [vmem:[%s6931_s2 + $0xe0] sm:$0xff] }
 0x414   :  { %v1570_v27 = vpop.f32.mrb[22].mxu0 }
 0x415   :  { %v1658_v0 = vmul.f32 0.0078125, %v1570_v27  ;;  %v4337_v35 = vpop.f32.mrb[23].mxu0  ;;  %v2000_v27 = vld [vmem:[%s6931_s2 + $0x28] sm:$0xff] }
 0x416   :  { %v1654_v29 = vpop.f32.mrb[22].mxu1  ;;  %v2029_v35 = vld [vmem:[%s6931_s2 + $0x110] sm:$0xff] }
 0x417   :  { %v1660_v3 = vmul.f32 %v1658_v0, %v1658_v0  ;;  %v1659_v31 = vmul.f32 0.0078125, %v1654_v29  ;;  %v4356_v33 = vpop.f32.mrb[23].mxu1  ;;  %v2030_v29 = vld [vmem:[%s6931_s2 + $0x118] sm:$0xff] }
 0x418   :  { %v2018_v33 = vld [vmem:[%s6931_s2 + $0xb8] sm:$0xff] }
 0x419   :  { %v1661_v34 = vsub.f32 %v1659_v31, %v1660_v3  ;;  %v2017_v3 = vld [vmem:[%s6931_s2 + $0xb0] sm:$0xff]  ;;  %v4707_v31 = vpack.c.bf16 %v2030_v29, %v2029_v35  ;;  %v2038_v29 = vld [vmem:[%s6931_s2 + $0x158] sm:$0xff] }
 0x41a   :  { %v2037_v35 = vld [vmem:[%s6931_s2 + $0x150] sm:$0xff] }
 0x41b   :  { %v1662_v36 = vadd.f32 1e-05, %v1661_v34  ;;  %v2047_v34 = vld [vmem:[%s6931_s2 + $0x1a0] sm:$0xff] }
 0x41d   :  { %4972 = vrsqrt.f32 %v1662_v36  ;;  %v2048_v36 = vld [vmem:[%s6931_s2 + $0x1a8] sm:$0xff] }
 0x427   :  { %v4973_v38 = vpop.eup %4972 }
 0x428   :  { %v1664_v39 = vmul.f32 %v4973_v38, %v1458_v37  ;;  %v4709_v38 = vpack.c.bf16 %v2048_v36, %v2047_v34  ;;  %v2055_v34 = vld [vmem:[%s6931_s2 + $0x1e0] sm:$0xff] }
 0x42a   :  { %4360 = vmatmul.mubr.msk.f32.vlgmr.msra.gmra.mrb[24].mxu0 %vm1667_vm13, %v1664_v39  ;;  %v1665_v41 = vmul.f32 %v1664_v39, %v1658_v0  ;;  %v4705_v0 = vpack.c.bf16 %v2046_v21, %v2045_v26  ;;  %v2001_v39 = vld [vmem:[%s6931_s2 + $0x30] sm:$0xff]  ;;  %v4693_v26 = vpack.c.bf16 %v2024_v8, %v2023_v6  ;;  %v2007_v21 = vld [vmem:[%s6931_s2 + $0x60] sm:$0xff] }
 0x42b   :  { %4363 = vmatpush3.msk.msra.mxu0 %vm5965_vm12, %v5004_v62  ;;  %4364 = vmatprep.mubr.msk.f32.mxu0 %vm5003_vm10, %v5001_v4  ;;  %v1999_v62 = vld [vmem:[%s6931_s2 + $0x20] sm:$0xff] }
 0x42c   :  { %v1666_v42 = vsub.f32 %v1459_v40, %v1665_v41  ;;  %4706 = vmatprep.subr.bf16.mxu1 %v4705_v0  ;;  %v4679_v37 = vpack.c.bf16 %v2000_v27, %v1999_v62  ;;  %v2031_v40 = vld [vmem:[%s6931_s2 + $0x120] sm:$0xff]  ;;  %v4681_v41 = vpack.c.bf16 %v2018_v33, %v2017_v3  ;;  %v2008_v62 = vld [vmem:[%s6931_s2 + $0x68] sm:$0xff]  ;;  %v4723_v3 = vpack.c.bf16 %v2038_v29, %v2037_v35  ;;  %v2026_v33 = vld [vmem:[%s6931_s2 + $0xf8] sm:$0xff] }
 0x42d   :  { %4708 = vmatpush3.bf16.msra.mxu1 %v4707_v31  ;;  %v4695_v0 = vpack.c.bf16 %v2008_v62, %v2007_v21  ;;  %v2025_v31 = vld [vmem:[%s6931_s2 + $0xf0] sm:$0xff]  ;;  %v2059_v8 = vld [vmem:[%s6931_s2 + $0x200] sm:$0xff] }
 0x42e   :  { %4365 = vmatmul.mubr.msk.f32.vlgmr.msra.gmra.mrb[26].mxu0 %vm1667_vm13, %v1666_v42  ;;  %v2002_v42 = vld [vmem:[%s6931_s2 + $0x38] sm:$0xff]  ;;  %4710 = vmatprep.subr.bf16.mxu1 %v4709_v38  ;;  %v4697_v36 = vpack.c.bf16 %v2026_v33, %v2025_v31  ;;  %v2009_v38 = vld [vmem:[%s6931_s2 + $0x70] sm:$0xff]  ;;  %v3750_v31 = vld [vmem:[%s6931_s2 + $0x240] sm:$0xff] }
 0x42f   :  { %v3751_v33 = vld [vmem:[%s6931_s2 + $0x248] sm:$0xff] }
 0x4fd   :  { %v1737_v43 = vpop.f32.mrb[24].mxu0 }
 0x4fe   :  { %v1817_v47 = vrot.slane %v1737_v43, %v5986_v25  ;;  %v4361_v49 = vpop.f32.mrb[25].mxu0  ;;  %v2032_v43 = vld [vmem:[%s6931_s2 + $0x128] sm:$0xff] }
 0x4ff   :  { %v4711_v49 = vpack.c.bf16 %v2032_v43, %v2031_v40  ;;  %v2040_v43 = vld [vmem:[%s6931_s2 + $0x168] sm:$0xff] }
 0x500   :  { %v1818_v52 = vmul.f32 %v1817_v47, %v1456_v60  ;;  %v1819_v30 = vmul.f32 %v1817_v47, %v5950_v57  ;;  %v2012_v60 = vld [vmem:[%s6931_s2 + $0x88] sm:$0xff]  ;;  %v1995_v57 = vld [vmem:[%s6931_s2] sm:$0xff] }
 0x501   :  { %v1810_v51 = vpop.f32.mrb[26].mxu0  ;;  %v4669_v10 = vpack.c.bf16 %v2012_v60, %v2011_v63  ;;  %v4671_v14 = vpack.c.bf16 %v1996_v11, %v1995_v57  ;;  %v2019_v47 = vld [vmem:[%s6931_s2 + $0xc0] sm:$0xff]  ;;  %v2004_v63 = vld [vmem:[%s6931_s2 + $0x48] sm:$0xff]  ;;  %4712 = vmatpush3.bf16.msra.mxu1 %v4711_v49  ;;  %v2022_v11 = vld [vmem:[%s6931_s2 + $0xd8] sm:$0xff] }
 0x502   :  { %v1823_v23 = vrot.slane %v1810_v51, %v5986_v25  ;;  %v4366_v55 = vpop.f32.mrb[27].mxu0  ;;  %v2020_v51 = vld [vmem:[%s6931_s2 + $0xc8] sm:$0xff] }
 0x503   :  { %4670 = vmatprep.subr.bf16.mxu0 %v4669_v10  ;;  %v2033_v55 = vld [vmem:[%s6931_s2 + $0x130] sm:$0xff] }
 0x504   :  { %v1824_v56 = vadd.f32 %v1823_v23, %v1818_v52  ;;  %v1825_v58 = vadd.f32 %v1823_v23, %v1819_v30  ;;  %4672 = vmatpush3.bf16.msra.mxu0 %v4671_v14  ;;  %v2049_v52 = vld [vmem:[%s6931_s2 + $0x1b0] sm:$0xff]  ;;  %v2050_v30 = vld [vmem:[%s6931_s2 + $0x1b8] sm:$0xff]  ;;  %v2052_v14 = vld [vmem:[%s6931_s2 + $0x1c8] sm:$0xff] }
 0x505   :  { %4674 = vmatprep.subr.bf16.mxu0 %v4673_v15  ;;  %v4713_v23 = vpack.c.bf16 %v2050_v30, %v2049_v52  ;;  %v2021_v10 = vld [vmem:[%s6931_s2 + $0xd0] sm:$0xff]  ;;  %v4717_v18 = vpack.c.bf16 %v2052_v14, %v2051_v12 }
 0x506   :  { %v1826_v48 = vmax.f32 %v1824_v56, 0.0  ;;  %v1827_v61 = vmax.f32 %v1825_v58, 0.0  ;;  %v2034_v56 = vld [vmem:[%s6931_s2 + $0x138] sm:$0xff]  ;;  %v4683_v58 = vpack.c.bf16 %v2002_v42, %v2001_v39  ;;  %v4689_v13 = vpack.c.bf16 %v2022_v11, %v2021_v10  ;;  %v2005_v15 = vld [vmem:[%s6931_s2 + $0x50] sm:$0xff]  ;;  %v2039_v42 = vld [vmem:[%s6931_s2 + $0x160] sm:$0xff] }
 0x507   :  { %v4715_v60 = vpack.c.bf16 %v2034_v56, %v2033_v55  ;;  %4714 = vmatprep.subr.bf16.mxu1 %v4713_v23  ;;  %v4691_v19 = vpack.c.bf16 %v2006_v17, %v2005_v15  ;;  %v2010_v39 = vld [vmem:[%s6931_s2 + $0x78] sm:$0xff]  ;;  %v2057_v55 = vld [vmem:[%s6931_s2 + $0x1f0] sm:$0xff]  ;;  %v3767_v10 = vld [vmem:[%s6931_s2 + $0x2c8] sm:$0xff] }
 0x508   :  { %1835 = vrot.lane.b32.xlu1 %v1827_v61, %s5005_s11  ;;  %1829 = vrot.lane.b32.xlu0 %v1826_v48, %s5005_s11  ;;  %v4685_v48 = vpack.c.bf16 %v2020_v51, %v2019_v47  ;;  %v2003_v61 = vld [vmem:[%s6931_s2 + $0x40] sm:$0xff]  ;;  %v4727_v47 = vpack.c.bf16 %v2040_v43, %v2039_v42  ;;  %v2058_v56 = vld [vmem:[%s6931_s2 + $0x1f8] sm:$0xff]  ;;  %s5006_s11 = smov 120  }
 0x509   :  { %4676 = vmatpush3.bf16.msra.mxu0 %v4675_v59  ;;  %v4687_v57 = vpack.c.bf16 %v2004_v63, %v2003_v61  ;;  %4716 = vmatpush3.bf16.msra.mxu1 %v4715_v60  ;;  %v4719_v59 = vpack.c.bf16 %v2036_v7, %v2035_v20  ;;  %v2042_v61 = vld [vmem:[%s6931_s2 + $0x178] sm:$0xff] }
 0x50a   :  { %4678 = vmatprep.subr.bf16.mxu0 %v4677_v16  ;;  %4718 = vmatprep.subr.bf16.mxu1 %v4717_v18  ;;  %v2054_v16 = vld [vmem:[%s6931_s2 + $0x1d8] sm:$0xff] }
 0x50b   :  { %v4721_v27 = vpack.c.bf16 %v2054_v16, %v2053_v9  ;;  %v2060_v9 = vld [vmem:[%s6931_s2 + $0x208] sm:$0xff] }
 0x50c   :  { %v4734_v62 = vpack.c.bf16 %v2060_v9, %v2059_v8  ;;  %v3774_v8 = vld [vmem:[%s6931_s2 + $0x300] sm:$0xff]  ;;  %v3775_v9 = vld [vmem:[%s6931_s2 + $0x308] sm:$0xff] }
 0x50d   :  { %4680 = vmatpush3.bf16.msra.mxu0 %v4679_v37  ;;  %4720 = vmatpush3.bf16.msra.mxu1 %v4719_v59  ;;  %v2056_v37 = vld [vmem:[%s6931_s2 + $0x1e8] sm:$0xff] }
 0x50e   :  { %4682 = vmatprep.subr.bf16.mxu0 %v4681_v41  ;;  %4722 = vmatprep.subr.bf16.mxu1 %v4721_v27  ;;  %v4725_v40 = vpack.c.bf16 %v2056_v37, %v2055_v34  ;;  %v4699_v41 = vpack.c.bf16 %v2010_v39, %v2009_v38  ;;  %v2061_v27 = vld [vmem:[%s6931_s2 + $0x210] sm:$0xff]  ;;  %v4747_v38 = vpack.c.bf16 %v3751_v33, %v3750_v31 }
 0x50f   :  { %v3768_v34 = vld [vmem:[%s6931_s2 + $0x2d0] sm:$0xff] }
 0x510   :  { %v3752_v39 = vld [vmem:[%s6931_s2 + $0x250] sm:$0xff] }
 0x511   :  { %4684 = vmatpush3.bf16.msra.mxu0 %v4683_v58  ;;  %4724 = vmatpush3.bf16.msra.mxu1 %v4723_v3  ;;  %v4729_v58 = vpack.c.bf16 %v2058_v56, %v2057_v55 }
 0x512   :  { %4686 = vmatprep.subr.bf16.mxu0 %v4685_v48  ;;  %4726 = vmatprep.subr.bf16.mxu1 %v4725_v40  ;;  %v2041_v48 = vld [vmem:[%s6931_s2 + $0x170] sm:$0xff]  ;;  %v2063_v40 = vld [vmem:[%s6931_s2 + $0x220] sm:$0xff] }
 0x513   :  { %v4731_v60 = vpack.c.bf16 %v2042_v61, %v2041_v48  ;;  %v2065_v48 = vld [vmem:[%s6931_s2 + $0x230] sm:$0xff]  ;;  %v2066_v61 = vld [vmem:[%s6931_s2 + $0x238] sm:$0xff] }
 0x515   :  { %4688 = vmatpush3.bf16.msra.mxu0 %v4687_v57  ;;  %4728 = vmatpush3.bf16.msra.mxu1 %v4727_v47  ;;  %v3766_v57 = vld [vmem:[%s6931_s2 + $0x2c0] sm:$0xff] }
 0x516   :  { %4690 = vmatprep.subr.bf16.mxu0 %v4689_v13  ;;  %4730 = vmatprep.subr.bf16.mxu1 %v4729_v58  ;;  %v4745_v11 = vpack.c.bf16 %v3767_v10, %v3766_v57  ;;  %v3754_v58 = vld [vmem:[%s6931_s2 + $0x260] sm:$0xff]  ;;  %v3755_v10 = vld [vmem:[%s6931_s2 + $0x268] sm:$0xff] }
 0x519   :  { %4692 = vmatpush3.bf16.msra.mxu0 %v4691_v19  ;;  %4732 = vmatpush3.bf16.msra.mxu1 %v4731_v60 }
 0x51a   :  { %4694 = vmatprep.subr.bf16.mxu0 %v4693_v26  ;;  %4746 = vmatprep.subr.bf16.mxu1 %v4745_v11  ;;  %v3798_v11 = vld [vmem:[%s6931_s2 + $0x3c0] sm:$0xff] }
 0x51d   :  { %4696 = vmatpush3.bf16.msra.mxu0 %v4695_v0  ;;  %v2062_v0 = vld [vmem:[%s6931_s2 + $0x218] sm:$0xff] }
 0x51e   :  { %4698 = vmatprep.subr.bf16.mxu0 %v4697_v36  ;;  %v3769_v36 = vld [vmem:[%s6931_s2 + $0x2d8] sm:$0xff]  ;;  %v4737_v37 = vpack.c.bf16 %v2062_v0, %v2061_v27  ;;  %v3782_v27 = vld [vmem:[%s6931_s2 + $0x340] sm:$0xff]  ;;  %v3783_v0 = vld [vmem:[%s6931_s2 + $0x348] sm:$0xff] }
 0x521   :  { %4700 = vmatpush3.bf16.msra.mxu0 %v4699_v41  ;;  %v2064_v41 = vld [vmem:[%s6931_s2 + $0x228] sm:$0xff] }
 0x522   :  { %4733 = vmatprep.subr.bf16.mxu0 %v4978_v5  ;;  %v4740_v55 = vpack.c.bf16 %v2064_v41, %v2063_v40  ;;  %v4779_v41 = vpack.c.bf16 %v3783_v0, %v3782_v27  ;;  %v3765_v27 = vld [vmem:[%s6931_s2 + $0x2b8] sm:$0xff] }
 0x57a   :  { %v1836_v22 = vpop.permute.xlu1 %1835  ;;  %v1830_v24 = vpop.permute.xlu0 %1829 }
 0x57b   :  { %1838 = vst.msk [vmem:[#allocation3 + $0xb] sm:$0xff] %vm1832_vm1, %v1836_v22  ;;  %1833 = vst.msk [vmem:[#allocation3 + $0x1] sm:$0xff] %vm1832_vm1, %v1830_v24 }
 0x582   :  { %v1884_v49 = vld [vmem:[#allocation3 + $0x1] sm:$0xff]  ;;  %v1945_v23 = vld [vmem:[#allocation3 + $0xa] sm:$0xff]  ;;  %v1940_v12 = vld [vmem:[#allocation3 + $0x12] sm:$0xf] }
 0x583   :  { %v1866_v51 = vld [vmem:[#allocation3] sm:$0xff]  ;;  %1890 = vrot.lane.b32.xlu1 %v1884_v49, %s6955_s10  ;;  %v1867_v30 = vld [vmem:[#allocation3 + $0x8] sm:$0xff]  ;;  %1942 = vst.msk [vmem:[#allocation4 + $0x40] sm:$0xff] %vm1491_vm11, %v1945_v23  ;;  %v1841_v63 = vld [vmem:[#allocation3 + $0x10] sm:$0xf] }
 0x584   :  { %v1944_v52 = vld [vmem:[#allocation3 + $0x2] sm:$0xff]  ;;  %1872 = vrot.lane.b32.xlu0 %v1866_v51, %s6961_s7  ;;  %1842 = vst.msk [vmem:[#allocation4] sm:$0xff] %vm1491_vm11, %v1866_v51  ;;  %1843 = vst.msk [vmem:[#allocation4 + $0x28] sm:$0xff] %vm1491_vm11, %v1867_v30  ;;  %v1868_v14 = vld [vmem:[#allocation3 + $0x10] sm:$0xf] }
 0x585   :  { %1941 = vst.msk [vmem:[#allocation4 + $0x18] sm:$0xff] %vm1491_vm11, %v1944_v52  ;;  %v1885_v13 = vld [vmem:[#allocation3 + $0x9] sm:$0xff]  ;;  %v1886_v17 = vld [vmem:[#allocation3 + $0x11] sm:$0xf] }
 0x586   :  { %1845 = vst.msk [vmem:[#allocation4 + $0x50] sm:$0xf] %vm1844_vm2, %v1841_v63  ;;  %1943 = vst.msk [vmem:[#allocation4 + $0x68] sm:$0xf] %vm1844_vm2, %v1940_v12  ;;  %v1848_v15 = vld [vmem:[#allocation3 + $0x10] sm:$0xf] }
 0x587   :  { %1908 = vrot.lane.b32.xlu1 %v1884_v49, %s5006_s11  ;;  %v1946_v18 = vld [vmem:[#allocation3 + $0x12] sm:$0xf]  ;;  %v3799_v12 = vld [vmem:[%s6931_s2 + $0x3c8] sm:$0xff] }
 0x588   :  { %1852 = vrot.lane.b32.xlu0 %v1866_v51, %s5007_s16  ;;  %v1904_v19 = vld [vmem:[#allocation3 + $0x11] sm:$0xf]  ;;  %v4749_v51 = vpack.c.bf16 %v3769_v36, %v3768_v34  ;;  %v4761_v34 = vpack.c.bf16 %v3775_v9, %v3774_v8  ;;  %v3805_v9 = vld [vmem:[%s6931_s2 + $0x3f8] sm:$0xff] }
 0x589   :  { %v1922_v20 = vld [vmem:[#allocation3 + $0x11] sm:$0xf] }
 0x58a   :  { %v1964_v7 = vld [vmem:[#allocation3 + $0x12] sm:$0xf] }
 0x58b   :  { %1926 = vrot.lane.b32.xlu1 %v1884_v49, %s5008_s17  ;;  %v3776_v36 = vld [vmem:[%s6931_s2 + $0x310] sm:$0xff] }
 0x58c   :  { %1950 = vrot.lane.b32.xlu0 %v1944_v52, %s5007_s16  ;;  %v3804_v8 = vld [vmem:[%s6931_s2 + $0x3f0] sm:$0xff] }
 0x58f   :  { %1892 = vrot.lane.b32.xlu1 %v1885_v13, %s6955_s10 }
 0x590   :  { %1874 = vrot.lane.b32.xlu0 %v1867_v30, %s6961_s7 }
 0x593   :  { %1876 = vrot.lane.b32.xlu1 %v1868_v14, %s6961_s7  ;;  %v3772_v14 = vld [vmem:[%s6931_s2 + $0x2f0] sm:$0xff] }
 0x594   :  { %1854 = vrot.lane.b32.xlu0 %v1867_v30, %s5007_s16  ;;  %v3770_v30 = vld [vmem:[%s6931_s2 + $0x2e0] sm:$0xff] }
 0x597   :  { %1856 = vrot.lane.b32.xlu1 %v1848_v15, %s5007_s16  ;;  %v3773_v15 = vld [vmem:[%s6931_s2 + $0x2f8] sm:$0xff] }
 0x598   :  { %1894 = vrot.lane.b32.xlu0 %v1886_v17, %s6955_s10  ;;  %v4743_v17 = vpack.c.bf16 %v2066_v61, %v2065_v48  ;;  %v3778_v48 = vld [vmem:[%s6931_s2 + $0x320] sm:$0xff]  ;;  %v3779_v61 = vld [vmem:[%s6931_s2 + $0x328] sm:$0xff] }
 0x59b   :  { %1910 = vrot.lane.b32.xlu1 %v1885_v13, %s5006_s11 }
 0x59c   :  { %1968 = vrot.lane.b32.xlu0 %v1944_v52, %s6961_s7  ;;  %v3753_v52 = vld [vmem:[%s6931_s2 + $0x258] sm:$0xff] }
 0x59d   :  { %v4751_v56 = vpack.c.bf16 %v3753_v52, %v3752_v39  ;;  %v3801_v39 = vld [vmem:[%s6931_s2 + $0x3d8] sm:$0xff] }
 0x59f   :  { %1928 = vrot.lane.b32.xlu1 %v1885_v13, %s5008_s17 }
 0x5a0   :  { %1952 = vrot.lane.b32.xlu0 %v1945_v23, %s5007_s16 }
 0x5a3   :  { %1954 = vrot.lane.b32.xlu1 %v1946_v18, %s5007_s16  ;;  %v4755_v18 = vpack.c.bf16 %v3755_v10, %v3754_v58  ;;  %v3785_v58 = vld [vmem:[%s6931_s2 + $0x358] sm:$0xff]  ;;  %s5009_s16 = smov 16  }
 0x5a4   :  { %1912 = vrot.lane.b32.xlu0 %v1904_v19, %s5006_s11  ;;  %v4777_v19 = vpack.c.bf16 %v3799_v12, %v3798_v11  ;;  %v3763_v12 = vld [vmem:[%s6931_s2 + $0x2a8] sm:$0xff] }
 0x5a7   :  { %1970 = vrot.lane.b32.xlu1 %v1945_v23, %s6961_s7  ;;  %v3771_v23 = vld [vmem:[%s6931_s2 + $0x2e8] sm:$0xff] }
 0x5a8   :  { %1930 = vrot.lane.b32.xlu0 %v1922_v20, %s5008_s17  ;;  %v4753_v57 = vpack.c.bf16 %v3771_v23, %v3770_v30 }
 0x5ac   :  { %1972 = vrot.lane.b32.xlu0 %v1964_v7, %s6961_s7 }
 0x5f5   :  { %v1891_v22 = vpop.permute.xlu1 %1890 }
 0x5f6   :  { %v1873_v24 = vpop.permute.xlu0 %1872 }
 0x5f7   :  { %1881 = vst.msk [vmem:[#allocation4 + $0x8] sm:$0xff] %vm1491_vm11, %v1873_v24  ;;  %v4757_v24 = vpack.c.bf16 %v3773_v15, %v3772_v14  ;;  %v3786_v14 = vld [vmem:[%s6931_s2 + $0x360] sm:$0xff]  ;;  %v3787_v15 = vld [vmem:[%s6931_s2 + $0x368] sm:$0xff] }
 0x5f8   :  { %1899 = vst.msk [vmem:[#allocation4 + $0x8] sm:$0xff] %vm1861_vm3, %v1891_v22 }
 0x5f9   :  { %v1909_v59 = vpop.permute.xlu1 %1908 }
 0x5fa   :  { %v1853_v6 = vpop.permute.xlu0 %1852  ;;  %1917 = vst.msk [vmem:[#allocation4 + $0x10] sm:$0xff] %vm1491_vm11, %v1909_v59  ;;  %v3756_v59 = vld [vmem:[%s6931_s2 + $0x270] sm:$0xff] }
 0x5fb   :  { %1862 = vst.msk [vmem:[#allocation4] sm:$0xff] %vm1861_vm3, %v1853_v6  ;;  %v3757_v6 = vld [vmem:[%s6931_s2 + $0x278] sm:$0xff] }
 0x5fd   :  { %v1927_v26 = vpop.permute.xlu1 %1926 }
 0x5fe   :  { %v1951_v16 = vpop.permute.xlu0 %1950  ;;  %1935 = vst.msk [vmem:[#allocation4 + $0x10] sm:$0xff] %vm1861_vm3, %v1927_v26  ;;  %v3758_v26 = vld [vmem:[%s6931_s2 + $0x280] sm:$0xff] }
 0x5ff   :  { %1959 = vst.msk [vmem:[#allocation4 + $0x18] sm:$0xff] %vm1861_vm3, %v1951_v16  ;;  %v6231_v21 = vld [vmem:[#allocation4 + $0x8] sm:$0xff]  ;;  %v4759_v16 = vpack.c.bf16 %v3757_v6, %v3756_v59  ;;  %v3780_v59 = vld [vmem:[%s6931_s2 + $0x330] sm:$0xff]  ;;  %v3781_v6 = vld [vmem:[%s6931_s2 + $0x338] sm:$0xff] }
 0x600   :  { %2140 = vmatprep.mubr.f32.mxu0 %v6231_v21 }
 0x601   :  { %v1893_v35 = vpop.permute.xlu1 %1892 }
 0x602   :  { %v1875_v29 = vpop.permute.xlu0 %1874  ;;  %v6240_v3 = vld [vmem:[#allocation4] sm:$0xff] }
 0x603   :  { %1882 = vst.msk [vmem:[#allocation4 + $0x30] sm:$0xff] %vm1491_vm11, %v1875_v29  ;;  %2141 = vmatmul.mubr.f32.vlgmr.msra.gmra.mrb[28].mxu0 %v6240_v3 }
 0x604   :  { %1900 = vst.msk [vmem:[#allocation4 + $0x30] sm:$0xff] %vm1861_vm3, %v1893_v35  ;;  %4735 = vmatpush3.bf16.msra.mxu0 %v4734_v62  ;;  %v3759_v62 = vld [vmem:[%s6931_s2 + $0x288] sm:$0xff] }
 0x605   :  { %4736 = vmatprep.subr.bf16.mxu0 %v4978_v5  ;;  %v1877_v42 = vpop.permute.xlu1 %1876  ;;  %v6269_v49 = vld [vmem:[#allocation4 + $0x10] sm:$0xff]  ;;  %v4763_v40 = vpack.c.bf16 %v3759_v62, %v3758_v26  ;;  %v3764_v62 = vld [vmem:[%s6931_s2 + $0x2b0] sm:$0xff] }
 0x606   :  { %v1855_v43 = vpop.permute.xlu0 %1854  ;;  %v6267_v47 = vld [vmem:[#allocation4 + $0x18] sm:$0xff]  ;;  %1883 = vst.msk [vmem:[#allocation4 + $0x58] sm:$0xf] %vm1844_vm2, %v1877_v42 }
 0x607   :  { %1863 = vst.msk [vmem:[#allocation4 + $0x28] sm:$0xff] %vm1861_vm3, %v1855_v43  ;;  %2220 = vmatprep.mubr.f32.mxu1 %v6267_v47  ;;  %v3760_v42 = vld [vmem:[%s6931_s2 + $0x290] sm:$0xff]  ;;  %v3761_v43 = vld [vmem:[%s6931_s2 + $0x298] sm:$0xff] }
 0x608   :  { %2221 = vmatmul.mubr.f32.vlgmr.msra.gmra.mrb[24].mxu1 %v6269_v49  ;;  %4738 = vmatpush3.bf16.msra.mxu0 %v4737_v37  ;;  %v3777_v37 = vld [vmem:[%s6931_s2 + $0x318] sm:$0xff]  ;;  %v4767_v10 = vpack.c.bf16 %v3761_v43, %v3760_v42  ;;  %v3790_v42 = vld [vmem:[%s6931_s2 + $0x380] sm:$0xff]  ;;  %v3791_v43 = vld [vmem:[%s6931_s2 + $0x388] sm:$0xff] }
 0x609   :  { %4748 = vmatpush3.bf16.msra.mxu1 %v4747_v38  ;;  %4739 = vmatprep.subr.bf16.mxu0 %v4978_v5  ;;  %v1857_v63 = vpop.permute.xlu1 %1856  ;;  %v3800_v38 = vld [vmem:[%s6931_s2 + $0x3d0] sm:$0xff] }
 0x60a   :  { %v1895_v60 = vpop.permute.xlu0 %1894  ;;  %4750 = vmatprep.subr.bf16.mxu1 %v4749_v51  ;;  %1865 = vst.msk [vmem:[#allocation4 + $0x50] sm:$0xf] %vm1864_vm4, %v1857_v63  ;;  %v3784_v51 = vld [vmem:[%s6931_s2 + $0x350] sm:$0xff]  ;;  %v3802_v63 = vld [vmem:[%s6931_s2 + $0x3e0] sm:$0xff] }
 0x60b   :  { %1901 = vst.msk [vmem:[#allocation4 + $0x58] sm:$0xf] %vm1864_vm4, %v1895_v60  ;;  %v6305_v13 = vld [vmem:[#allocation4 + $0x30] sm:$0xff]  ;;  %v4783_v11 = vpack.c.bf16 %v3785_v58, %v3784_v51  ;;  %v3808_v58 = vld [vmem:[%s6931_s2 + $0x410] sm:$0xff] }
 0x60c   :  { %2145 = vmatprep.mubr.f32.mxu0 %v6305_v13  ;;  %4741 = vmatpush3.bf16.msra.mxu0 %v4740_v55  ;;  %v4765_v55 = vpack.c.bf16 %v3777_v37, %v3776_v36  ;;  %v3803_v60 = vld [vmem:[%s6931_s2 + $0x3e8] sm:$0xff]  ;;  %v3788_v36 = vld [vmem:[%s6931_s2 + $0x370] sm:$0xff]  ;;  %v3789_v37 = vld [vmem:[%s6931_s2 + $0x378] sm:$0xff] }
 0x60d   :  { %4752 = vmatpush3.bf16.msra.mxu1 %v4751_v56  ;;  %4742 = vmatprep.subr.bf16.mxu0 %v4978_v5  ;;  %v1911_v20 = vpop.permute.xlu1 %1910  ;;  %v4781_v56 = vpack.c.bf16 %v3801_v39, %v3800_v38  ;;  %v3806_v38 = vld [vmem:[%s6931_s2 + $0x400] sm:$0xff]  ;;  %v3807_v39 = vld [vmem:[%s6931_s2 + $0x408] sm:$0xff] }
 0x60e   :  { %v1969_v7 = vpop.permute.xlu0 %1968  ;;  %v6315_v22 = vld [vmem:[#allocation4 + $0x28] sm:$0xff]  ;;  %4754 = vmatprep.subr.bf16.mxu1 %v4753_v57  ;;  %1918 = vst.msk [vmem:[#allocation4 + $0x38] sm:$0xff] %vm1491_vm11, %v1911_v20 }
 0x60f   :  { %1977 = vst.msk [vmem:[#allocation4 + $0x20] sm:$0xff] %vm1491_vm11, %v1969_v7  ;;  %2146 = vmatmul.mubr.f32.gmra.mrb[30].mxu0 %v6315_v22  ;;  %v3762_v57 = vld [vmem:[%s6931_s2 + $0x2a0] sm:$0xff]  ;;  %v4769_v7 = vpack.c.bf16 %v3779_v61, %v3778_v48  ;;  %v3809_v48 = vld [vmem:[%s6931_s2 + $0x418] sm:$0xff]  ;;  %v4795_v61 = vpack.c.bf16 %v3791_v43, %v3790_v42 }
 0x610   :  { %4744 = vmatpush3.bf16.msra.mxu0 %v4743_v17  ;;  %v4771_v26 = vpack.c.bf16 %v3763_v12, %v3762_v57  ;;  %v3817_v12 = vld [vmem:[%s6931_s2 + $0x458] sm:$0xff] }
 0x611   :  { %4756 = vmatpush3.bf16.msra.mxu1 %v4755_v18  ;;  %4778 = vmatprep.subr.bf16.mxu0 %v4777_v19  ;;  %v1929_v35 = vpop.permute.xlu1 %1928  ;;  %v6346_v33 = vld [vmem:[#allocation4 + $0x50] sm:$0xf] }
 0x612   :  { %v1953_v29 = vpop.permute.xlu0 %1952  ;;  %v6344_v31 = vld [vmem:[#allocation4 + $0x58] sm:$0xf]  ;;  %4758 = vmatprep.subr.bf16.mxu1 %v4757_v24  ;;  %1936 = vst.msk [vmem:[#allocation4 + $0x38] sm:$0xff] %vm1861_vm3, %v1929_v35  ;;  %v4785_v24 = vpack.c.bf16 %v3803_v60, %v3802_v63 }
 0x613   :  { %1960 = vst.msk [vmem:[#allocation4 + $0x40] sm:$0xff] %vm1861_vm3, %v1953_v29  ;;  %2150 = vmatprep.mubr.f32.mxu0 %v6344_v31  ;;  %v4773_v29 = vpack.c.bf16 %v3781_v6, %v3780_v59  ;;  %v3792_v63 = vld [vmem:[%s6931_s2 + $0x390] sm:$0xff]  ;;  %v3795_v59 = vld [vmem:[%s6931_s2 + $0x3a8] sm:$0xff]  ;;  %v3813_v6 = vld [vmem:[%s6931_s2 + $0x438] sm:$0xff] }
 0x614   :  { %2151 = vmatmul.mubr.f32.gmra.mrb[32].mxu0 %v6346_v33 }
 0x615   :  { %4760 = vmatpush3.bf16.msra.mxu1 %v4759_v16  ;;  %4383 = vmatprep.mubr.msk.f32.mxu0 %vm5003_vm10, %v5001_v4  ;;  %v1955_v52 = vpop.permute.xlu1 %1954  ;;  %v4787_v16 = vpack.c.bf16 %v3787_v15, %v3786_v14  ;;  %v3810_v14 = vld [vmem:[%s6931_s2 + $0x420] sm:$0xff]  ;;  %v3811_v15 = vld [vmem:[%s6931_s2 + $0x428] sm:$0xff] }
 0x616   :  { %v1913_v30 = vpop.permute.xlu0 %1912  ;;  %4762 = vmatprep.subr.bf16.mxu1 %v4761_v34  ;;  %v6375_v23 = vld [vmem:[#allocation4 + $0x20] sm:$0xff]  ;;  %1961 = vst.msk [vmem:[#allocation4 + $0x68] sm:$0xf] %vm1864_vm4, %v1955_v52  ;;  %v4789_v34 = vpack.c.bf16 %v3805_v9, %v3804_v8 }
 0x617   :  { %1919 = vst.msk [vmem:[#allocation4 + $0x60] sm:$0xf] %vm1844_vm2, %v1913_v30  ;;  %v4793_v30 = vpack.c.bf16 %v3807_v39, %v3806_v38 }
 0x618   :  { %4384 = vmatmul.mubr.msk.f32.vlgmr.msra.gmra.mrb[34].mxu0 %vm1491_vm11, %v6375_v23 }
 0x619   :  { %4764 = vmatpush3.bf16.msra.mxu1 %v4763_v40  ;;  %4780 = vmatpush3.bf16.msra.mxu0 %v4779_v41  ;;  %v1971_v17 = vpop.permute.xlu1 %1970  ;;  %v6410_v20 = vld [vmem:[#allocation4 + $0x38] sm:$0xff]  ;;  %v4775_v40 = vpack.c.bf16 %v3765_v27, %v3764_v62  ;;  %v4791_v41 = vpack.c.bf16 %v3789_v37, %v3788_v36  ;;  %v3797_v62 = vld [vmem:[%s6931_s2 + $0x3b8] sm:$0xff] }
 0x61a   :  { %v1931_v18 = vpop.permute.xlu0 %1930  ;;  %v6408_v19 = vld [vmem:[#allocation4 + $0x40] sm:$0xff]  ;;  %4766 = vmatprep.subr.bf16.mxu1 %v4765_v55  ;;  %4782 = vmatprep.subr.bf16.mxu0 %v4781_v56  ;;  %1978 = vst.msk [vmem:[#allocation4 + $0x48] sm:$0xff] %vm1491_vm11, %v1971_v17  ;;  %v3814_v55 = vld [vmem:[%s6931_s2 + $0x440] sm:$0xff]  ;;  %v3815_v56 = vld [vmem:[%s6931_s2 + $0x448] sm:$0xff] }
 0x61b   :  { %1937 = vst.msk [vmem:[#allocation4 + $0x60] sm:$0xf] %vm1864_vm4, %v1931_v18  ;;  %2225 = vmatprep.mubr.f32.mxu1 %v6408_v19  ;;  %4386 = vmatprep.mubr.msk.f32.mxu0 %vm5003_vm10, %v5001_v4  ;;  %v4810_v57 = vpack.c.bf16 %v3815_v56, %v3814_v55 }
 0x61c   :  { %2226 = vmatmul.mubr.f32.gmra.mrb[26].mxu1 %v6410_v20 }
 0x61d   :  { %4768 = vmatpush3.bf16.msra.mxu1 %v4767_v10  ;;  %4784 = vmatpush3.bf16.msra.mxu0 %v4783_v11  ;;  %v6436_v35 = vld [vmem:[#allocation4 + $0x68] sm:$0xf]  ;;  %v4797_v10 = vpack.c.bf16 %v3809_v48, %v3808_v58  ;;  %v3816_v11 = vld [vmem:[%s6931_s2 + $0x450] sm:$0xff] }
 0x61e   :  { %v1973_v0 = vpop.permute.xlu0 %1972  ;;  %4770 = vmatprep.subr.bf16.mxu1 %v4769_v7  ;;  %4786 = vmatprep.subr.bf16.mxu0 %v4785_v24  ;;  %v4813_v18 = vpack.c.bf16 %v3817_v12, %v3816_v11  ;;  %v4801_v7 = vpack.c.bf16 %v3811_v15, %v3810_v14  ;;  %v3794_v24 = vld [vmem:[%s6931_s2 + $0x3a0] sm:$0xff] }
 0x61f   :  { %1979 = vst.msk [vmem:[#allocation4 + $0x70] sm:$0xf] %vm1844_vm2, %v1973_v0  ;;  %2230 = vmatprep.mubr.f32.mxu1 %v6436_v35  ;;  %v4803_v8 = vpack.c.bf16 %v3795_v59, %v3794_v24 }
 0x621   :  { %4772 = vmatpush3.bf16.msra.mxu1 %v4771_v26  ;;  %4788 = vmatpush3.bf16.msra.mxu0 %v4787_v16  ;;  %v6460_v52 = vld [vmem:[#allocation4 + $0x48] sm:$0xff]  ;;  %v3796_v16 = vld [vmem:[%s6931_s2 + $0x3b0] sm:$0xff] }
 0x622   :  { %v6458_v51 = vld [vmem:[#allocation4 + $0x60] sm:$0xf]  ;;  %4774 = vmatprep.subr.bf16.mxu1 %v4773_v29  ;;  %4790 = vmatprep.subr.bf16.mxu0 %v4789_v34  ;;  %v4807_v27 = vpack.c.bf16 %v3797_v62, %v3796_v16 }
 0x623   :  { %2231 = vmatmul.mubr.f32.gmra.mrb[28].mxu1 %v6458_v51  ;;  %4387 = vmatmul.mubr.msk.f32.gmra.mrb[36].mxu0 %vm1491_vm11, %v6460_v52 }
 0x624   :  { %2453 = vmatprep.mubr.f32.mxu1 %v6231_v21  ;;  %4389 = vmatprep.mubr.msk.f32.mxu0 %vm5003_vm10, %v5001_v4  ;;  %v3793_v21 = vld [vmem:[%s6931_s2 + $0x398] sm:$0xff] }
 0x625   :  { %4776 = vmatpush3.bf16.msra.mxu1 %v4775_v40  ;;  %4792 = vmatpush3.bf16.msra.mxu0 %v4791_v41  ;;  %v4799_v17 = vpack.c.bf16 %v3793_v21, %v3792_v63 }
 0x626   :  { %v1994_v60 = vld [vmem:[#allocation4 + $0x70] sm:$0xf]  ;;  %4794 = vmatprep.subr.bf16.mxu0 %v4793_v30  ;;  %4809 = vmatprep.subr.bf16.mxu1 %v4978_v5 }
 0x627   :  { %4390 = vmatmul.mubr.msk.f32.gmra.mrb[38].mxu0 %vm1491_vm11, %v1994_v60 }
 0x628   :  { %2454 = vmatmul.mubr.f32.vlgmr.msra.gmra.mrb[30].mxu1 %v6240_v3  ;;  %2533 = vmatprep.mubr.f32.mxu0 %v6267_v47  ;;  %v3818_v3 = vld [vmem:[%s6931_s2 + $0x460] sm:$0xff]  ;;  %v3819_v47 = vld [vmem:[%s6931_s2 + $0x468] sm:$0xff] }
 0x629   :  { %2458 = vmatprep.mubr.f32.mxu1 %v6305_v13  ;;  %4796 = vmatpush3.bf16.msra.mxu0 %v4795_v61  ;;  %v3812_v13 = vld [vmem:[%s6931_s2 + $0x430] sm:$0xff]  ;;  %v4816_v9 = vpack.c.bf16 %v3819_v47, %v3818_v3  ;;  %v2632_v47 = vshra.s32 %v5869_v2, 2 }
 0x62a   :  { %4811 = vmatpush3.bf16.msra.mxu1 %v4810_v57  ;;  %4798 = vmatprep.subr.bf16.mxu0 %v4797_v10  ;;  %v4805_v26 = vpack.c.bf16 %v3813_v6, %v3812_v13  ;;  %v2633_v13 = vand.u32 3, %v5869_v2 }
 0x62b   :  { %4812 = vmatprep.subr.bf16.mxu1 %v4978_v5  ;;  %v2634_v62 = vmul.u32 10, %v2632_v47 }
 0x62c   :  { %2459 = vmatmul.mubr.f32.gmra.mrb[32].mxu1 %v6315_v22  ;;  %v3820_v22 = vld [vmem:[%s6931_s2 + $0x470] sm:$0xff] }
 0x62d   :  { %2463 = vmatprep.mubr.f32.mxu1 %v6344_v31  ;;  %4800 = vmatpush3.bf16.msra.mxu0 %v4799_v17  ;;  %v3821_v31 = vld [vmem:[%s6931_s2 + $0x478] sm:$0xff] }
 0x62e   :  { %4814 = vmatpush3.bf16.msra.mxu1 %v4813_v18  ;;  %4802 = vmatprep.subr.bf16.mxu0 %v4801_v7  ;;  %v4819_v0 = vpack.c.bf16 %v3821_v31, %v3820_v22  ;;  %v2635_v22 = vmul.u32 2, %v2633_v13 }
 0x62f   :  { %4815 = vmatprep.subr.bf16.mxu1 %v4978_v5 }
 0x630   :  { %2464 = vmatmul.mubr.f32.gmra.mrb[34].mxu1 %v6346_v33 }
 0x631   :  { %4804 = vmatpush3.bf16.msra.mxu0 %v4803_v8  ;;  %4408 = vmatprep.mubr.msk.f32.mxu1 %vm5003_vm10, %v5001_v4 }
 0x632   :  { %4817 = vmatpush3.bf16.msra.mxu1 %v4816_v9  ;;  %4806 = vmatprep.subr.bf16.mxu0 %v4805_v26 }
 0x633   :  { %4818 = vmatprep.subr.bf16.mxu1 %v4978_v5 }
 0x635   :  { %4808 = vmatpush3.bf16.msra.mxu0 %v4807_v27 }
 0x636   :  { %4820 = vmatpush3.bf16.msra.mxu1 %v4819_v0  ;;  %4821 = vmatprep.subr.bf16.mxu0 %v4978_v5 }
 0x637   :  { %4824 = vmatprep.subr.bf16.mxu1 %v4978_v5 }
 0x638   :  { %2534 = vmatmul.mubr.f32.vlgmr.msra.gmra.mrb[40].mxu0 %v6269_v49 }
 0x639   :  { %4409 = vmatmul.mubr.msk.f32.vlgmr.msra.gmra.mrb[36].mxu1 %vm1491_vm11, %v6375_v23  ;;  %2538 = vmatprep.mubr.f32.mxu0 %v6408_v19 }
 0x63a   :  { %4411 = vmatprep.mubr.msk.f32.mxu1 %vm5003_vm10, %v5001_v4 }
 0x63c   :  { %2539 = vmatmul.mubr.f32.gmra.mrb[42].mxu0 %v6410_v20 }
 0x63d   :  { %4412 = vmatmul.mubr.msk.f32.gmra.mrb[38].mxu1 %vm1491_vm11, %v6460_v52  ;;  %2543 = vmatprep.mubr.f32.mxu0 %v6436_v35 }
 0x63e   :  { %4414 = vmatprep.mubr.msk.f32.mxu1 %vm5003_vm10, %v5001_v4 }
 0x640   :  { %2544 = vmatmul.mubr.f32.gmra.mrb[44].mxu0 %v6458_v51 }
 0x641   :  { %4415 = vmatmul.mubr.msk.f32.gmra.mrb[40].mxu1 %vm1491_vm11, %v1994_v60  ;;  %4423 = vmatprep.mubr.msk.f32.mxu0 %vm5003_vm10, %v5001_v4 }
 0x642   :  { %4432 = vmatprep.mubr.msk.f32.mxu1 %vm5003_vm10, %v5001_v4 }
 0x6d6   :  { %v4019_v49 = vpop.f32.mrb[28].mxu0 }
 0x6d7   :  { %v4020_v33 = vpop.f32.mrb[29].mxu0 }
 0x6d8   :  { %v4021_v23 = vadd.f32 %v4020_v33, %v4019_v49 }
 0x6db   :  { %v4060_v19 = vpop.f32.mrb[24].mxu1 }
 0x6dc   :  { %v4061_v20 = vpop.f32.mrb[25].mxu1 }
 0x6dd   :  { %v4062_v29 = vadd.f32 %v4061_v20, %v4060_v19  ;;  %v2636_v20 = vadd.s32 %v2635_v22, %v2634_v62 }
 0x6df   :  { %v2223_v35 = vadd.f32 %v4062_v29, %v4021_v23  ;;  %vm2637_vm5 = vcmp.eq.s32.totalorder %v5875_v32, %v2636_v20 }
 0x6e2   :  { %v4022_v34 = vpop.f32.mrb[30].mxu0 }
 0x6e3   :  { %v4023_v36 = vpop.f32.mrb[31].mxu0 }
 0x6e4   :  { %v4024_v37 = vadd.f32 %v4023_v36, %v4022_v34 }
 0x6e7   :  { %v4025_v38 = vpop.f32.mrb[32].mxu0 }
 0x6e8   :  { %v4026_v39 = vpop.f32.mrb[33].mxu0 }
 0x6e9   :  { %v4027_v40 = vadd.f32 %v4026_v39, %v4025_v38 }
 0x6eb   :  { %v2302_v41 = vpop.f32.mrb[34].mxu0 }
 0x6ec   :  { %v2303_v42 = vadd.f32 %v2302_v41, %v2223_v35  ;;  %v4385_v43 = vpop.f32.mrb[35].mxu0  ;;  %v2639_v41 = vadd.s32 1, %v2636_v20 }
 0x6ee   :  { %vm2640_vm6 = vcmp.eq.s32.totalorder %v5875_v32, %v2639_v41 }
 0x6ef   :  { %v4063_v51 = vpop.f32.mrb[26].mxu1 }
 0x6f0   :  { %v4064_v52 = vpop.f32.mrb[27].mxu1 }
 0x6f1   :  { %v4065_v30 = vadd.f32 %v4064_v52, %v4063_v51 }
 0x6f3   :  { %v2228_v55 = vadd.f32 %v4065_v30, %v4024_v37 }
 0x6f6   :  { %v4066_v56 = vpop.f32.mrb[28].mxu1  ;;  %v2307_v58 = vpop.f32.mrb[36].mxu0 }
 0x6f7   :  { %v2308_v48 = vadd.f32 %v2307_v58, %v2228_v55  ;;  %v4067_v61 = vpop.f32.mrb[29].mxu1  ;;  %v4388_v63 = vpop.f32.mrb[37].mxu0  ;;  %v2796_v58 = vand.u32 15, %v5869_v2 }
 0x6f8   :  { %v4068_v60 = vadd.f32 %v4067_v61, %v4066_v56  ;;  %v2641_v56 = vsel %vm2640_vm6, 1.0, %v5001_v4  ;;  %v2798_v61 = vand.u32 15, %v5902_v44  ;;  %v2799_v63 = vand.u32 15, %v5905_v45 }
 0x6f9   :  { %vm2804_vm9 = vcmp.eq.s32.totalorder %v2796_v58, %v5875_v32  ;;  %v2802_v44 = vand.u32 15, %v5930_v53  ;;  %v2803_v45 = vand.u32 15, %v5933_v54 }
 0x6fa   :  { %v2233_v57 = vadd.f32 %v4068_v60, %v4027_v40  ;;  %v2312_v10 = vpop.f32.mrb[38].mxu0  ;;  %vm2806_vm14 = vcmp.eq.s32.totalorder %v2798_v61, %v5875_v32  ;;  %vm2807_vm15 = vcmp.eq.s32.totalorder %v2799_v63, %v5875_v32  ;;  %v2800_v60 = vand.u32 15, %v5916_v28  ;;  %v3281_v61 = vld [vmem:[%s6932_s3 + $0x98] sm:$0xff] }
 0x6fb   :  { %v4112_v21 = vpop.f32.mrb[30].mxu1  ;;  %v4391_v11 = vpop.f32.mrb[39].mxu0  ;;  %vm4831_vm1 = vmpackc.low %vm2807_vm15, %vm2806_vm14 }
 0x6fc   :  { %v2313_v12 = vadd.f32 %v2312_v10, %v2233_v57  ;;  %v4113_v14 = vpop.f32.mrb[31].mxu1  ;;  %v2801_v57 = vand.u32 15, %v5919_v50 }
 0x6fd   :  { %v4114_v15 = vadd.f32 %v4113_v14, %v4112_v21 }
 0x6fe   :  { %vm2809_vm6 = vcmp.eq.s32.totalorder %v2801_v57, %v5875_v32  ;;  %v3264_v57 = vld [vmem:[%s6932_s3 + $0x10] sm:$0xff] }
 0x6ff   :  { %v4115_v17 = vpop.f32.mrb[32].mxu1 }
 0x700   :  { %v4116_v18 = vpop.f32.mrb[33].mxu1 }
 0x701   :  { %v4117_v7 = vadd.f32 %v4116_v18, %v4115_v17 }
 0x703   :  { %v4118_v24 = vpop.f32.mrb[34].mxu1 }
 0x704   :  { %v4119_v59 = vpop.f32.mrb[35].mxu1 }
 0x705   :  { %v4120_v3 = vadd.f32 %v4119_v59, %v4118_v24 }
 0x70b   :  { %v4153_v6 = vpop.f32.mrb[40].mxu0 }
 0x70c   :  { %v2615_v8 = vpop.f32.mrb[36].mxu1  ;;  %v4154_v9 = vpop.f32.mrb[41].mxu0 }
 0x70d   :  { %v4155_v26 = vadd.f32 %v4154_v9, %v4153_v6  ;;  %v4410_v16 = vpop.f32.mrb[37].mxu1  ;;  %v2820_v9 = vand.u32 15, %v5875_v32 }
 0x70e   :  { %v3269_v16 = vld [vmem:[%s6932_s3 + $0x38] sm:$0xff] }
 0x70f   :  { %v2536_v31 = vadd.f32 %v4155_v26, %v4114_v15  ;;  %v4156_v27 = vpop.f32.mrb[42].mxu0  ;;  %vm6619_vm14 = vcmp.eq.s32.totalorder %v5884_v1, %v2820_v9 }
 0x710   :  { %v2620_v0 = vpop.f32.mrb[38].mxu1  ;;  %v4157_v49 = vpop.f32.mrb[43].mxu0 }
 0x711   :  { %v2616_v33 = vadd.f32 %v2615_v8, %v2536_v31  ;;  %v4158_v23 = vadd.f32 %v4157_v49, %v4156_v27  ;;  %v4413_v19 = vpop.f32.mrb[39].mxu1 }
 0x712   :  { %v2794_v19 = vld [vmem:[%s6930_s4 + $0x2] sm:$0x1] }
 0x713   :  { %v2629_v29 = vmax.f32 %v2303_v42, %v2616_v33  ;;  %v2541_v35 = vadd.f32 %v4158_v23, %v4117_v7  ;;  %v4159_v34 = vpop.f32.mrb[44].mxu0  ;;  %v2638_v42 = vsel %vm2637_vm5, 1.0, %v5001_v4  ;;  %vm2808_vm5 = vcmp.eq.s32.totalorder %v2800_v60, %v5875_v32 }
 0x714   :  { %v2625_v36 = vpop.f32.mrb[40].mxu1  ;;  %v4160_v37 = vpop.f32.mrb[45].mxu0 }
 0x715   :  { %v2621_v38 = vadd.f32 %v2620_v0, %v2541_v35  ;;  %v4161_v39 = vadd.f32 %v4160_v37, %v4159_v34  ;;  %v4416_v40 = vpop.f32.mrb[41].mxu1 }
 0x717   :  { %v2630_v43 = vmax.f32 %v2308_v48, %v2621_v38  ;;  %v2546_v51 = vadd.f32 %v4161_v39, %v4120_v3  ;;  %v2797_v48 = vand.u32 15, %v5884_v1 }
 0x719   :  { %v2626_v52 = vadd.f32 %v2625_v36, %v2546_v51  ;;  %v4822_v30 = vpack.c.bf16 %v2630_v43, %v2629_v29  ;;  %vm2805_vm12 = vcmp.eq.s32.totalorder %v2797_v48, %v5875_v32  ;;  %v3280_v48 = vld [vmem:[%s6932_s3 + $0x90] sm:$0xff] }
 0x71a   :  { %vm4828_vm13 = vmpackc.low %vm2805_vm12, %vm2804_vm9  ;;  %vm2811_vm9 = vcmp.eq.s32.totalorder %v2803_v45, %v5875_v32  ;;  %v4861_v60 = vpack.c.bf16 %v3281_v61, %v3280_v48  ;;  %v3275_v48 = vld [vmem:[%s6932_s3 + $0x68] sm:$0xff] }
 0x71b   :  { %v2631_v55 = vmax.f32 %v2313_v12, %v2626_v52  ;;  %4823 = vmatpush3.bf16.msra.mxu0 %v4822_v30  ;;  %4826 = vmatpush3.bf16.msra.mxu1 %v4822_v30  ;;  %v3335_v52 = vand.u32 1, %v5875_v32  ;;  %v3334_v30 = vld [vmem:[%s6930_s4 + $0x4] sm:$0x1] }
 0x71c   :  { %4421 = vmatprep.subr.mxu0 %v5001_v4  ;;  %4430 = vmatprep.subr.mxu1 %v5001_v4 }
 0x71f   :  { %4422 = vmatpush3.msk.msra.mxu0 %vm2646_vm7, %v2631_v55  ;;  %4431 = vmatpush3.msk.msra.mxu1 %vm2646_vm7, %v2631_v55  ;;  %vm4834_vm7 = vmpackc.low %vm2809_vm6, %vm2808_vm5  ;;  %vm27_vm5 = vcmask 783360   ;;  %v3278_v55 = vld [vmem:[%s6932_s3 + $0x80] sm:$0xff]  ;;  %vm3338_vm6 = vcmask 15360  }
 0x720   :  { %4424 = vmatmul.mubr.msk.f32.vlgmr.msra.gmra.mrb[46].mxu0 %vm2642_vm8, %v2638_v42  ;;  %4433 = vmatmul.mubr.msk.f32.vlgmr.msra.gmra.mrb[42].mxu1 %vm2642_vm8, %v2641_v56  ;;  %vm2810_vm8 = vcmp.eq.s32.totalorder %v2802_v44, %v5875_v32  ;;  %28 = vst.msk [vmem:[#allocation5 + $0x8] sm:$0x3f] %vm27_vm5, %v5001_v4  ;;  %v3279_v42 = vld [vmem:[%s6932_s3 + $0x88] sm:$0xff]  ;;  %v3262_v56 = vld [vmem:[%s6932_s3] sm:$0xff]  ;;  %v3265_v44 = vld [vmem:[%s6932_s3 + $0x18] sm:$0xff] }
 0x721   :  { %4827 = vmatprep.subr.bf16.mxu0 %v4978_v5  ;;  %4839 = vmatprep.subr.bf16.mxu1 %v4978_v5  ;;  %vm4837_vm12 = vmpackc.low %vm2811_vm9, %vm2810_vm8  ;;  %v4857_v58 = vpack.c.bf16 %v3279_v42, %v3278_v55  ;;  %v3263_v32 = vld [vmem:[%s6932_s3 + $0x8] sm:$0xff]  ;;  %vm3158_vm8 = vcmask 654468   ;;  %v3318_v42 = vld [vmem:[%s6932_s3 + $0x1c0] sm:$0xff] }
 0x722   :  { %4451 = vmatprep.mubr.msk.f32.mxu0 %vm5003_vm10, %v5001_v4  ;;  %4470 = vmatprep.mubr.msk.f32.mxu1 %vm5003_vm10, %v5001_v4  ;;  %v4859_v63 = vpack.c.bf16 %v3263_v32, %v3262_v56  ;;  %v3291_v55 = vld [vmem:[%s6932_s3 + $0xe8] sm:$0xff]  ;;  %v3274_v32 = vld [vmem:[%s6932_s3 + $0x60] sm:$0xff] }
 0x723   :  { %4829 = vmatpush3.bf16.msk.msra.mxu0 %vm4828_vm13, %v5002_v46  ;;  %4841 = vmatpush3.bf16.msk.msra.mxu1 %vm4828_vm13, %v5002_v46  ;;  %vm6614_vm13 = vcmp.eq.s32.totalorder %v5869_v2, %v2820_v9  ;;  %v3314_v9 = vld [vmem:[%s6932_s3 + $0x1a0] sm:$0xff] }
 0x724   :  { %4830 = vmatprep.subr.bf16.mxu0 %v4978_v5  ;;  %4842 = vmatprep.subr.bf16.mxu1 %v4978_v5  ;;  %vm4852_vm15 = vmpackc.low %vm6619_vm14, %vm6614_vm13 }
 0x727   :  { %4832 = vmatpush3.bf16.msk.msra.mxu0 %vm4831_vm1, %v5002_v46  ;;  %4844 = vmatpush3.bf16.msk.msra.mxu1 %vm4831_vm1, %v5002_v46  ;;  %vm25_vm1 = vcmask 785408  }
 0x728   :  { %4833 = vmatprep.subr.bf16.mxu0 %v4978_v5  ;;  %4845 = vmatprep.subr.bf16.mxu1 %v4978_v5  ;;  %26 = vst.msk [vmem:[#allocation5] sm:$0xff] %vm25_vm1, %v5001_v4 }
 0x72b   :  { %4835 = vmatpush3.bf16.msk.msra.mxu0 %vm4834_vm7, %v5002_v46  ;;  %4847 = vmatpush3.bf16.msk.msra.mxu1 %vm4834_vm7, %v5002_v46  ;;  %vm3156_vm7 = vcmask 650368  }
 0x72c   :  { %4836 = vmatprep.subr.bf16.mxu0 %v4978_v5  ;;  %4848 = vmatprep.subr.bf16.mxu1 %v4978_v5 }
 0x72f   :  { %4838 = vmatpush3.bf16.msk.msra.mxu0 %vm4837_vm12, %v5002_v46  ;;  %4850 = vmatpush3.bf16.msk.msra.mxu1 %vm4837_vm12, %v5002_v46 }
 0x730   :  { %4851 = vmatprep.subr.bf16.mxu0 %v4978_v5  ;;  %4858 = vmatprep.subr.bf16.mxu1 %v4857_v58  ;;  %v3319_v58 = vld [vmem:[%s6932_s3 + $0x1c8] sm:$0xff] }
 0x731   :  { %v4905_v61 = vpack.c.bf16 %v3319_v58, %v3318_v42  ;;  %v3331_v58 = vld [vmem:[%s6932_s3 + $0x228] sm:$0xff] }
 0x7f3   :  { %v2716_v28 = vpop.f32.mrb[46].mxu0  ;;  %v2789_v50 = vpop.f32.mrb[42].mxu1 }
 0x7f4   :  { %v2793_v53 = vmax.f32 %v2716_v28, %v2789_v50  ;;  %v4425_v54 = vpop.f32.mrb[47].mxu0  ;;  %v4434_v10 = vpop.f32.mrb[43].mxu1  ;;  %v3282_v28 = vld [vmem:[%s6932_s3 + $0xa0] sm:$0xff] }
 0x7f5   :  { %v3310_v50 = vld [vmem:[%s6932_s3 + $0x180] sm:$0xff] }
 0x7f6   :  { %v2825_v21 = vsel %vm1491_vm11, %v2793_v53, 0.0  ;;  %v2905_v11 = vmul.f32 %v2793_v53, %v2793_v53  ;;  %v3266_v10 = vld [vmem:[%s6932_s3 + $0x20] sm:$0xff] }
 0x7f7   :  { %v2826_v12 = vrot.slane %v2825_v21, 4 }
 0x7f8   :  { %v2906_v14 = vsel %vm1491_vm11, %v2905_v11, 0.0 }
 0x7f9   :  { %v2827_v15 = vadd.f32 %v2826_v12, %v2825_v21  ;;  %v2907_v17 = vrot.slane %v2906_v14, 4  ;;  %v3294_v21 = vld [vmem:[%s6932_s3 + $0x100] sm:$0xff]  ;;  %v3267_v12 = vld [vmem:[%s6932_s3 + $0x28] sm:$0xff] }
 0x7fb   :  { %v2828_v18 = vrot.slane %v2827_v15, 2  ;;  %v2908_v7 = vadd.f32 %v2907_v17, %v2906_v14  ;;  %v3295_v14 = vld [vmem:[%s6932_s3 + $0x108] sm:$0xff] }
 0x7fc   :  { %v4891_v17 = vpack.c.bf16 %v3295_v14, %v3294_v21 }
 0x7fd   :  { %v2829_v24 = vadd.f32 %v2828_v18, %v2827_v15  ;;  %v2909_v59 = vrot.slane %v2908_v7, 2  ;;  %v3284_v15 = vld [vmem:[%s6932_s3 + $0xb0] sm:$0xff]  ;;  %v3285_v18 = vld [vmem:[%s6932_s3 + $0xb8] sm:$0xff] }
 0x7fe   :  { %v4869_v26 = vpack.c.bf16 %v3285_v18, %v3284_v15 }
 0x7ff   :  { %v2830_v3 = vrot.slane %v2829_v24, 1  ;;  %v2910_v47 = vadd.f32 %v2909_v59, %v2908_v7  ;;  %v3312_v7 = vld [vmem:[%s6932_s3 + $0x190] sm:$0xff] }
 0x801   :  { %v2831_v13 = vadd.f32 %v2830_v3, %v2829_v24  ;;  %v2911_v6 = vrot.slane %v2910_v47, 1  ;;  %v3313_v24 = vld [vmem:[%s6932_s3 + $0x198] sm:$0xff]  ;;  %v3296_v3 = vld [vmem:[%s6932_s3 + $0x110] sm:$0xff] }
 0x802   :  { %v4893_v59 = vpack.c.bf16 %v3313_v24, %v3312_v7  ;;  %v3322_v7 = vld [vmem:[%s6932_s3 + $0x1e0] sm:$0xff]  ;;  %v3323_v24 = vld [vmem:[%s6932_s3 + $0x1e8] sm:$0xff] }
 0x803   :  { %4452 = vmatmul.mubr.msk.f32.vlgmr.msra.gmra.mrb[48].mxu0 %vm1491_vm11, %v2831_v13  ;;  %v2912_v8 = vadd.f32 %v2911_v6, %v2910_v47  ;;  %v3297_v47 = vld [vmem:[%s6932_s3 + $0x118] sm:$0xff]  ;;  %v4867_v13 = vpack.c.bf16 %v3267_v12, %v3266_v10  ;;  %v3268_v6 = vld [vmem:[%s6932_s3 + $0x30] sm:$0xff] }
 0x804   :  { %4477 = vmatprep.mubr.msk.f32.mxu0 %vm5003_vm10, %v5001_v4  ;;  %4853 = vmatpush3.bf16.msk.msra.mxu0 %vm4852_vm15, %v5002_v46  ;;  %v3305_v12 = vld [vmem:[%s6932_s3 + $0x158] sm:$0xff] }
 0x805   :  { %4471 = vmatmul.mubr.msk.f32.vlgmr.msra.gmra.mrb[44].mxu1 %vm1491_vm11, %v2912_v8  ;;  %4854 = vmatprep.subr.bf16.mxu0 %v4978_v5  ;;  %v2795_v5 = vld [vmem:[%s6930_s4 + $0x3] sm:$0x1]  ;;  %v4895_v8 = vpack.c.bf16 %v3297_v47, %v3296_v3  ;;  %v3307_v47 = vld [vmem:[%s6932_s3 + $0x168] sm:$0xff] }
 0x806   :  { %4860 = vmatpush3.bf16.msra.mxu1 %v4859_v63  ;;  %v4883_v63 = vpack.c.bf16 %v3275_v48, %v3274_v32  ;;  %v3306_v3 = vld [vmem:[%s6932_s3 + $0x160] sm:$0xff] }
 0x807   :  { %4862 = vmatprep.subr.bf16.mxu1 %v4861_v60  ;;  %v3302_v60 = vld [vmem:[%s6932_s3 + $0x140] sm:$0xff] }
 0x8d6   :  { %v2901_v62 = vpop.f32.mrb[48].mxu0 }
 0x8d7   :  { %v2986_v22 = vmul.f32 0.03125, %v2901_v62  ;;  %v4453_v1 = vpop.f32.mrb[49].mxu0  ;;  %v3286_v62 = vld [vmem:[%s6932_s3 + $0xc0] sm:$0xff] }
 0x8d8   :  { %v2982_v31 = vpop.f32.mrb[44].mxu1  ;;  %v3287_v1 = vld [vmem:[%s6932_s3 + $0xc8] sm:$0xff] }
 0x8d9   :  { %v2988_v27 = vmul.f32 %v2986_v22, %v2986_v22  ;;  %v2987_v0 = vmul.f32 0.03125, %v2982_v31  ;;  %v4472_v49 = vpop.f32.mrb[45].mxu1 }
 0x8da   :  { %v4871_v49 = vpack.c.bf16 %v3269_v16, %v3268_v6  ;;  %v4915_v6 = vpack.c.bf16 %v3307_v47, %v3306_v3 }
 0x8db   :  { %v2989_v33 = vsub.f32 %v2987_v0, %v2988_v27  ;;  %v3298_v27 = vld [vmem:[%s6932_s3 + $0x120] sm:$0xff]  ;;  %v3299_v0 = vld [vmem:[%s6932_s3 + $0x128] sm:$0xff] }
 0x8dd   :  { %v2990_v23 = vadd.f32 1e-05, %v2989_v33  ;;  %v4899_v33 = vpack.c.bf16 %v3299_v0, %v3298_v27  ;;  %v3327_v27 = vld [vmem:[%s6932_s3 + $0x208] sm:$0xff] }
 0x8df   :  { %4974 = vrsqrt.f32 %v2990_v23  ;;  %v4873_v23 = vpack.c.bf16 %v3287_v1, %v3286_v62  ;;  %v3308_v62 = vld [vmem:[%s6932_s3 + $0x170] sm:$0xff]  ;;  %v3326_v1 = vld [vmem:[%s6932_s3 + $0x200] sm:$0xff] }
 0x8e9   :  { %v4975_v20 = vpop.eup %4974 }
 0x8ea   :  { %v2992_v29 = vmul.f32 %v4975_v20, %v2794_v19  ;;  %v3270_v19 = vld [vmem:[%s6932_s3 + $0x40] sm:$0xff]  ;;  %v3271_v20 = vld [vmem:[%s6932_s3 + $0x48] sm:$0xff] }
 0x8ec   :  { %4478 = vmatmul.mubr.msk.f32.vlgmr.msra.gmra.mrb[50].mxu0 %vm34_vm0, %v2992_v29  ;;  %v2993_v35 = vmul.f32 %v2992_v29, %v2986_v22  ;;  %v3315_v22 = vld [vmem:[%s6932_s3 + $0x1a8] sm:$0xff]  ;;  %v4875_v29 = vpack.c.bf16 %v3271_v20, %v3270_v19 }
 0x8ed   :  { %4856 = vmatpush3.bf16.msk.msra.mxu0 %vm4852_vm15, %v5002_v46  ;;  %4484 = vmatprep.mubr.msk.f32.mxu0 %vm5003_vm10, %v5001_v4  ;;  %v4897_v31 = vpack.c.bf16 %v3315_v22, %v3314_v9  ;;  %v3325_v9 = vld [vmem:[%s6932_s3 + $0x1f8] sm:$0xff] }
 0x8ee   :  { %v2994_v34 = vsub.f32 %v2795_v5, %v2993_v35  ;;  %4487 = vmatprep.subr.mxu0 %v5001_v4  ;;  %v3288_v5 = vld [vmem:[%s6932_s3 + $0xd0] sm:$0xff]  ;;  %v3289_v35 = vld [vmem:[%s6932_s3 + $0xd8] sm:$0xff] }
 0x8ef   :  { %v3309_v22 = vld [vmem:[%s6932_s3 + $0x178] sm:$0xff] }
 0x8f0   :  { %4485 = vmatmul.mubr.msk.f32.vlgmr.msra.gmra.mrb[52].mxu0 %vm34_vm0, %v2994_v34  ;;  %vm3342_vm0 = vcmask 1041408   ;;  %v3316_v34 = vld [vmem:[%s6932_s3 + $0x1b0] sm:$0xff] }
 0x8f1   :  { %4489 = vmatprep.mubr.msk.f32.mxu0 %vm5003_vm10, %v5001_v4  ;;  %vm3336_vm10 = vcmp.eq.s32.totalorder %v5869_v2, %v3335_v52  ;;  %v3283_v2 = vld [vmem:[%s6932_s3 + $0xa8] sm:$0xff] }
 0x8f2   :  { %v3337_v45 = vsel %vm3336_vm10, 1.0, %v5001_v4  ;;  %v4863_v4 = vpack.c.bf16 %v3265_v44, %v3264_v57  ;;  %v4865_v11 = vpack.c.bf16 %v3283_v2, %v3282_v28  ;;  %v3303_v57 = vld [vmem:[%s6932_s3 + $0x148] sm:$0xff]  ;;  %v3293_v28 = vld [vmem:[%s6932_s3 + $0xf8] sm:$0xff]  ;;  %v3320_v2 = vld [vmem:[%s6932_s3 + $0x1d0] sm:$0xff] }
 0x8f3   :  { %4488 = vmatpush3.msk.msra.mxu0 %vm3342_vm0, %v3337_v45  ;;  %v4907_v44 = vpack.c.bf16 %v3303_v57, %v3302_v60  ;;  %v3292_v45 = vld [vmem:[%s6932_s3 + $0xf0] sm:$0xff]  ;;  %v3333_v57 = vld [vmem:[%s6932_s3 + $0x238] sm:$0xff] }
 0x8f4   :  { %4490 = vmatmul.mubr.msk.f32.vlgmr.msra.gmra.mrb[54].mxu0 %vm3338_vm6, %v3334_v30  ;;  %4864 = vmatpush3.bf16.msra.mxu1 %v4863_v4  ;;  %v3290_v30 = vld [vmem:[%s6932_s3 + $0xe0] sm:$0xff]  ;;  %v3276_v4 = vld [vmem:[%s6932_s3 + $0x70] sm:$0xff] }
 0x8f5   :  { %4866 = vmatprep.subr.bf16.mxu1 %v4865_v11  ;;  %v4881_v56 = vpack.c.bf16 %v3291_v55, %v3290_v30  ;;  %v3304_v11 = vld [vmem:[%s6932_s3 + $0x150] sm:$0xff] }
 0x8f6   :  { %v4911_v14 = vpack.c.bf16 %v3305_v12, %v3304_v11  ;;  %v3332_v60 = vld [vmem:[%s6932_s3 + $0x230] sm:$0xff] }
 0x8f8   :  { %4868 = vmatpush3.bf16.msra.mxu1 %v4867_v13 }
 0x8f9   :  { %4870 = vmatprep.subr.bf16.mxu1 %v4869_v26 }
 0x8fc   :  { %4872 = vmatpush3.bf16.msra.mxu1 %v4871_v49  ;;  %v4921_v49 = vpack.c.bf16 %v3327_v27, %v3326_v1 }
 0x8fd   :  { %4874 = vmatprep.subr.bf16.mxu1 %v4873_v23 }
 0x900   :  { %4876 = vmatpush3.bf16.msra.mxu1 %v4875_v29 }
 0x9bf   :  { %v3064_v36 = vpop.f32.mrb[50].mxu0 }
 0x9c0   :  { %v3144_v46 = vrot.slane %v3064_v36, %v5986_v25  ;;  %v4479_v37 = vpop.f32.mrb[51].mxu0  ;;  %v4877_v36 = vpack.c.bf16 %v3289_v35, %v3288_v5 }
 0x9c1   :  { %v3272_v37 = vld [vmem:[%s6932_s3 + $0x50] sm:$0xff] }
 0x9c2   :  { %v3145_v39 = vmul.f32 %v3144_v46, %v2793_v53  ;;  %v3311_v53 = vld [vmem:[%s6932_s3 + $0x188] sm:$0xff]  ;;  %v3317_v46 = vld [vmem:[%s6932_s3 + $0x1b8] sm:$0xff]  ;;  %4878 = vmatprep.subr.bf16.mxu1 %v4877_v36 }
 0x9c3   :  { %v3137_v38 = vpop.f32.mrb[52].mxu0  ;;  %v4889_v54 = vpack.c.bf16 %v3311_v53, %v3310_v50  ;;  %v4885_v50 = vpack.c.bf16 %v3293_v28, %v3292_v45  ;;  %v3321_v53 = vld [vmem:[%s6932_s3 + $0x1d8] sm:$0xff] }
 0x9c4   :  { %v3149_v40 = vrot.slane %v3137_v38, %v5986_v25  ;;  %v4486_v41 = vpop.f32.mrb[53].mxu0  ;;  %v3273_v38 = vld [vmem:[%s6932_s3 + $0x58] sm:$0xff]  ;;  %v4909_v10 = vpack.c.bf16 %v3321_v53, %v3320_v2 }
 0x9c5   :  { %4890 = vmatprep.subr.bf16.mxu0 %v4889_v54  ;;  %v3300_v41 = vld [vmem:[%s6932_s3 + $0x130] sm:$0xff]  ;;  %v3277_v54 = vld [vmem:[%s6932_s3 + $0x78] sm:$0xff] }
 0x9c6   :  { %v3150_v43 = vadd.f32 %v3149_v40, %v3145_v39  ;;  %4892 = vmatpush3.bf16.msra.mxu0 %v4891_v17  ;;  %v4901_v39 = vpack.c.bf16 %v3317_v46, %v3316_v34  ;;  %v4879_v40 = vpack.c.bf16 %v3273_v38, %v3272_v37  ;;  %v4887_v21 = vpack.c.bf16 %v3277_v54, %v3276_v4 }
 0x9c7   :  { %4894 = vmatprep.subr.bf16.mxu0 %v4893_v59  ;;  %v4913_v59 = vpack.c.bf16 %v3323_v24, %v3322_v7  ;;  %v6881_v35 = vpop.f32.mrb[54].mxu0 }
 0x9c8   :  { %v3151_v51 = vmax.f32 %v3150_v43, 0.0  ;;  %v3301_v43 = vld [vmem:[%s6932_s3 + $0x138] sm:$0xff]  ;;  %4880 = vmatpush3.bf16.msra.mxu1 %v4879_v40  ;;  %v4491_v34 = vpop.f32.mrb[55].mxu0 }
 0x9c9   :  { %v4903_v52 = vpack.c.bf16 %v3301_v43, %v3300_v41  ;;  %4882 = vmatprep.subr.bf16.mxu1 %v4881_v56  ;;  %v3328_v41 = vld [vmem:[%s6932_s3 + $0x210] sm:$0xff]  ;;  %v3329_v43 = vld [vmem:[%s6932_s3 + $0x218] sm:$0xff]  ;;  %v3330_v56 = vld [vmem:[%s6932_s3 + $0x220] sm:$0xff] }
 0x9ca   :  { %3153 = vrot.lane.b32.xlu1 %v3151_v51, %s5009_s16  ;;  %4896 = vmatpush3.bf16.msra.mxu0 %v4895_v8  ;;  %v3324_v8 = vld [vmem:[%s6932_s3 + $0x1f0] sm:$0xff]  ;;  %v4929_v32 = vpack.c.bf16 %v3331_v58, %v3330_v56 }
 0x9cb   :  { %4898 = vmatprep.subr.bf16.mxu0 %v4897_v31  ;;  %v4917_v16 = vpack.c.bf16 %v3325_v9, %v3324_v8  ;;  %v4919_v31 = vpack.c.bf16 %v3309_v22, %v3308_v62 }
 0x9cc   :  { %4884 = vmatpush3.bf16.msra.mxu1 %v4883_v63 }
 0x9cd   :  { %4886 = vmatprep.subr.bf16.mxu1 %v4885_v50 }
 0x9ce   :  { %4900 = vmatpush3.bf16.msra.mxu0 %v4899_v33 }
 0x9cf   :  { %4902 = vmatprep.subr.bf16.mxu0 %v4901_v39 }
 0x9d0   :  { %4888 = vmatpush3.bf16.msra.mxu1 %v4887_v21 }
 0x9d1   :  { %4922 = vmatprep.subr.bf16.mxu1 %v4921_v49 }
 0x9d2   :  { %4904 = vmatpush3.bf16.msra.mxu0 %v4903_v52  ;;  %v4925_v52 = vpack.c.bf16 %v3329_v43, %v3328_v41 }
 0x9d3   :  { %4906 = vmatprep.subr.bf16.mxu0 %v4905_v61 }
 0x9d6   :  { %4908 = vmatpush3.bf16.msra.mxu0 %v4907_v44  ;;  %v4933_v44 = vpack.c.bf16 %v3333_v57, %v3332_v60 }
 0x9d7   :  { %4910 = vmatprep.subr.bf16.mxu0 %v4909_v10 }
 0x9da   :  { %4912 = vmatpush3.bf16.msra.mxu0 %v4911_v14 }
 0x9db   :  { %4914 = vmatprep.subr.bf16.mxu0 %v4913_v59 }
 0x9de   :  { %4916 = vmatpush3.bf16.msra.mxu0 %v4915_v6 }
 0x9df   :  { %4918 = vmatprep.subr.bf16.mxu0 %v4917_v16 }
 0x9e2   :  { %4920 = vmatpush3.bf16.msra.mxu0 %v4919_v31 }
 0xa3c   :  { %v3154_v51 = vpop.permute.xlu1 %3153 }
 0xa3d   :  { %3157 = vst.msk [vmem:[#allocation5 + $0x1] sm:$0xf] %vm3156_vm7, %v3154_v51 }
 0xa3e   :  { %3159 = vst.msk [vmem:[#allocation5 + $0x3] sm:$0xf0] %vm3158_vm8, %v3154_v51 }
 0xa45   :  { %v3188_v15 = vld [vmem:[#allocation5 + $0x1] sm:$0xff]  ;;  %v3225_v26 = vld [vmem:[#allocation5 + $0xa] sm:$0xf] }
 0xa46   :  { %v3176_v17 = vld [vmem:[#allocation5] sm:$0xff]  ;;  %3192 = vrot.lane.b32.xlu1 %v3188_v15, %s6955_s10  ;;  %v3161_v13 = vld [vmem:[#allocation5 + $0x8] sm:$0xf]  ;;  %3227 = vst.msk [vmem:[#allocation6 + $0x40] sm:$0xf] %vm1844_vm2, %v3225_v26 }
 0xa47   :  { %3180 = vrot.lane.b32.xlu0 %v3176_v17, %s5010_s22  ;;  %v3228_v18 = vld [vmem:[#allocation5 + $0x2] sm:$0xff]  ;;  %3162 = vst.msk [vmem:[#allocation6] sm:$0xff] %vm1491_vm11, %v3176_v17  ;;  %v3229_v29 = vld [vmem:[#allocation5 + $0xa] sm:$0xf] }
 0xa48   :  { %3226 = vst.msk [vmem:[#allocation6 + $0x18] sm:$0xff] %vm1491_vm11, %v3228_v18  ;;  %v3177_v0 = vld [vmem:[#allocation5 + $0x8] sm:$0xf] }
 0xa49   :  { %3163 = vst.msk [vmem:[#allocation6 + $0x28] sm:$0xf] %vm1844_vm2, %v3161_v13  ;;  %v3189_v33 = vld [vmem:[#allocation5 + $0x9] sm:$0xf] }
 0xa4a   :  { %3204 = vrot.lane.b32.xlu1 %v3188_v15, %s6961_s7  ;;  %v3201_v23 = vld [vmem:[#allocation5 + $0x9] sm:$0xf] }
 0xa4b   :  { %3168 = vrot.lane.b32.xlu0 %v3176_v17, %s5008_s17  ;;  %v3165_v19 = vld [vmem:[#allocation5 + $0x8] sm:$0xf]  ;;  %v3419_v17 = vrot.slane %v6881_v35, %v5986_v25 }
 0xa4c   :  { %v3213_v20 = vld [vmem:[#allocation5 + $0x9] sm:$0xf] }
 0xa4d   :  { %v3241_v5 = vld [vmem:[#allocation5 + $0xa] sm:$0xf] }
 0xa4e   :  { %3182 = vrot.lane.b32.xlu1 %v3177_v0, %s5010_s22 }
 0xa4f   :  { %3232 = vrot.lane.b32.xlu0 %v3228_v18, %s5008_s17 }
 0xa52   :  { %3194 = vrot.lane.b32.xlu1 %v3189_v33, %s6955_s10 }
 0xa53   :  { %3216 = vrot.lane.b32.xlu0 %v3188_v15, %s6972_s30 }
 0xa56   :  { %3206 = vrot.lane.b32.xlu1 %v3201_v23, %s6961_s7 }
 0xa57   :  { %3170 = vrot.lane.b32.xlu0 %v3165_v19, %s5008_s17 }
 0xa5a   :  { %3218 = vrot.lane.b32.xlu1 %v3213_v20, %s6972_s30 }
 0xa5b   :  { %3234 = vrot.lane.b32.xlu0 %v3229_v29, %s5008_s17 }
 0xa5e   :  { %3246 = vrot.lane.b32.xlu1 %v3241_v5, %s5010_s22 }
 0xa5f   :  { %3244 = vrot.lane.b32.xlu0 %v3228_v18, %s5010_s22 }
 0xab8   :  { %v3193_v36 = vpop.permute.xlu1 %3192 }
 0xab9   :  { %v3181_v46 = vpop.permute.xlu0 %3180 }
 0xaba   :  { %3186 = vst.msk [vmem:[#allocation6 + $0x8] sm:$0xff] %vm1491_vm11, %v3181_v46 }
 0xabb   :  { %3198 = vst.msk [vmem:[#allocation6 + $0x8] sm:$0xff] %vm1861_vm3, %v3193_v36 }
 0xabc   :  { %v3205_v37 = vpop.permute.xlu1 %3204 }
 0xabd   :  { %v3169_v38 = vpop.permute.xlu0 %3168  ;;  %3210 = vst.msk [vmem:[#allocation6 + $0x10] sm:$0xff] %vm1491_vm11, %v3205_v37 }
 0xabe   :  { %3174 = vst.msk [vmem:[#allocation6] sm:$0xff] %vm1861_vm3, %v3169_v38 }
 0xac0   :  { %v3183_v39 = vpop.permute.xlu1 %3182 }
 0xac1   :  { %v3233_v40 = vpop.permute.xlu0 %3232  ;;  %3187 = vst.msk [vmem:[#allocation6 + $0x30] sm:$0xf] %vm1844_vm2, %v3183_v39 }
 0xac2   :  { %3238 = vst.msk [vmem:[#allocation6 + $0x18] sm:$0xff] %vm1861_vm3, %v3233_v40  ;;  %v3253_v51 = vld [vmem:[#allocation6 + $0x8] sm:$0xff] }
 0xac3   :  { %3490 = vmatprep.mubr.f32.mxu1 %v3253_v51 }
 0xac4   :  { %v3195_v30 = vpop.permute.xlu1 %3194 }
 0xac5   :  { %v3217_v55 = vpop.permute.xlu0 %3216  ;;  %v3252_v42 = vld [vmem:[#allocation6] sm:$0xff]  ;;  %3199 = vst.msk [vmem:[#allocation6 + $0x30] sm:$0xf] %vm1864_vm4, %v3195_v30 }
 0xac6   :  { %3222 = vst.msk [vmem:[#allocation6 + $0x10] sm:$0xff] %vm1861_vm3, %v3217_v55  ;;  %3491 = vmatmul.mubr.f32.vlgmr.msra.gmra.mrb[46].mxu1 %v3252_v42  ;;  %vm3653_vm3 = vcmask 64518  }
 0xac7   :  { %4924 = vmatpush3.bf16.msra.mxu1 %v4921_v49 }
 0xac8   :  { %4926 = vmatprep.subr.bf16.mxu1 %v4925_v52  ;;  %v3207_v48 = vpop.permute.xlu1 %3206 }
 0xac9   :  { %v3171_v61 = vpop.permute.xlu0 %3170  ;;  %v3255_v63 = vld [vmem:[#allocation6 + $0x18] sm:$0xff]  ;;  %3211 = vst.msk [vmem:[#allocation6 + $0x38] sm:$0xf] %vm1844_vm2, %v3207_v48 }
 0xaca   :  { %3175 = vst.msk [vmem:[#allocation6 + $0x28] sm:$0xf] %vm1864_vm4, %v3171_v61  ;;  %3565 = vmatprep.mubr.f32.mxu0 %v3255_v63 }
 0xacb   :  { %4928 = vmatpush3.bf16.msra.mxu1 %v4925_v52 }
 0xacc   :  { %4930 = vmatprep.subr.bf16.mxu1 %v4929_v32  ;;  %v3219_v45 = vpop.permute.xlu1 %3218  ;;  %v3258_v2 = vld [vmem:[#allocation6 + $0x30] sm:$0xf] }
 0xacd   :  { %v3235_v28 = vpop.permute.xlu0 %3234  ;;  %v3254_v50 = vld [vmem:[#allocation6 + $0x10] sm:$0xff]  ;;  %3223 = vst.msk [vmem:[#allocation6 + $0x38] sm:$0xf] %vm1864_vm4, %v3219_v45  ;;  %3495 = vmatprep.mubr.f32.mxu1 %v3258_v2 }
 0xace   :  { %3239 = vst.msk [vmem:[#allocation6 + $0x40] sm:$0xf] %vm1864_vm4, %v3235_v28  ;;  %3566 = vmatmul.mubr.f32.vlgmr.msra.gmra.mrb[56].mxu0 %v3254_v50 }
 0xacf   :  { %4932 = vmatpush3.bf16.msra.mxu1 %v4929_v32 }
 0xad0   :  { %4934 = vmatprep.subr.bf16.mxu1 %v4933_v44  ;;  %v3247_v53 = vpop.permute.xlu1 %3246 }
 0xad1   :  { %v3245_v4 = vpop.permute.xlu0 %3244  ;;  %v3257_v54 = vld [vmem:[#allocation6 + $0x28] sm:$0xf]  ;;  %3251 = vst.msk [vmem:[#allocation6 + $0x48] sm:$0xf] %vm1844_vm2, %v3247_v53  ;;  %vm3651_vm2 = vcmask 60416  }
 0xad2   :  { %3250 = vst.msk [vmem:[#allocation6 + $0x20] sm:$0xff] %vm1491_vm11, %v3245_v4  ;;  %3496 = vmatmul.mubr.f32.gmra.mrb[48].mxu1 %v3257_v54 }
 0xad3   :  { %4936 = vmatpush3.bf16.msra.mxu1 %v4933_v44 }
 0xad4   :  { %v3259_v21 = vld [vmem:[#allocation6 + $0x38] sm:$0xf] }
 0xad5   :  { %v3260_v10 = vld [vmem:[#allocation6 + $0x40] sm:$0xf] }
 0xad6   :  { %3570 = vmatprep.mubr.f32.mxu0 %v3260_v10 }
 0xad7   :  { %3571 = vmatmul.mubr.f32.gmra.mrb[58].mxu0 %v3259_v21 }
 0xad8   :  { %v3261_v12 = vld [vmem:[#allocation6 + $0x48] sm:$0xf] }
 0xad9   :  { %v3256_v11 = vld [vmem:[#allocation6 + $0x20] sm:$0xff] }
 0xada   :  { %4508 = vmatprep.mubr.msk.f32.mxu1 %vm1491_vm11, %v3256_v11 }
 0xadb   :  { %4509 = vmatmul.mubr.msk.f32.vlgmr.msra.gmra.mrb[50].mxu1 %vm1491_vm11, %v3261_v12  ;;  %vm3655_vm11 = vcmask 58368  }
 0xb99   :  { %v4239_v14 = vpop.f32.mrb[46].mxu1 }
 0xb9a   :  { %v4240_v15 = vpop.f32.mrb[47].mxu1 }
 0xb9b   :  { %v4241_v18 = vadd.f32 %v4240_v15, %v4239_v14 }
 0xb9d   :  { %v3493_v7 = vadd.f32 %v4241_v18, %v3419_v17 }
 0xba1   :  { %v4277_v24 = vpop.f32.mrb[56].mxu0 }
 0xba2   :  { %v4278_v59 = vpop.f32.mrb[57].mxu0 }
 0xba3   :  { %v4279_v3 = vadd.f32 %v4278_v59, %v4277_v24 }
 0xba5   :  { %v4242_v47 = vpop.f32.mrb[48].mxu1  ;;  %v3568_v13 = vadd.f32 %v4279_v3, %v3493_v7 }
 0xba6   :  { %v4243_v6 = vpop.f32.mrb[49].mxu1 }
 0xba7   :  { %v4244_v8 = vadd.f32 %v4243_v6, %v4242_v47 }
 0xba9   :  { %v3498_v9 = vadd.f32 %v4244_v8, %v3419_v17 }
 0xbaa   :  { %v4280_v26 = vpop.f32.mrb[58].mxu0 }
 0xbab   :  { %v4281_v16 = vpop.f32.mrb[59].mxu0 }
 0xbac   :  { %v4282_v62 = vadd.f32 %v4281_v16, %v4280_v26 }
 0xbae   :  { %v3573_v22 = vadd.f32 %v4282_v62, %v3498_v9  ;;  %v4510_v1 = vpop.f32.mrb[50].mxu1 }
 0xbaf   :  { %v3642_v31 = vpop.f32.mrb[51].mxu1 }
 0xbb0   :  { %v3648_v25 = vadd.f32 %v4510_v1, %v3573_v22  ;;  %v3643_v27 = vadd.f32 %v3642_v31, %v3568_v13 }
 0xbb2   :  { %3656 = vst.msk [vmem:[%s6933_s5 + $0x6] sm:$0x3] %vm3655_vm11, %v3648_v25 }
 0xbb3   :  { %3652 = vst.msk [vmem:[%s6933_s5] sm:$0xf] %vm3651_vm2, %v3643_v27 }
 0xbb4   :  { %3654 = vst.msk [vmem:[%s6933_s5 - $0x2] sm:$0xc0] %vm3653_vm3, %v3643_v27 }

</bundles_post_ra>
